<compile_context>
chip_gen: v5e
topology: v5e:2x2
jax: 0.10.0
libtpu: 0.0.40
codegen_flags: <defaults>
</compile_context>

<pallas_src>
import functools

import jax
import jax.numpy as jnp
from jax.experimental import pallas as pl
from jax.experimental.pallas import tpu as pltpu


def _round_up(x, m):
    return ((x + m - 1) // m) * m


def _fit(dim, target, align):
    """Largest block size <= target that divides dim (multiple of align).

    Returns dim itself when dim <= target; returns 0 when no aligned divisor exists
    (caller decides whether to pad or fall back to the full dimension)."""
    if dim <= target:
        return int(dim)
    t = (target // align) * align
    while t >= align:
        if dim % t == 0:
            return int(t)
        t -= align
    return 0


@functools.lru_cache(maxsize=None)
def _vmem_limit_bytes():
    """Per-chip scoped-VMEM budget: 3/4 of physical VMEM, capped at 100 MiB.

    v5e/v6e (128 MiB physical) -> 96 MiB; v7x (64 MiB per TC) -> 48 MiB.
    Falls back to 48 MiB if the query is unavailable (safe on every generation)."""
    cap = 64 * 1024 * 1024
    try:
        cap = int(pltpu.get_tpu_info().vmem_capacity_bytes)
    except Exception:
        pass
    return int(min((cap * 3) // 4, 100 * 1024 * 1024))


# ----------------------------------------------------------------------------
# Pallas kernels
# ----------------------------------------------------------------------------
def _gemm_bn_kernel(x_ref, w_ref, s_ref, b_ref, o_ref, acc_ref, *, relu):
    """out = relu?( (x @ w) * scale + bias ), K-reduction over grid axis 2."""
    k = pl.program_id(2)

    @pl.when(k == 0)
    def _():
        acc_ref[...] = jnp.zeros_like(acc_ref)

    acc_ref[...] += jnp.dot(x_ref[...], w_ref[...], preferred_element_type=jnp.float32)

    @pl.when(k == pl.num_programs(2) - 1)
    def _():
        z = acc_ref[...] * s_ref[...] + b_ref[...]
        if relu:
            z = jnp.maximum(z, 0.0)
        o_ref[...] = z.astype(o_ref.dtype)


def _gemm_bn_res_relu_kernel(x_ref, w_ref, s_ref, b_ref, r_ref, o_ref, acc_ref):
    """out = relu( (x @ w) * scale + bias + residual ), residual added at last K step."""
    k = pl.program_id(2)

    @pl.when(k == 0)
    def _():
        acc_ref[...] = jnp.zeros_like(acc_ref)

    acc_ref[...] += jnp.dot(x_ref[...], w_ref[...], preferred_element_type=jnp.float32)

    @pl.when(k == pl.num_programs(2) - 1)
    def _():
        z = acc_ref[...] * s_ref[...] + b_ref[...] + r_ref[...].astype(jnp.float32)
        o_ref[...] = jnp.maximum(z, 0.0).astype(o_ref.dtype)


def _gemm_bn_res_relu_pool_kernel(x_ref, w_ref, s_ref, b_ref, r_ref, o_ref, acc_ref,
                                  *, inv_hw):
    """Last-block conv3: relu((x@w)*s+b+res) then spatial mean -> (1, tn) per batch."""
    k = pl.program_id(2)

    @pl.when(k == 0)
    def _():
        acc_ref[...] = jnp.zeros_like(acc_ref)

    acc_ref[...] += jnp.dot(x_ref[0], w_ref[...], preferred_element_type=jnp.float32)

    @pl.when(k == pl.num_programs(2) - 1)
    def _():
        z = acc_ref[...] * s_ref[...] + b_ref[...] + r_ref[0].astype(jnp.float32)
        z = jnp.maximum(z, 0.0)
        o_ref[0] = (jnp.sum(z, axis=0, keepdims=True) * inv_hw).astype(o_ref.dtype)


def _make_conv3x3_kernel(taps, m_wide, w_row, wo, ho, num_inputs):
    """3x3 conv as 9 shifted matmuls accumulated in a LOCAL f32 value (vregs/MRB).

    taps: static tuple of (input_index, flat_row_offset) per (kh, kw) tap; every
    tap slice is contiguous with a static start (stride handled by the 2x2 phase
    decomposition built in the wrapper).  The epilogue (scale/bias/relu) is applied
    once and only the valid `wo` columns of each of the `ho` wide rows are stored,
    so no garbage ever reaches HBM and there is no VMEM accumulator scratch.
    """

    def kernel(*args):
        x_refs = args[:num_inputs]
        w_ref, s_ref, b_ref, o_ref = args[num_inputs:]

        which0, start0 = taps[0]
        acc = jnp.dot(x_refs[which0][0, pl.ds(start0, m_wide), :], w_ref[0],
                      preferred_element_type=jnp.float32)
        for t in range(1, len(taps)):
            which, start = taps[t]
            acc = acc + jnp.dot(x_refs[which][0, pl.ds(start, m_wide), :], w_ref[t],
                                preferred_element_type=jnp.float32)

        z = jnp.maximum(acc * s_ref[...] + b_ref[...], 0.0)
        for oh in range(ho):                       # drop garbage edge columns in VMEM
            o_ref[0, oh] = z[oh * w_row: oh * w_row + wo, :].astype(o_ref.dtype)

    return kernel


# ----------------------------------------------------------------------------
# Wrappers (tiling, BlockSpecs, dtype handling)
# ----------------------------------------------------------------------------
def fused_matmul_bn(x2d, w, scale, bias, residual=None, relu=True,
                    out_dtype=jnp.bfloat16, tm=512, tn=512, tk=2048):
    """x2d: (M, K), w: (K, N), scale/bias: (1, N) f32, residual: (M, N) or None."""
    M, K = x2d.shape
    N = w.shape[1]
    # Note: channel counts below 128 (toy demo only) produce masked lane stores;
    # real layer4 channel counts (512/1024/2048) keep output tiles lane-dense.
    tn = _fit(N, tn, 128) or N
    tk = _fit(K, tk, 128) or K

    # M tiling: prefer a large exact divisor; otherwise zero-pad M to a multiple of
    # tm so awkward row counts (e.g. N*49) never degrade to tiny MXU tiles.
    tm_exact = _fit(M, tm, 8)
    if tm_exact == M or tm_exact >= 256:
        tm_eff, Mp = tm_exact, M
    else:
        tm_eff = min(tm, _round_up(M, 8))
        Mp = _round_up(M, tm_eff)

    x2d = x2d.astype(jnp.bfloat16)
    if residual is not None:
        residual = residual.astype(jnp.bfloat16)
    if Mp != M:
        x2d = jnp.pad(x2d, ((0, Mp - M), (0, 0)))
        if residual is not None:
            residual = jnp.pad(residual, ((0, Mp - M), (0, 0)))

    grid = (Mp // tm_eff, N // tn, K // tk)

    x_spec = pl.BlockSpec((tm_eff, tk), lambda i, j, k: (i, k))
    w_spec = pl.BlockSpec((tk, tn), lambda i, j, k: (k, j))
    v_spec = pl.BlockSpec((1, tn), lambda i, j, k: (0, j))
    o_spec = pl.BlockSpec((tm_eff, tn), lambda i, j, k: (i, j))
    params = pltpu.CompilerParams(
        dimension_semantics=("parallel", "parallel", "arbitrary"),
        vmem_limit_bytes=_vmem_limit_bytes())
    scratch = [pltpu.VMEM((tm_eff, tn), jnp.float32)]
    out_shape = jax.ShapeDtypeStruct((Mp, N), out_dtype)
    cost = pl.CostEstimate(
        flops=2 * Mp * N * K,
        transcendentals=0,
        bytes_accessed=2 * (Mp * K + K * N + Mp * N)
        + (0 if residual is None else 2 * Mp * N) + 8 * N)

    if residual is None:
        out = pl.pallas_call(
            functools.partial(_gemm_bn_kernel, relu=relu),
            out_shape=out_shape,
            grid=grid,
            in_specs=[x_spec, w_spec, v_spec, v_spec],
            out_specs=o_spec,
            scratch_shapes=scratch,
            compiler_params=params,
            cost_estimate=cost,
        )(x2d, w.astype(jnp.bfloat16), scale, bias)
    else:
        out = pl.pallas_call(
            _gemm_bn_res_relu_kernel,
            out_shape=out_shape,
            grid=grid,
            in_specs=[x_spec, w_spec, v_spec, v_spec, o_spec],
            out_specs=o_spec,
            scratch_shapes=scratch,
            compiler_params=params,
            cost_estimate=cost,
        )(x2d, w.astype(jnp.bfloat16), scale, bias, residual)

    return out if Mp == M else out[:M]


def conv3x3_bn_relu(x, w, scale, bias, stride):
    """3x3 conv (pad=1, given stride) + folded BN + ReLU, no im2col materialization.

    x: (N, H, W, C) ; w: (3, 3, C, Cout) ; returns (N, Ho, Wo, Cout) bf16.
    stride==1: single flattened padded view, 9 shifted taps (wide rows of width W+2).
    stride==2: 2x2 phase decomposition (4 views, ~1x data) so wide rows are at output
               resolution -> ~1.1-1.25x FLOPs instead of ~2.3x.
    Valid columns are selected inside the kernel; no wrapper-side slice / extra HBM pass.
    """
    N, H, W, C = x.shape
    Cout = w.shape[-1]
    Ho = (H - 1) // stride + 1
    Wo = (W - 1) // stride + 1
    xp = jnp.pad(x, ((0, 0), (1, 1), (1, 1), (0, 0)))
    Hp, Wp = H + 2, W + 2

    if stride == 1:
        w_row = Wp
        need = Ho * w_row + 2 * Wp + 2              # max tap offset + slice length
        flat = xp.reshape(N, Hp * Wp, C)
        if need > Hp * Wp:
            flat = jnp.pad(flat, ((0, 0), (0, need - Hp * Wp), (0, 0)))
        inputs = [flat]
        taps = tuple((0, kh * Wp + kw) for kh in range(3) for kw in range(3))
    elif stride == 2:
        Hh, Wh = (Hp + 1) // 2, (Wp + 1) // 2
        w_row = Wh
        need = Ho * w_row + Wh + 1                  # max tap offset + slice length
        inputs = []
        for rp in range(2):
            for cp in range(2):
                ph = xp[:, rp::2, cp::2, :]
                pad_h, pad_w = Hh - ph.shape[1], Wh - ph.shape[2]
                if pad_h or pad_w:
                    ph = jnp.pad(ph, ((0, 0), (0, pad_h), (0, pad_w), (0, 0)))
                ph = ph.reshape(N, Hh * Wh, C)
                if need > Hh * Wh:
                    ph = jnp.pad(ph, ((0, 0), (0, need - Hh * Wh), (0, 0)))
                inputs.append(ph)
        taps = tuple(((kh & 1) * 2 + (kw & 1), (kh >> 1) * Wh + (kw >> 1))
                     for kh in range(3) for kw in range(3))
    else:
        raise NotImplementedError(f"stride={stride}")

    M_wide = Ho * w_row
    w9 = w.reshape(9, C, Cout).astype(jnp.bfloat16)
    tn = _fit(Cout, 256, 128) or Cout
    grid = (N, Cout // tn)
    L = int(inputs[0].shape[1])

    in_specs = [pl.BlockSpec((1, L, C), lambda n, j: (n, 0, 0)) for _ in inputs]
    in_specs += [
        pl.BlockSpec((9, C, tn), lambda n, j: (0, 0, j)),
        pl.BlockSpec((1, tn), lambda n, j: (0, j)),
        pl.BlockSpec((1, tn), lambda n, j: (0, j)),
    ]
    out_spec = pl.BlockSpec((1, Ho, Wo, tn), lambda n, j: (n, 0, 0, j))

    kernel = _make_conv3x3_kernel(taps, M_wide, w_row, Wo, Ho, len(inputs))
    return pl.pallas_call(
        kernel,
        out_shape=jax.ShapeDtypeStruct((N, Ho, Wo, Cout), jnp.bfloat16),
        grid=grid,
        in_specs=in_specs,
        out_specs=out_spec,
        compiler_params=pltpu.CompilerParams(
            dimension_semantics=("parallel", "parallel"),
            vmem_limit_bytes=_vmem_limit_bytes()),
        cost_estimate=pl.CostEstimate(
            flops=2 * N * M_wide * Cout * C * 9,
            transcendentals=0,
            bytes_accessed=2 * (N * len(inputs) * L * C + 9 * C * Cout
                                + N * Ho * Wo * Cout)),
    )(*[a.astype(jnp.bfloat16) for a in inputs], w9, scale, bias)


def fused_matmul_bn_res_relu_pool(x3d, w, scale, bias, residual3d,
                                  tn=256, tk=2048):
    """Last-block conv3 + BN + residual + ReLU + global spatial mean -> (N, Cout) f32."""
    N, HW, K = x3d.shape
    Cout = w.shape[1]
    tn = _fit(Cout, tn, 128) or Cout
    tk = _fit(K, tk, 128) or K
    grid = (N, Cout // tn, K // tk)

    out = pl.pallas_call(
        functools.partial(_gemm_bn_res_relu_pool_kernel, inv_hw=1.0 / HW),
        out_shape=jax.ShapeDtypeStruct((N, 1, Cout), jnp.float32),
        grid=grid,
        in_specs=[
            pl.BlockSpec((1, HW, tk), lambda n, j, k: (n, 0, k)),
            pl.BlockSpec((tk, tn), lambda n, j, k: (k, j)),
            pl.BlockSpec((1, tn), lambda n, j, k: (0, j)),
            pl.BlockSpec((1, tn), lambda n, j, k: (0, j)),
            pl.BlockSpec((1, HW, tn), lambda n, j, k: (n, 0, j)),
        ],
        out_specs=pl.BlockSpec((1, 1, tn), lambda n, j, k: (n, 0, j)),
        scratch_shapes=[pltpu.VMEM((HW, tn), jnp.float32)],
        compiler_params=pltpu.CompilerParams(
            dimension_semantics=("parallel", "parallel", "arbitrary"),
            vmem_limit_bytes=_vmem_limit_bytes()),
        cost_estimate=pl.CostEstimate(
            flops=2 * N * HW * Cout * K,
            transcendentals=0,
            bytes_accessed=2 * (N * HW * K + K * Cout + N * HW * Cout) + 4 * N * Cout),
    )(x3d.astype(jnp.bfloat16), w.astype(jnp.bfloat16), scale, bias,
      residual3d.astype(jnp.bfloat16))
    return out.reshape(N, Cout)


# ----------------------------------------------------------------------------
# JAX glue: frozen-BN folding + bottleneck wiring
# ----------------------------------------------------------------------------
def fold_bn(bn_params, eps=1e-5):
    gamma, beta, mean, var = bn_params
    scale = gamma / jnp.sqrt(var + eps)
    bias = beta - mean * scale
    return scale.reshape(1, -1), bias.reshape(1, -1)


def bottleneck_block(x, p, stride, has_downsample, fuse_pool):
    """Torchvision Bottleneck: 1x1 -> 3x3(stride) -> 1x1(x4) + residual, frozen BN."""
    N, H, W, Cin = x.shape
    planes = p["w1"].shape[1]
    cout = p["w3"].shape[1]

    # conv1 (1x1) + bn1 + relu
    s1, b1 = fold_bn(p["bn1"])
    out = fused_matmul_bn(x.reshape(N * H * W, Cin), p["w1"], s1, b1, relu=True)
    out = out.reshape(N, H, W, planes)

    # conv2 (3x3, stride) + bn2 + relu  (in-kernel 9-tap accumulation, no im2col)
    s2, b2 = fold_bn(p["bn2"])
    out = conv3x3_bn_relu(out, p["w2"], s2, b2, stride)
    _, Ho, Wo, _ = out.shape

    # identity path
    if has_downsample:
        xs = x[:, ::stride, ::stride, :]  # 1x1 stride-s conv == subsample + GEMM
        sd, bd = fold_bn(p["bnd"])
        identity = fused_matmul_bn(
            xs.reshape(N * Ho * Wo, Cin), p["wd"], sd, bd, relu=False)
    else:
        identity = x.reshape(N * Ho * Wo, Cin)  # Cin == cout in identity blocks

    # conv3 (1x1) + bn3 + residual + relu (+ fused global mean for the last block)
    s3, b3 = fold_bn(p["bn3"])
    if fuse_pool:
        return fused_matmul_bn_res_relu_pool(
            out.reshape(N, Ho * Wo, planes), p["w3"], s3, b3,
            identity.reshape(N, Ho * Wo, cout))
    out = fused_matmul_bn(out.reshape(N * Ho * Wo, planes), p["w3"], s3, b3,
                          residual=identity, relu=True)
    return out.reshape(N, Ho, Wo, cout)


def feature_vector_pooler(x_nchw, params):
    """forward: x = layer4(x); x = x.mean(-1).mean(-1)   (returns (N, C_out) f32)."""
    x = jnp.transpose(x_nchw, (0, 2, 3, 1)).astype(jnp.bfloat16)  # NCHW -> NHWC, bf16
    n_blocks = len(params)
    for i, p in enumerate(params):
        stride = 2 if i == 0 else 1
        x = bottleneck_block(x, p, stride=stride, has_downsample=(i == 0),
                             fuse_pool=(i == n_blocks - 1))
    return x  # (N, C_out) float32


# ----------------------------------------------------------------------------
# Deterministic synthetic parameters (ResNet-50-style layer4, scaled down)
# ----------------------------------------------------------------------------
def _init_bn(key, c):
    k1, k2, k3, k4 = jax.random.split(key, 4)
    gamma = 1.0 + 0.1 * jax.random.normal(k1, (c,), jnp.float32)
    beta = 0.1 * jax.random.normal(k2, (c,), jnp.float32)
    running_mean = 0.1 * jax.random.normal(k3, (c,), jnp.float32)
    running_var = jnp.abs(jax.random.normal(k4, (c,), jnp.float32)) + 0.5
    return (gamma, beta, running_mean, running_var)


def init_layer4_params(key, inplanes, planes, expansion, num_blocks):
    params = []
    cout = planes * expansion
    cin = inplanes
    for i in range(num_blocks):
        key, *ks = jax.random.split(key, 9)
        p = {
            "w1": 0.1 * jax.random.normal(ks[0], (cin, planes), jnp.float32),
            "bn1": _init_bn(ks[1], planes),
            "w2": 0.1 * jax.random.normal(ks[2], (3, 3, planes, planes), jnp.float32),
            "bn2": _init_bn(ks[3], planes),
            "w3": 0.1 * jax.random.normal(ks[4], (planes, cout), jnp.float32),
            "bn3": _init_bn(ks[5], cout),
        }
        if i == 0:
            p["wd"] = 0.1 * jax.random.normal(ks[6], (cin, cout), jnp.float32)
            p["bnd"] = _init_bn(ks[7], cout)
        params.append(p)
        cin = cout
    return params


# ----------------------------------------------------------------------------
if __name__ == "__main__":
    # Small shapes: layer4 of a scaled-down Bottleneck ResNet:
    #   inplanes=16, planes=8, expansion=4 -> output channels 32; 3 blocks; stride 2.
    BATCH, IN_PLANES, SPATIAL = 2, 16, 8
    PLANES, EXPANSION, NUM_BLOCKS = 8, 4, 3

    key = jax.random.PRNGKey(0)
    k_x, k_p = jax.random.split(key)
    x = jax.random.normal(k_x, (BATCH, IN_PLANES, SPATIAL, SPATIAL), jnp.float32)  # NCHW
    params = init_layer4_params(k_p, IN_PLANES, PLANES, EXPANSION, NUM_BLOCKS)

    fwd = jax.jit(feature_vector_pooler)
    out = fwd(x, params)  # (BATCH, PLANES * EXPANSION) = (2, 32)
    jax.block_until_ready(out)
    assert out.shape == (BATCH, PLANES * EXPANSION), out.shape
    print("KERNEL_OK")
</pallas_src>

<mosaic_0001>
module attributes {stable_mosaic.version = 11 : i64} {
  func.func @_gemm_bn_kernel(%arg0: i32, %arg1: i32, %arg2: i32, %arg3: memref<128x16xbf16, #tpu.memory_space<vmem>>, %arg4: memref<16x8xbf16, #tpu.memory_space<vmem>>, %arg5: memref<1x8xf32, #tpu.memory_space<vmem>>, %arg6: memref<1x8xf32, #tpu.memory_space<vmem>>, %arg7: memref<128x8xbf16, #tpu.memory_space<vmem>>, %arg8: memref<128x8xf32, #tpu.memory_space<vmem>>) attributes {dimension_semantics = [#tpu.dimension_semantics<parallel>, #tpu.dimension_semantics<parallel>, #tpu.dimension_semantics<arbitrary>], iteration_bounds = array<i64: 1, 1, 1>, scalar_prefetch = 0 : i64, scratch_operands = 1 : i64, tpu.core_type = #tpu.core_type<tc>, window_params = [{transform_indices = @transform_0, window_bounds = array<i64: 128, 16>}, {transform_indices = @transform_1, window_bounds = array<i64: 16, 8>}, {transform_indices = @transform_2, window_bounds = array<i64: 1, 8>}, {transform_indices = @transform_3, window_bounds = array<i64: 1, 8>}, {transform_indices = @transform_4, window_bounds = array<i64: 128, 8>}]} {
    %c0_i32 = arith.constant 0 : i32
    %0 = arith.cmpi eq, %arg2, %c0_i32 : i32
    %1 = arith.extui %0 : i1 to i32
    %c0_i32_0 = arith.constant 0 : i32
    %2 = arith.cmpi ne, %1, %c0_i32_0 : i32
    scf.if %2 {
      %cst_10 = arith.constant 0.000000e+00 : f32
      %12 = vector.broadcast %cst_10 : f32 to vector<128x8xf32>
      %c0_11 = arith.constant 0 : index
      %c0_12 = arith.constant 0 : index
      %13 = vector.load %arg8[%c0_11, %c0_12] : memref<128x8xf32, #tpu.memory_space<vmem>>, vector<128x8xf32>
      tpu.vector_store %arg8[%c0_11, %c0_12], %12 {strides = array<i32>} : memref<128x8xf32, #tpu.memory_space<vmem>>, vector<128x8xf32>,
    } else {
    }
    %c0 = arith.constant 0 : index
    %c0_1 = arith.constant 0 : index
    %3 = vector.load %arg8[%c0, %c0_1] : memref<128x8xf32, #tpu.memory_space<vmem>>, vector<128x8xf32>
    %c0_2 = arith.constant 0 : index
    %c0_3 = arith.constant 0 : index
    %4 = vector.load %arg3[%c0_2, %c0_3] : memref<128x16xbf16, #tpu.memory_space<vmem>>, vector<128x16xbf16>
    %c0_4 = arith.constant 0 : index
    %c0_5 = arith.constant 0 : index
    %5 = vector.load %arg4[%c0_4, %c0_5] : memref<16x8xbf16, #tpu.memory_space<vmem>>, vector<16x8xbf16>
    %cst = arith.constant dense<0.000000e+00> : vector<128x8xf32>
    %6 = tpu.matmul %4, %5, %cst {dimension_numbers = #tpu.dot_dimension_numbers<[1], [0], [0], [1], [0, 0, 1, 1], [], []>} : vector<128x16xbf16>, vector<16x8xbf16>, vector<128x8xf32> -> vector<128x8xf32>
    %7 = arith.addf %3, %6 : vector<128x8xf32>
    %c0_6 = arith.constant 0 : index
    %c0_7 = arith.constant 0 : index
    %8 = vector.load %arg8[%c0_6, %c0_7] : memref<128x8xf32, #tpu.memory_space<vmem>>, vector<128x8xf32>
    tpu.vector_store %arg8[%c0_6, %c0_7], %7 {strides = array<i32>} : memref<128x8xf32, #tpu.memory_space<vmem>>, vector<128x8xf32>,
    %c0_i32_8 = arith.constant 0 : i32
    %9 = arith.cmpi eq, %arg2, %c0_i32_8 : i32
    %10 = arith.extui %9 : i1 to i32
    %c0_i32_9 = arith.constant 0 : i32
    %11 = arith.cmpi ne, %10, %c0_i32_9 : i32
    scf.if %11 {
      %c0_10 = arith.constant 0 : index
      %c0_11 = arith.constant 0 : index
      %12 = vector.load %arg8[%c0_10, %c0_11] : memref<128x8xf32, #tpu.memory_space<vmem>>, vector<128x8xf32>
      %c0_12 = arith.constant 0 : index
      %c0_13 = arith.constant 0 : index
      %13 = vector.load %arg5[%c0_12, %c0_13] : memref<1x8xf32, #tpu.memory_space<vmem>>, vector<1x8xf32>
      %14 = vector.broadcast %13 : vector<1x8xf32> to vector<128x8xf32>
      %15 = arith.mulf %12, %14 : vector<128x8xf32>
      %c0_14 = arith.constant 0 : index
      %c0_15 = arith.constant 0 : index
      %16 = vector.load %arg6[%c0_14, %c0_15] : memref<1x8xf32, #tpu.memory_space<vmem>>, vector<1x8xf32>
      %17 = vector.broadcast %16 : vector<1x8xf32> to vector<128x8xf32>
      %18 = arith.addf %15, %17 : vector<128x8xf32>
      %cst_16 = arith.constant 0.000000e+00 : f32
      %19 = vector.broadcast %cst_16 : f32 to vector<128x8xf32>
      %20 = arith.maximumf %18, %19 : vector<128x8xf32>
      %21 = arith.truncf %20 : vector<128x8xf32> to vector<128x8xbf16>
      %c0_17 = arith.constant 0 : index
      %c0_18 = arith.constant 0 : index
      %22 = vector.load %arg7[%c0_17, %c0_18] : memref<128x8xbf16, #tpu.memory_space<vmem>>, vector<128x8xbf16>
      tpu.vector_store %arg7[%c0_17, %c0_18], %21 {strides = array<i32>} : memref<128x8xbf16, #tpu.memory_space<vmem>>, vector<128x8xbf16>,
    } else {
    }
    return
  }
  func.func @transform_0(%arg0: i32, %arg1: i32, %arg2: i32) -> (i32, i32) {
    %c0_i32 = arith.constant 0 : i32
    return %arg0, %arg2 : i32, i32
  }
  func.func @transform_1(%arg0: i32, %arg1: i32, %arg2: i32) -> (i32, i32) {
    %c0_i32 = arith.constant 0 : i32
    return %arg2, %arg1 : i32, i32
  }
  func.func @transform_2(%arg0: i32, %arg1: i32, %arg2: i32) -> (i32, i32) {
    %c0_i32 = arith.constant 0 : i32
    %c0_i32_0 = arith.constant 0 : i32
    return %c0_i32, %arg1 : i32, i32
  }
  func.func @transform_3(%arg0: i32, %arg1: i32, %arg2: i32) -> (i32, i32) {
    %c0_i32 = arith.constant 0 : i32
    %c0_i32_0 = arith.constant 0 : i32
    return %c0_i32, %arg1 : i32, i32
  }
  func.func @transform_4(%arg0: i32, %arg1: i32, %arg2: i32) -> (i32, i32) {
    %c0_i32 = arith.constant 0 : i32
    return %arg0, %arg1 : i32, i32
  }
}

module attributes {stable_mosaic.version = 11 : i64} {
  func.func @kernel(%arg0: i32, %arg1: i32, %arg2: memref<1x26x8xbf16, #tpu.memory_space<vmem>>, %arg3: memref<1x26x8xbf16, #tpu.memory_space<vmem>>, %arg4: memref<1x26x8xbf16, #tpu.memory_space<vmem>>, %arg5: memref<1x26x8xbf16, #tpu.memory_space<vmem>>, %arg6: memref<9x8x8xbf16, #tpu.memory_space<vmem>>, %arg7: memref<1x8xf32, #tpu.memory_space<vmem>>, %arg8: memref<1x8xf32, #tpu.memory_space<vmem>>, %arg9: memref<1x4x4x8xbf16, #tpu.memory_space<vmem>>) attributes {dimension_semantics = [#tpu.dimension_semantics<parallel>, #tpu.dimension_semantics<parallel>], iteration_bounds = array<i64: 2, 1>, scalar_prefetch = 0 : i64, scratch_operands = 0 : i64, tpu.core_type = #tpu.core_type<tc>, window_params = [{transform_indices = @transform_0, window_bounds = array<i64: 1, 26, 8>}, {transform_indices = @transform_1, window_bounds = array<i64: 1, 26, 8>}, {transform_indices = @transform_2, window_bounds = array<i64: 1, 26, 8>}, {transform_indices = @transform_3, window_bounds = array<i64: 1, 26, 8>}, {transform_indices = @transform_4, window_bounds = array<i64: 9, 8, 8>}, {transform_indices = @transform_5, window_bounds = array<i64: 1, 8>}, {transform_indices = @transform_6, window_bounds = array<i64: 1, 8>}, {transform_indices = @transform_7, window_bounds = array<i64: 1, 4, 4, 8>}]} {
    %c0 = arith.constant 0 : index
    %c0_0 = arith.constant 0 : index
    %c0_1 = arith.constant 0 : index
    %0 = vector.load %arg2[%c0, %c0_0, %c0_1] : memref<1x26x8xbf16, #tpu.memory_space<vmem>>, vector<1x20x8xbf16>
    %1 = vector.shape_cast %0 : vector<1x20x8xbf16> to vector<20x8xbf16>
    %c0_2 = arith.constant 0 : index
    %c0_3 = arith.constant 0 : index
    %c0_4 = arith.constant 0 : index
    %2 = vector.load %arg6[%c0_2, %c0_3, %c0_4] : memref<9x8x8xbf16, #tpu.memory_space<vmem>>, vector<1x8x8xbf16>
    %3 = vector.shape_cast %2 : vector<1x8x8xbf16> to vector<8x8xbf16>
    %cst = arith.constant dense<0.000000e+00> : vector<20x8xf32>
    %4 = tpu.matmul %1, %3, %cst {dimension_numbers = #tpu.dot_dimension_numbers<[1], [0], [0], [1], [0, 0, 1, 1], [], []>} : vector<20x8xbf16>, vector<8x8xbf16>, vector<20x8xf32> -> vector<20x8xf32>
    %c0_5 = arith.constant 0 : index
    %c0_6 = arith.constant 0 : index
    %c0_7 = arith.constant 0 : index
    %5 = vector.load %arg3[%c0_5, %c0_6, %c0_7] : memref<1x26x8xbf16, #tpu.memory_space<vmem>>, vector<1x20x8xbf16>
    %6 = vector.shape_cast %5 : vector<1x20x8xbf16> to vector<20x8xbf16>
    %c1 = arith.constant 1 : index
    %c0_8 = arith.constant 0 : index
    %c0_9 = arith.constant 0 : index
    %7 = vector.load %arg6[%c1, %c0_8, %c0_9] : memref<9x8x8xbf16, #tpu.memory_space<vmem>>, vector<1x8x8xbf16>
    %8 = vector.shape_cast %7 : vector<1x8x8xbf16> to vector<8x8xbf16>
    %cst_10 = arith.constant dense<0.000000e+00> : vector<20x8xf32>
    %9 = tpu.matmul %6, %8, %cst_10 {dimension_numbers = #tpu.dot_dimension_numbers<[1], [0], [0], [1], [0, 0, 1, 1], [], []>} : vector<20x8xbf16>, vector<8x8xbf16>, vector<20x8xf32> -> vector<20x8xf32>
    %10 = arith.addf %4, %9 : vector<20x8xf32>
    %c0_11 = arith.constant 0 : index
    %c1_12 = arith.constant 1 : index
    %c0_13 = arith.constant 0 : index
    %11 = vector.load %arg2[%c0_11, %c1_12, %c0_13] : memref<1x26x8xbf16, #tpu.memory_space<vmem>>, vector<1x20x8xbf16>
    %12 = vector.shape_cast %11 : vector<1x20x8xbf16> to vector<20x8xbf16>
    %c2 = arith.constant 2 : index
    %c0_14 = arith.constant 0 : index
    %c0_15 = arith.constant 0 : index
    %13 = vector.load %arg6[%c2, %c0_14, %c0_15] : memref<9x8x8xbf16, #tpu.memory_space<vmem>>, vector<1x8x8xbf16>
    %14 = vector.shape_cast %13 : vector<1x8x8xbf16> to vector<8x8xbf16>
    %cst_16 = arith.constant dense<0.000000e+00> : vector<20x8xf32>
    %15 = tpu.matmul %12, %14, %cst_16 {dimension_numbers = #tpu.dot_dimension_numbers<[1], [0], [0], [1], [0, 0, 1, 1], [], []>} : vector<20x8xbf16>, vector<8x8xbf16>, vector<20x8xf32> -> vector<20x8xf32>
    %16 = arith.addf %10, %15 : vector<20x8xf32>
    %c0_17 = arith.constant 0 : index
    %c0_18 = arith.constant 0 : index
    %c0_19 = arith.constant 0 : index
    %17 = vector.load %arg4[%c0_17, %c0_18, %c0_19] : memref<1x26x8xbf16, #tpu.memory_space<vmem>>, vector<1x20x8xbf16>
    %18 = vector.shape_cast %17 : vector<1x20x8xbf16> to vector<20x8xbf16>
    %c3 = arith.constant 3 : index
    %c0_20 = arith.constant 0 : index
    %c0_21 = arith.constant 0 : index
    %19 = vector.load %arg6[%c3, %c0_20, %c0_21] : memref<9x8x8xbf16, #tpu.memory_space<vmem>>, vector<1x8x8xbf16>
    %20 = vector.shape_cast %19 : vector<1x8x8xbf16> to vector<8x8xbf16>
    %cst_22 = arith.constant dense<0.000000e+00> : vector<20x8xf32>
    %21 = tpu.matmul %18, %20, %cst_22 {dimension_numbers = #tpu.dot_dimension_numbers<[1], [0], [0], [1], [0, 0, 1, 1], [], []>} : vector<20x8xbf16>, vector<8x8xbf16>, vector<20x8xf32> -> vector<20x8xf32>
    %22 = arith.addf %16, %21 : vector<20x8xf32>
    %c0_23 = arith.constant 0 : index
    %c0_24 = arith.constant 0 : index
    %c0_25 = arith.constant 0 : index
    %23 = vector.load %arg5[%c0_23, %c0_24, %c0_25] : memref<1x26x8xbf16, #tpu.memory_space<vmem>>, vector<1x20x8xbf16>
    %24 = vector.shape_cast %23 : vector<1x20x8xbf16> to vector<20x8xbf16>
    %c4 = arith.constant 4 : index
    %c0_26 = arith.constant 0 : index
    %c0_27 = arith.constant 0 : index
    %25 = vector.load %arg6[%c4, %c0_26, %c0_27] : memref<9x8x8xbf16, #tpu.memory_space<vmem>>, vector<1x8x8xbf16>
    %26 = vector.shape_cast %25 : vector<1x8x8xbf16> to vector<8x8xbf16>
    %cst_28 = arith.constant dense<0.000000e+00> : vector<20x8xf32>
    %27 = tpu.matmul %24, %26, %cst_28 {dimension_numbers = #tpu.dot_dimension_numbers<[1], [0], [0], [1], [0, 0, 1, 1], [], []>} : vector<20x8xbf16>, vector<8x8xbf16>, vector<20x8xf32> -> vector<20x8xf32>
    %28 = arith.addf %22, %27 : vector<20x8xf32>
    %c0_29 = arith.constant 0 : index
    %c1_30 = arith.constant 1 : index
    %c0_31 = arith.constant 0 : index
    %29 = vector.load %arg4[%c0_29, %c1_30, %c0_31] : memref<1x26x8xbf16, #tpu.memory_space<vmem>>, vector<1x20x8xbf16>
    %30 = vector.shape_cast %29 : vector<1x20x8xbf16> to vector<20x8xbf16>
    %c5 = arith.constant 5 : index
    %c0_32 = arith.constant 0 : index
    %c0_33 = arith.constant 0 : index
    %31 = vector.load %arg6[%c5, %c0_32, %c0_33] : memref<9x8x8xbf16, #tpu.memory_space<vmem>>, vector<1x8x8xbf16>
    %32 = vector.shape_cast %31 : vector<1x8x8xbf16> to vector<8x8xbf16>
    %cst_34 = arith.constant dense<0.000000e+00> : vector<20x8xf32>
    %33 = tpu.matmul %30, %32, %cst_34 {dimension_numbers = #tpu.dot_dimension_numbers<[1], [0], [0], [1], [0, 0, 1, 1], [], []>} : vector<20x8xbf16>, vector<8x8xbf16>, vector<20x8xf32> -> vector<20x8xf32>
    %34 = arith.addf %28, %33 : vector<20x8xf32>
    %c0_35 = arith.constant 0 : index
    %c5_36 = arith.constant 5 : index
    %c0_37 = arith.constant 0 : index
    %35 = vector.load %arg2[%c0_35, %c5_36, %c0_37] : memref<1x26x8xbf16, #tpu.memory_space<vmem>>, vector<1x20x8xbf16>
    %36 = vector.shape_cast %35 : vector<1x20x8xbf16> to vector<20x8xbf16>
    %c6 = arith.constant 6 : index
    %c0_38 = arith.constant 0 : index
    %c0_39 = arith.constant 0 : index
    %37 = vector.load %arg6[%c6, %c0_38, %c0_39] : memref<9x8x8xbf16, #tpu.memory_space<vmem>>, vector<1x8x8xbf16>
    %38 = vector.shape_cast %37 : vector<1x8x8xbf16> to vector<8x8xbf16>
    %cst_40 = arith.constant dense<0.000000e+00> : vector<20x8xf32>
    %39 = tpu.matmul %36, %38, %cst_40 {dimension_numbers = #tpu.dot_dimension_numbers<[1], [0], [0], [1], [0, 0, 1, 1], [], []>} : vector<20x8xbf16>, vector<8x8xbf16>, vector<20x8xf32> -> vector<20x8xf32>
    %40 = arith.addf %34, %39 : vector<20x8xf32>
    %c0_41 = arith.constant 0 : index
    %c5_42 = arith.constant 5 : index
    %c0_43 = arith.constant 0 : index
    %41 = vector.load %arg3[%c0_41, %c5_42, %c0_43] : memref<1x26x8xbf16, #tpu.memory_space<vmem>>, vector<1x20x8xbf16>
    %42 = vector.shape_cast %41 : vector<1x20x8xbf16> to vector<20x8xbf16>
    %c7 = arith.constant 7 : index
    %c0_44 = arith.constant 0 : index
    %c0_45 = arith.constant 0 : index
    %43 = vector.load %arg6[%c7, %c0_44, %c0_45] : memref<9x8x8xbf16, #tpu.memory_space<vmem>>, vector<1x8x8xbf16>
    %44 = vector.shape_cast %43 : vector<1x8x8xbf16> to vector<8x8xbf16>
    %cst_46 = arith.constant dense<0.000000e+00> : vector<20x8xf32>
    %45 = tpu.matmul %42, %44, %cst_46 {dimension_numbers = #tpu.dot_dimension_numbers<[1], [0], [0], [1], [0, 0, 1, 1], [], []>} : vector<20x8xbf16>, vector<8x8xbf16>, vector<20x8xf32> -> vector<20x8xf32>
    %46 = arith.addf %40, %45 : vector<20x8xf32>
    %c0_47 = arith.constant 0 : index
    %c6_48 = arith.constant 6 : index
    %c0_49 = arith.constant 0 : index
    %47 = vector.load %arg2[%c0_47, %c6_48, %c0_49] : memref<1x26x8xbf16, #tpu.memory_space<vmem>>, vector<1x20x8xbf16>
    %48 = vector.shape_cast %47 : vector<1x20x8xbf16> to vector<20x8xbf16>
    %c8 = arith.constant 8 : index
    %c0_50 = arith.constant 0 : index
    %c0_51 = arith.constant 0 : index
    %49 = vector.load %arg6[%c8, %c0_50, %c0_51] : memref<9x8x8xbf16, #tpu.memory_space<vmem>>, vector<1x8x8xbf16>
    %50 = vector.shape_cast %49 : vector<1x8x8xbf16> to vector<8x8xbf16>
    %cst_52 = arith.constant dense<0.000000e+00> : vector<20x8xf32>
    %51 = tpu.matmul %48, %50, %cst_52 {dimension_numbers = #tpu.dot_dimension_numbers<[1], [0], [0], [1], [0, 0, 1, 1], [], []>} : vector<20x8xbf16>, vector<8x8xbf16>, vector<20x8xf32> -> vector<20x8xf32>
    %52 = arith.addf %46, %51 : vector<20x8xf32>
    %c0_53 = arith.constant 0 : index
    %c0_54 = arith.constant 0 : index
    %53 = vector.load %arg7[%c0_53, %c0_54] : memref<1x8xf32, #tpu.memory_space<vmem>>, vector<1x8xf32>
    %54 = vector.broadcast %53 : vector<1x8xf32> to vector<20x8xf32>
    %55 = arith.mulf %52, %54 : vector<20x8xf32>
    %c0_55 = arith.constant 0 : index
    %c0_56 = arith.constant 0 : index
    %56 = vector.load %arg8[%c0_55, %c0_56] : memref<1x8xf32, #tpu.memory_space<vmem>>, vector<1x8xf32>
    %57 = vector.broadcast %56 : vector<1x8xf32> to vector<20x8xf32>
    %58 = arith.addf %55, %57 : vector<20x8xf32>
    %cst_57 = arith.constant 0.000000e+00 : f32
    %59 = vector.broadcast %cst_57 : f32 to vector<20x8xf32>
    %60 = arith.maximumf %58, %59 : vector<20x8xf32>
    %61 = vector.extract_strided_slice %60 {offsets = [0, 0], sizes = [4, 8], strides = [1, 1]} : vector<20x8xf32> to vector<4x8xf32>
    %62 = arith.truncf %61 : vector<4x8xf32> to vector<4x8xbf16>
    %c0_58 = arith.constant 0 : index
    %c0_59 = arith.constant 0 : index
    %c0_60 = arith.constant 0 : index
    %c0_61 = arith.constant 0 : index
    %63 = vector.load %arg9[%c0_58, %c0_59, %c0_60, %c0_61] : memref<1x4x4x8xbf16, #tpu.memory_space<vmem>>, vector<1x1x4x8xbf16>
    %64 = vector.shape_cast %63 : vector<1x1x4x8xbf16> to vector<4x8xbf16>
    %65 = vector.shape_cast %62 : vector<4x8xbf16> to vector<1x1x4x8xbf16>
    tpu.vector_store %arg9[%c0_58, %c0_59, %c0_60, %c0_61], %65 {strides = array<i32>} : memref<1x4x4x8xbf16, #tpu.memory_space<vmem>>, vector<1x1x4x8xbf16>,
    %66 = vector.extract_strided_slice %60 {offsets = [5, 0], sizes = [4, 8], strides = [1, 1]} : vector<20x8xf32> to vector<4x8xf32>
    %67 = arith.truncf %66 : vector<4x8xf32> to vector<4x8xbf16>
    %c0_62 = arith.constant 0 : index
    %c1_63 = arith.constant 1 : index
    %c0_64 = arith.constant 0 : index
    %c0_65 = arith.constant 0 : index
    %68 = vector.load %arg9[%c0_62, %c1_63, %c0_64, %c0_65] : memref<1x4x4x8xbf16, #tpu.memory_space<vmem>>, vector<1x1x4x8xbf16>
    %69 = vector.shape_cast %68 : vector<1x1x4x8xbf16> to vector<4x8xbf16>
    %70 = vector.shape_cast %67 : vector<4x8xbf16> to vector<1x1x4x8xbf16>
    tpu.vector_store %arg9[%c0_62, %c1_63, %c0_64, %c0_65], %70 {strides = array<i32>} : memref<1x4x4x8xbf16, #tpu.memory_space<vmem>>, vector<1x1x4x8xbf16>,
    %71 = vector.extract_strided_slice %60 {offsets = [10, 0], sizes = [4, 8], strides = [1, 1]} : vector<20x8xf32> to vector<4x8xf32>
    %72 = arith.truncf %71 : vector<4x8xf32> to vector<4x8xbf16>
    %c0_66 = arith.constant 0 : index
    %c2_67 = arith.constant 2 : index
    %c0_68 = arith.constant 0 : index
    %c0_69 = arith.constant 0 : index
    %73 = vector.load %arg9[%c0_66, %c2_67, %c0_68, %c0_69] : memref<1x4x4x8xbf16, #tpu.memory_space<vmem>>, vector<1x1x4x8xbf16>
    %74 = vector.shape_cast %73 : vector<1x1x4x8xbf16> to vector<4x8xbf16>
    %75 = vector.shape_cast %72 : vector<4x8xbf16> to vector<1x1x4x8xbf16>
    tpu.vector_store %arg9[%c0_66, %c2_67, %c0_68, %c0_69], %75 {strides = array<i32>} : memref<1x4x4x8xbf16, #tpu.memory_space<vmem>>, vector<1x1x4x8xbf16>,
    %76 = vector.extract_strided_slice %60 {offsets = [15, 0], sizes = [4, 8], strides = [1, 1]} : vector<20x8xf32> to vector<4x8xf32>
    %77 = arith.truncf %76 : vector<4x8xf32> to vector<4x8xbf16>
    %c0_70 = arith.constant 0 : index
    %c3_71 = arith.constant 3 : index
    %c0_72 = arith.constant 0 : index
    %c0_73 = arith.constant 0 : index
    %78 = vector.load %arg9[%c0_70, %c3_71, %c0_72, %c0_73] : memref<1x4x4x8xbf16, #tpu.memory_space<vmem>>, vector<1x1x4x8xbf16>
    %79 = vector.shape_cast %78 : vector<1x1x4x8xbf16> to vector<4x8xbf16>
    %80 = vector.shape_cast %77 : vector<4x8xbf16> to vector<1x1x4x8xbf16>
    tpu.vector_store %arg9[%c0_70, %c3_71, %c0_72, %c0_73], %80 {strides = array<i32>} : memref<1x4x4x8xbf16, #tpu.memory_space<vmem>>, vector<1x1x4x8xbf16>,
    return
  }
  func.func @transform_0(%arg0: i32, %arg1: i32) -> (i32, i32, i32) {
    %c0_i32 = arith.constant 0 : i32
    %c0_i32_0 = arith.constant 0 : i32
    %c0_i32_1 = arith.constant 0 : i32
    return %arg0, %c0_i32, %c0_i32_0 : i32, i32, i32
  }
  func.func @transform_1(%arg0: i32, %arg1: i32) -> (i32, i32, i32) {
    %c0_i32 = arith.constant 0 : i32
    %c0_i32_0 = arith.constant 0 : i32
    %c0_i32_1 = arith.constant 0 : i32
    return %arg0, %c0_i32, %c0_i32_0 : i32, i32, i32
  }
  func.func @transform_2(%arg0: i32, %arg1: i32) -> (i32, i32, i32) {
    %c0_i32 = arith.constant 0 : i32
    %c0_i32_0 = arith.constant 0 : i32
    %c0_i32_1 = arith.constant 0 : i32
    return %arg0, %c0_i32, %c0_i32_0 : i32, i32, i32
  }
  func.func @transform_3(%arg0: i32, %arg1: i32) -> (i32, i32, i32) {
    %c0_i32 = arith.constant 0 : i32
    %c0_i32_0 = arith.constant 0 : i32
    %c0_i32_1 = arith.constant 0 : i32
    return %arg0, %c0_i32, %c0_i32_0 : i32, i32, i32
  }
  func.func @transform_4(%arg0: i32, %arg1: i32) -> (i32, i32, i32) {
    %c0_i32 = arith.constant 0 : i32
    %c0_i32_0 = arith.constant 0 : i32
    %c0_i32_1 = arith.constant 0 : i32
    return %c0_i32, %c0_i32_0, %arg1 : i32, i32, i32
  }
  func.func @transform_5(%arg0: i32, %arg1: i32) -> (i32, i32) {
    %c0_i32 = arith.constant 0 : i32
    %c0_i32_0 = arith.constant 0 : i32
    return %c0_i32, %arg1 : i32, i32
  }
  func.func @transform_6(%arg0: i32, %arg1: i32) -> (i32, i32) {
    %c0_i32 = arith.constant 0 : i32
    %c0_i32_0 = arith.constant 0 : i32
    return %c0_i32, %arg1 : i32, i32
  }
  func.func @transform_7(%arg0: i32, %arg1: i32) -> (i32, i32, i32, i32) {
    %c0_i32 = arith.constant 0 : i32
    %c0_i32_0 = arith.constant 0 : i32
    %c0_i32_1 = arith.constant 0 : i32
    return %arg0, %c0_i32, %c0_i32_0, %arg1 : i32, i32, i32, i32
  }
}

module attributes {stable_mosaic.version = 11 : i64} {
  func.func @_gemm_bn_kernel(%arg0: i32, %arg1: i32, %arg2: i32, %arg3: memref<32x16xbf16, #tpu.memory_space<vmem>>, %arg4: memref<16x32xbf16, #tpu.memory_space<vmem>>, %arg5: memref<1x32xf32, #tpu.memory_space<vmem>>, %arg6: memref<1x32xf32, #tpu.memory_space<vmem>>, %arg7: memref<32x32xbf16, #tpu.memory_space<vmem>>, %arg8: memref<32x32xf32, #tpu.memory_space<vmem>>) attributes {dimension_semantics = [#tpu.dimension_semantics<parallel>, #tpu.dimension_semantics<parallel>, #tpu.dimension_semantics<arbitrary>], iteration_bounds = array<i64: 1, 1, 1>, scalar_prefetch = 0 : i64, scratch_operands = 1 : i64, tpu.core_type = #tpu.core_type<tc>, window_params = [{transform_indices = @transform_0, window_bounds = array<i64: 32, 16>}, {transform_indices = @transform_1, window_bounds = array<i64: 16, 32>}, {transform_indices = @transform_2, window_bounds = array<i64: 1, 32>}, {transform_indices = @transform_3, window_bounds = array<i64: 1, 32>}, {transform_indices = @transform_4, window_bounds = array<i64: 32, 32>}]} {
    %c0_i32 = arith.constant 0 : i32
    %0 = arith.cmpi eq, %arg2, %c0_i32 : i32
    %1 = arith.extui %0 : i1 to i32
    %c0_i32_0 = arith.constant 0 : i32
    %2 = arith.cmpi ne, %1, %c0_i32_0 : i32
    scf.if %2 {
      %cst_10 = arith.constant 0.000000e+00 : f32
      %12 = vector.broadcast %cst_10 : f32 to vector<32x32xf32>
      %c0_11 = arith.constant 0 : index
      %c0_12 = arith.constant 0 : index
      %13 = vector.load %arg8[%c0_11, %c0_12] : memref<32x32xf32, #tpu.memory_space<vmem>>, vector<32x32xf32>
      tpu.vector_store %arg8[%c0_11, %c0_12], %12 {strides = array<i32>} : memref<32x32xf32, #tpu.memory_space<vmem>>, vector<32x32xf32>,
    } else {
    }
    %c0 = arith.constant 0 : index
    %c0_1 = arith.constant 0 : index
    %3 = vector.load %arg8[%c0, %c0_1] : memref<32x32xf32, #tpu.memory_space<vmem>>, vector<32x32xf32>
    %c0_2 = arith.constant 0 : index
    %c0_3 = arith.constant 0 : index
    %4 = vector.load %arg3[%c0_2, %c0_3] : memref<32x16xbf16, #tpu.memory_space<vmem>>, vector<32x16xbf16>
    %c0_4 = arith.constant 0 : index
    %c0_5 = arith.constant 0 : index
    %5 = vector.load %arg4[%c0_4, %c0_5] : memref<16x32xbf16, #tpu.memory_space<vmem>>, vector<16x32xbf16>
    %cst = arith.constant dense<0.000000e+00> : vector<32x32xf32>
    %6 = tpu.matmul %4, %5, %cst {dimension_numbers = #tpu.dot_dimension_numbers<[1], [0], [0], [1], [0, 0, 1, 1], [], []>} : vector<32x16xbf16>, vector<16x32xbf16>, vector<32x32xf32> -> vector<32x32xf32>
    %7 = arith.addf %3, %6 : vector<32x32xf32>
    %c0_6 = arith.constant 0 : index
    %c0_7 = arith.constant 0 : index
    %8 = vector.load %arg8[%c0_6, %c0_7] : memref<32x32xf32, #tpu.memory_space<vmem>>, vector<32x32xf32>
    tpu.vector_store %arg8[%c0_6, %c0_7], %7 {strides = array<i32>} : memref<32x32xf32, #tpu.memory_space<vmem>>, vector<32x32xf32>,
    %c0_i32_8 = arith.constant 0 : i32
    %9 = arith.cmpi eq, %arg2, %c0_i32_8 : i32
    %10 = arith.extui %9 : i1 to i32
    %c0_i32_9 = arith.constant 0 : i32
    %11 = arith.cmpi ne, %10, %c0_i32_9 : i32
    scf.if %11 {
      %c0_10 = arith.constant 0 : index
      %c0_11 = arith.constant 0 : index
      %12 = vector.load %arg8[%c0_10, %c0_11] : memref<32x32xf32, #tpu.memory_space<vmem>>, vector<32x32xf32>
      %c0_12 = arith.constant 0 : index
      %c0_13 = arith.constant 0 : index
      %13 = vector.load %arg5[%c0_12, %c0_13] : memref<1x32xf32, #tpu.memory_space<vmem>>, vector<1x32xf32>
      %14 = vector.broadcast %13 : vector<1x32xf32> to vector<32x32xf32>
      %15 = arith.mulf %12, %14 : vector<32x32xf32>
      %c0_14 = arith.constant 0 : index
      %c0_15 = arith.constant 0 : index
      %16 = vector.load %arg6[%c0_14, %c0_15] : memref<1x32xf32, #tpu.memory_space<vmem>>, vector<1x32xf32>
      %17 = vector.broadcast %16 : vector<1x32xf32> to vector<32x32xf32>
      %18 = arith.addf %15, %17 : vector<32x32xf32>
      %19 = arith.truncf %18 : vector<32x32xf32> to vector<32x32xbf16>
      %c0_16 = arith.constant 0 : index
      %c0_17 = arith.constant 0 : index
      %20 = vector.load %arg7[%c0_16, %c0_17] : memref<32x32xbf16, #tpu.memory_space<vmem>>, vector<32x32xbf16>
      tpu.vector_store %arg7[%c0_16, %c0_17], %19 {strides = array<i32>} : memref<32x32xbf16, #tpu.memory_space<vmem>>, vector<32x32xbf16>,
    } else {
    }
    return
  }
  func.func @transform_0(%arg0: i32, %arg1: i32, %arg2: i32) -> (i32, i32) {
    %c0_i32 = arith.constant 0 : i32
    return %arg0, %arg2 : i32, i32
  }
  func.func @transform_1(%arg0: i32, %arg1: i32, %arg2: i32) -> (i32, i32) {
    %c0_i32 = arith.constant 0 : i32
    return %arg2, %arg1 : i32, i32
  }
  func.func @transform_2(%arg0: i32, %arg1: i32, %arg2: i32) -> (i32, i32) {
    %c0_i32 = arith.constant 0 : i32
    %c0_i32_0 = arith.constant 0 : i32
    return %c0_i32, %arg1 : i32, i32
  }
  func.func @transform_3(%arg0: i32, %arg1: i32, %arg2: i32) -> (i32, i32) {
    %c0_i32 = arith.constant 0 : i32
    %c0_i32_0 = arith.constant 0 : i32
    return %c0_i32, %arg1 : i32, i32
  }
  func.func @transform_4(%arg0: i32, %arg1: i32, %arg2: i32) -> (i32, i32) {
    %c0_i32 = arith.constant 0 : i32
    return %arg0, %arg1 : i32, i32
  }
}

module attributes {stable_mosaic.version = 11 : i64} {
  func.func @_gemm_bn_res_relu_kernel(%arg0: i32, %arg1: i32, %arg2: i32, %arg3: memref<32x8xbf16, #tpu.memory_space<vmem>>, %arg4: memref<8x32xbf16, #tpu.memory_space<vmem>>, %arg5: memref<1x32xf32, #tpu.memory_space<vmem>>, %arg6: memref<1x32xf32, #tpu.memory_space<vmem>>, %arg7: memref<32x32xbf16, #tpu.memory_space<vmem>>, %arg8: memref<32x32xbf16, #tpu.memory_space<vmem>>, %arg9: memref<32x32xf32, #tpu.memory_space<vmem>>) attributes {dimension_semantics = [#tpu.dimension_semantics<parallel>, #tpu.dimension_semantics<parallel>, #tpu.dimension_semantics<arbitrary>], iteration_bounds = array<i64: 1, 1, 1>, scalar_prefetch = 0 : i64, scratch_operands = 1 : i64, tpu.core_type = #tpu.core_type<tc>, window_params = [{transform_indices = @transform_0, window_bounds = array<i64: 32, 8>}, {transform_indices = @transform_1, window_bounds = array<i64: 8, 32>}, {transform_indices = @transform_2, window_bounds = array<i64: 1, 32>}, {transform_indices = @transform_3, window_bounds = array<i64: 1, 32>}, {transform_indices = @transform_4, window_bounds = array<i64: 32, 32>}, {transform_indices = @transform_5, window_bounds = array<i64: 32, 32>}]} {
    %c0_i32 = arith.constant 0 : i32
    %0 = arith.cmpi eq, %arg2, %c0_i32 : i32
    %1 = arith.extui %0 : i1 to i32
    %c0_i32_0 = arith.constant 0 : i32
    %2 = arith.cmpi ne, %1, %c0_i32_0 : i32
    scf.if %2 {
      %cst_10 = arith.constant 0.000000e+00 : f32
      %12 = vector.broadcast %cst_10 : f32 to vector<32x32xf32>
      %c0_11 = arith.constant 0 : index
      %c0_12 = arith.constant 0 : index
      %13 = vector.load %arg9[%c0_11, %c0_12] : memref<32x32xf32, #tpu.memory_space<vmem>>, vector<32x32xf32>
      tpu.vector_store %arg9[%c0_11, %c0_12], %12 {strides = array<i32>} : memref<32x32xf32, #tpu.memory_space<vmem>>, vector<32x32xf32>,
    } else {
    }
    %c0 = arith.constant 0 : index
    %c0_1 = arith.constant 0 : index
    %3 = vector.load %arg9[%c0, %c0_1] : memref<32x32xf32, #tpu.memory_space<vmem>>, vector<32x32xf32>
    %c0_2 = arith.constant 0 : index
    %c0_3 = arith.constant 0 : index
    %4 = vector.load %arg3[%c0_2, %c0_3] : memref<32x8xbf16, #tpu.memory_space<vmem>>, vector<32x8xbf16>
    %c0_4 = arith.constant 0 : index
    %c0_5 = arith.constant 0 : index
    %5 = vector.load %arg4[%c0_4, %c0_5] : memref<8x32xbf16, #tpu.memory_space<vmem>>, vector<8x32xbf16>
    %cst = arith.constant dense<0.000000e+00> : vector<32x32xf32>
    %6 = tpu.matmul %4, %5, %cst {dimension_numbers = #tpu.dot_dimension_numbers<[1], [0], [0], [1], [0, 0, 1, 1], [], []>} : vector<32x8xbf16>, vector<8x32xbf16>, vector<32x32xf32> -> vector<32x32xf32>
    %7 = arith.addf %3, %6 : vector<32x32xf32>
    %c0_6 = arith.constant 0 : index
    %c0_7 = arith.constant 0 : index
    %8 = vector.load %arg9[%c0_6, %c0_7] : memref<32x32xf32, #tpu.memory_space<vmem>>, vector<32x32xf32>
    tpu.vector_store %arg9[%c0_6, %c0_7], %7 {strides = array<i32>} : memref<32x32xf32, #tpu.memory_space<vmem>>, vector<32x32xf32>,
    %c0_i32_8 = arith.constant 0 : i32
    %9 = arith.cmpi eq, %arg2, %c0_i32_8 : i32
    %10 = arith.extui %9 : i1 to i32
    %c0_i32_9 = arith.constant 0 : i32
    %11 = arith.cmpi ne, %10, %c0_i32_9 : i32
    scf.if %11 {
      %c0_10 = arith.constant 0 : index
      %c0_11 = arith.constant 0 : index
      %12 = vector.load %arg9[%c0_10, %c0_11] : memref<32x32xf32, #tpu.memory_space<vmem>>, vector<32x32xf32>
      %c0_12 = arith.constant 0 : index
      %c0_13 = arith.constant 0 : index
      %13 = vector.load %arg5[%c0_12, %c0_13] : memref<1x32xf32, #tpu.memory_space<vmem>>, vector<1x32xf32>
      %14 = vector.broadcast %13 : vector<1x32xf32> to vector<32x32xf32>
      %15 = arith.mulf %12, %14 : vector<32x32xf32>
      %c0_14 = arith.constant 0 : index
      %c0_15 = arith.constant 0 : index
      %16 = vector.load %arg6[%c0_14, %c0_15] : memref<1x32xf32, #tpu.memory_space<vmem>>, vector<1x32xf32>
      %17 = vector.broadcast %16 : vector<1x32xf32> to vector<32x32xf32>
      %18 = arith.addf %15, %17 : vector<32x32xf32>
      %c0_16 = arith.constant 0 : index
      %c0_17 = arith.constant 0 : index
      %19 = vector.load %arg7[%c0_16, %c0_17] : memref<32x32xbf16, #tpu.memory_space<vmem>>, vector<32x32xbf16>
      %20 = arith.extf %19 : vector<32x32xbf16> to vector<32x32xf32>
      %21 = arith.addf %18, %20 : vector<32x32xf32>
      %cst_18 = arith.constant 0.000000e+00 : f32
      %22 = vector.broadcast %cst_18 : f32 to vector<32x32xf32>
      %23 = arith.maximumf %21, %22 : vector<32x32xf32>
      %24 = arith.truncf %23 : vector<32x32xf32> to vector<32x32xbf16>
      %c0_19 = arith.constant 0 : index
      %c0_20 = arith.constant 0 : index
      %25 = vector.load %arg8[%c0_19, %c0_20] : memref<32x32xbf16, #tpu.memory_space<vmem>>, vector<32x32xbf16>
      tpu.vector_store %arg8[%c0_19, %c0_20], %24 {strides = array<i32>} : memref<32x32xbf16, #tpu.memory_space<vmem>>, vector<32x32xbf16>,
    } else {
    }
    return
  }
  func.func @transform_0(%arg0: i32, %arg1: i32, %arg2: i32) -> (i32, i32) {
    %c0_i32 = arith.constant 0 : i32
    return %arg0, %arg2 : i32, i32
  }
  func.func @transform_1(%arg0: i32, %arg1: i32, %arg2: i32) -> (i32, i32) {
    %c0_i32 = arith.constant 0 : i32
    return %arg2, %arg1 : i32, i32
  }
  func.func @transform_2(%arg0: i32, %arg1: i32, %arg2: i32) -> (i32, i32) {
    %c0_i32 = arith.constant 0 : i32
    %c0_i32_0 = arith.constant 0 : i32
    return %c0_i32, %arg1 : i32, i32
  }
  func.func @transform_3(%arg0: i32, %arg1: i32, %arg2: i32) -> (i32, i32) {
    %c0_i32 = arith.constant 0 : i32
    %c0_i32_0 = arith.constant 0 : i32
    return %c0_i32, %arg1 : i32, i32
  }
  func.func @transform_4(%arg0: i32, %arg1: i32, %arg2: i32) -> (i32, i32) {
    %c0_i32 = arith.constant 0 : i32
    return %arg0, %arg1 : i32, i32
  }
  func.func @transform_5(%arg0: i32, %arg1: i32, %arg2: i32) -> (i32, i32) {
    %c0_i32 = arith.constant 0 : i32
    return %arg0, %arg1 : i32, i32
  }
}

module attributes {stable_mosaic.version = 11 : i64} {
  func.func @_gemm_bn_kernel(%arg0: i32, %arg1: i32, %arg2: i32, %arg3: memref<32x32xbf16, #tpu.memory_space<vmem>>, %arg4: memref<32x8xbf16, #tpu.memory_space<vmem>>, %arg5: memref<1x8xf32, #tpu.memory_space<vmem>>, %arg6: memref<1x8xf32, #tpu.memory_space<vmem>>, %arg7: memref<32x8xbf16, #tpu.memory_space<vmem>>, %arg8: memref<32x8xf32, #tpu.memory_space<vmem>>) attributes {dimension_semantics = [#tpu.dimension_semantics<parallel>, #tpu.dimension_semantics<parallel>, #tpu.dimension_semantics<arbitrary>], iteration_bounds = array<i64: 1, 1, 1>, scalar_prefetch = 0 : i64, scratch_operands = 1 : i64, tpu.core_type = #tpu.core_type<tc>, window_params = [{transform_indices = @transform_0, window_bounds = array<i64: 32, 32>}, {transform_indices = @transform_1, window_bounds = array<i64: 32, 8>}, {transform_indices = @transform_2, window_bounds = array<i64: 1, 8>}, {transform_indices = @transform_3, window_bounds = array<i64: 1, 8>}, {transform_indices = @transform_4, window_bounds = array<i64: 32, 8>}]} {
    %c0_i32 = arith.constant 0 : i32
    %0 = arith.cmpi eq, %arg2, %c0_i32 : i32
    %1 = arith.extui %0 : i1 to i32
    %c0_i32_0 = arith.constant 0 : i32
    %2 = arith.cmpi ne, %1, %c0_i32_0 : i32
    scf.if %2 {
      %cst_10 = arith.constant 0.000000e+00 : f32
      %12 = vector.broadcast %cst_10 : f32 to vector<32x8xf32>
      %c0_11 = arith.constant 0 : index
      %c0_12 = arith.constant 0 : index
      %13 = vector.load %arg8[%c0_11, %c0_12] : memref<32x8xf32, #tpu.memory_space<vmem>>, vector<32x8xf32>
      tpu.vector_store %arg8[%c0_11, %c0_12], %12 {strides = array<i32>} : memref<32x8xf32, #tpu.memory_space<vmem>>, vector<32x8xf32>,
    } else {
    }
    %c0 = arith.constant 0 : index
    %c0_1 = arith.constant 0 : index
    %3 = vector.load %arg8[%c0, %c0_1] : memref<32x8xf32, #tpu.memory_space<vmem>>, vector<32x8xf32>
    %c0_2 = arith.constant 0 : index
    %c0_3 = arith.constant 0 : index
    %4 = vector.load %arg3[%c0_2, %c0_3] : memref<32x32xbf16, #tpu.memory_space<vmem>>, vector<32x32xbf16>
    %c0_4 = arith.constant 0 : index
    %c0_5 = arith.constant 0 : index
    %5 = vector.load %arg4[%c0_4, %c0_5] : memref<32x8xbf16, #tpu.memory_space<vmem>>, vector<32x8xbf16>
    %cst = arith.constant dense<0.000000e+00> : vector<32x8xf32>
    %6 = tpu.matmul %4, %5, %cst {dimension_numbers = #tpu.dot_dimension_numbers<[1], [0], [0], [1], [0, 0, 1, 1], [], []>} : vector<32x32xbf16>, vector<32x8xbf16>, vector<32x8xf32> -> vector<32x8xf32>
    %7 = arith.addf %3, %6 : vector<32x8xf32>
    %c0_6 = arith.constant 0 : index
    %c0_7 = arith.constant 0 : index
    %8 = vector.load %arg8[%c0_6, %c0_7] : memref<32x8xf32, #tpu.memory_space<vmem>>, vector<32x8xf32>
    tpu.vector_store %arg8[%c0_6, %c0_7], %7 {strides = array<i32>} : memref<32x8xf32, #tpu.memory_space<vmem>>, vector<32x8xf32>,
    %c0_i32_8 = arith.constant 0 : i32
    %9 = arith.cmpi eq, %arg2, %c0_i32_8 : i32
    %10 = arith.extui %9 : i1 to i32
    %c0_i32_9 = arith.constant 0 : i32
    %11 = arith.cmpi ne, %10, %c0_i32_9 : i32
    scf.if %11 {
      %c0_10 = arith.constant 0 : index
      %c0_11 = arith.constant 0 : index
      %12 = vector.load %arg8[%c0_10, %c0_11] : memref<32x8xf32, #tpu.memory_space<vmem>>, vector<32x8xf32>
      %c0_12 = arith.constant 0 : index
      %c0_13 = arith.constant 0 : index
      %13 = vector.load %arg5[%c0_12, %c0_13] : memref<1x8xf32, #tpu.memory_space<vmem>>, vector<1x8xf32>
      %14 = vector.broadcast %13 : vector<1x8xf32> to vector<32x8xf32>
      %15 = arith.mulf %12, %14 : vector<32x8xf32>
      %c0_14 = arith.constant 0 : index
      %c0_15 = arith.constant 0 : index
      %16 = vector.load %arg6[%c0_14, %c0_15] : memref<1x8xf32, #tpu.memory_space<vmem>>, vector<1x8xf32>
      %17 = vector.broadcast %16 : vector<1x8xf32> to vector<32x8xf32>
      %18 = arith.addf %15, %17 : vector<32x8xf32>
      %cst_16 = arith.constant 0.000000e+00 : f32
      %19 = vector.broadcast %cst_16 : f32 to vector<32x8xf32>
      %20 = arith.maximumf %18, %19 : vector<32x8xf32>
      %21 = arith.truncf %20 : vector<32x8xf32> to vector<32x8xbf16>
      %c0_17 = arith.constant 0 : index
      %c0_18 = arith.constant 0 : index
      %22 = vector.load %arg7[%c0_17, %c0_18] : memref<32x8xbf16, #tpu.memory_space<vmem>>, vector<32x8xbf16>
      tpu.vector_store %arg7[%c0_17, %c0_18], %21 {strides = array<i32>} : memref<32x8xbf16, #tpu.memory_space<vmem>>, vector<32x8xbf16>,
    } else {
    }
    return
  }
  func.func @transform_0(%arg0: i32, %arg1: i32, %arg2: i32) -> (i32, i32) {
    %c0_i32 = arith.constant 0 : i32
    return %arg0, %arg2 : i32, i32
  }
  func.func @transform_1(%arg0: i32, %arg1: i32, %arg2: i32) -> (i32, i32) {
    %c0_i32 = arith.constant 0 : i32
    return %arg2, %arg1 : i32, i32
  }
  func.func @transform_2(%arg0: i32, %arg1: i32, %arg2: i32) -> (i32, i32) {
    %c0_i32 = arith.constant 0 : i32
    %c0_i32_0 = arith.constant 0 : i32
    return %c0_i32, %arg1 : i32, i32
  }
  func.func @transform_3(%arg0: i32, %arg1: i32, %arg2: i32) -> (i32, i32) {
    %c0_i32 = arith.constant 0 : i32
    %c0_i32_0 = arith.constant 0 : i32
    return %c0_i32, %arg1 : i32, i32
  }
  func.func @transform_4(%arg0: i32, %arg1: i32, %arg2: i32) -> (i32, i32) {
    %c0_i32 = arith.constant 0 : i32
    return %arg0, %arg1 : i32, i32
  }
}

module attributes {stable_mosaic.version = 11 : i64} {
  func.func @_gemm_bn_res_relu_pool_kernel(%arg0: i32, %arg1: i32, %arg2: i32, %arg3: memref<1x16x8xbf16, #tpu.memory_space<vmem>>, %arg4: memref<8x32xbf16, #tpu.memory_space<vmem>>, %arg5: memref<1x32xf32, #tpu.memory_space<vmem>>, %arg6: memref<1x32xf32, #tpu.memory_space<vmem>>, %arg7: memref<1x16x32xbf16, #tpu.memory_space<vmem>>, %arg8: memref<1x1x32xf32, #tpu.memory_space<vmem>>, %arg9: memref<16x32xf32, #tpu.memory_space<vmem>>) attributes {dimension_semantics = [#tpu.dimension_semantics<parallel>, #tpu.dimension_semantics<parallel>, #tpu.dimension_semantics<arbitrary>], iteration_bounds = array<i64: 2, 1, 1>, scalar_prefetch = 0 : i64, scratch_operands = 1 : i64, tpu.core_type = #tpu.core_type<tc>, window_params = [{transform_indices = @transform_0, window_bounds = array<i64: 1, 16, 8>}, {transform_indices = @transform_1, window_bounds = array<i64: 8, 32>}, {transform_indices = @transform_2, window_bounds = array<i64: 1, 32>}, {transform_indices = @transform_3, window_bounds = array<i64: 1, 32>}, {transform_indices = @transform_4, window_bounds = array<i64: 1, 16, 32>}, {transform_indices = @transform_5, window_bounds = array<i64: 1, 1, 32>}]} {
    %c0_i32 = arith.constant 0 : i32
    %0 = arith.cmpi eq, %arg2, %c0_i32 : i32
    %1 = arith.extui %0 : i1 to i32
    %c0_i32_0 = arith.constant 0 : i32
    %2 = arith.cmpi ne, %1, %c0_i32_0 : i32
    scf.if %2 {
      %cst_11 = arith.constant 0.000000e+00 : f32
      %13 = vector.broadcast %cst_11 : f32 to vector<16x32xf32>
      %c0_12 = arith.constant 0 : index
      %c0_13 = arith.constant 0 : index
      %14 = vector.load %arg9[%c0_12, %c0_13] : memref<16x32xf32, #tpu.memory_space<vmem>>, vector<16x32xf32>
      tpu.vector_store %arg9[%c0_12, %c0_13], %13 {strides = array<i32>} : memref<16x32xf32, #tpu.memory_space<vmem>>, vector<16x32xf32>,
    } else {
    }
    %c0 = arith.constant 0 : index
    %c0_1 = arith.constant 0 : index
    %3 = vector.load %arg9[%c0, %c0_1] : memref<16x32xf32, #tpu.memory_space<vmem>>, vector<16x32xf32>
    %c0_2 = arith.constant 0 : index
    %c0_3 = arith.constant 0 : index
    %c0_4 = arith.constant 0 : index
    %4 = vector.load %arg3[%c0_2, %c0_3, %c0_4] : memref<1x16x8xbf16, #tpu.memory_space<vmem>>, vector<1x16x8xbf16>
    %5 = vector.shape_cast %4 : vector<1x16x8xbf16> to vector<16x8xbf16>
    %c0_5 = arith.constant 0 : index
    %c0_6 = arith.constant 0 : index
    %6 = vector.load %arg4[%c0_5, %c0_6] : memref<8x32xbf16, #tpu.memory_space<vmem>>, vector<8x32xbf16>
    %cst = arith.constant dense<0.000000e+00> : vector<16x32xf32>
    %7 = tpu.matmul %5, %6, %cst {dimension_numbers = #tpu.dot_dimension_numbers<[1], [0], [0], [1], [0, 0, 1, 1], [], []>} : vector<16x8xbf16>, vector<8x32xbf16>, vector<16x32xf32> -> vector<16x32xf32>
    %8 = arith.addf %3, %7 : vector<16x32xf32>
    %c0_7 = arith.constant 0 : index
    %c0_8 = arith.constant 0 : index
    %9 = vector.load %arg9[%c0_7, %c0_8] : memref<16x32xf32, #tpu.memory_space<vmem>>, vector<16x32xf32>
    tpu.vector_store %arg9[%c0_7, %c0_8], %8 {strides = array<i32>} : memref<16x32xf32, #tpu.memory_space<vmem>>, vector<16x32xf32>,
    %c0_i32_9 = arith.constant 0 : i32
    %10 = arith.cmpi eq, %arg2, %c0_i32_9 : i32
    %11 = arith.extui %10 : i1 to i32
    %c0_i32_10 = arith.constant 0 : i32
    %12 = arith.cmpi ne, %11, %c0_i32_10 : i32
    scf.if %12 {
      %c0_11 = arith.constant 0 : index
      %c0_12 = arith.constant 0 : index
      %13 = vector.load %arg9[%c0_11, %c0_12] : memref<16x32xf32, #tpu.memory_space<vmem>>, vector<16x32xf32>
      %c0_13 = arith.constant 0 : index
      %c0_14 = arith.constant 0 : index
      %14 = vector.load %arg5[%c0_13, %c0_14] : memref<1x32xf32, #tpu.memory_space<vmem>>, vector<1x32xf32>
      %15 = vector.broadcast %14 : vector<1x32xf32> to vector<16x32xf32>
      %16 = arith.mulf %13, %15 : vector<16x32xf32>
      %c0_15 = arith.constant 0 : index
      %c0_16 = arith.constant 0 : index
      %17 = vector.load %arg6[%c0_15, %c0_16] : memref<1x32xf32, #tpu.memory_space<vmem>>, vector<1x32xf32>
      %18 = vector.broadcast %17 : vector<1x32xf32> to vector<16x32xf32>
      %19 = arith.addf %16, %18 : vector<16x32xf32>
      %c0_17 = arith.constant 0 : index
      %c0_18 = arith.constant 0 : index
      %c0_19 = arith.constant 0 : index
      %20 = vector.load %arg7[%c0_17, %c0_18, %c0_19] : memref<1x16x32xbf16, #tpu.memory_space<vmem>>, vector<1x16x32xbf16>
      %21 = vector.shape_cast %20 : vector<1x16x32xbf16> to vector<16x32xbf16>
      %22 = arith.extf %21 : vector<16x32xbf16> to vector<16x32xf32>
      %23 = arith.addf %19, %22 : vector<16x32xf32>
      %cst_20 = arith.constant 0.000000e+00 : f32
      %24 = vector.broadcast %cst_20 : f32 to vector<16x32xf32>
      %25 = arith.maximumf %23, %24 : vector<16x32xf32>
      %cst_21 = arith.constant dense<0.000000e+00> : vector<32xf32>
      %26 = vector.multi_reduction <add>, %25, %cst_21 [0] : vector<16x32xf32> to vector<32xf32>
      %27 = vector.shape_cast %26 : vector<32xf32> to vector<1x32xf32>
      %cst_22 = arith.constant 6.250000e-02 : f32
      %28 = vector.broadcast %cst_22 : f32 to vector<1x32xf32>
      %29 = arith.mulf %27, %28 : vector<1x32xf32>
      %c0_23 = arith.constant 0 : index
      %c0_24 = arith.constant 0 : index
      %c0_25 = arith.constant 0 : index
      %30 = vector.load %arg8[%c0_23, %c0_24, %c0_25] : memref<1x1x32xf32, #tpu.memory_space<vmem>>, vector<1x1x32xf32>
      %31 = vector.shape_cast %30 : vector<1x1x32xf32> to vector<1x32xf32>
      %32 = vector.shape_cast %29 : vector<1x32xf32> to vector<1x1x32xf32>
      tpu.vector_store %arg8[%c0_23, %c0_24, %c0_25], %32 {strides = array<i32>} : memref<1x1x32xf32, #tpu.memory_space<vmem>>, vector<1x1x32xf32>,
    } else {
    }
    return
  }
  func.func @transform_0(%arg0: i32, %arg1: i32, %arg2: i32) -> (i32, i32, i32) {
    %c0_i32 = arith.constant 0 : i32
    %c0_i32_0 = arith.constant 0 : i32
    return %arg0, %c0_i32, %arg2 : i32, i32, i32
  }
  func.func @transform_1(%arg0: i32, %arg1: i32, %arg2: i32) -> (i32, i32) {
    %c0_i32 = arith.constant 0 : i32
    return %arg2, %arg1 : i32, i32
  }
  func.func @transform_2(%arg0: i32, %arg1: i32, %arg2: i32) -> (i32, i32) {
    %c0_i32 = arith.constant 0 : i32
    %c0_i32_0 = arith.constant 0 : i32
    return %c0_i32, %arg1 : i32, i32
  }
  func.func @transform_3(%arg0: i32, %arg1: i32, %arg2: i32) -> (i32, i32) {
    %c0_i32 = arith.constant 0 : i32
    %c0_i32_0 = arith.constant 0 : i32
    return %c0_i32, %arg1 : i32, i32
  }
  func.func @transform_4(%arg0: i32, %arg1: i32, %arg2: i32) -> (i32, i32, i32) {
    %c0_i32 = arith.constant 0 : i32
    %c0_i32_0 = arith.constant 0 : i32
    return %arg0, %c0_i32, %arg1 : i32, i32, i32
  }
  func.func @transform_5(%arg0: i32, %arg1: i32, %arg2: i32) -> (i32, i32, i32) {
    %c0_i32 = arith.constant 0 : i32
    %c0_i32_0 = arith.constant 0 : i32
    return %arg0, %c0_i32, %arg1 : i32, i32, i32
  }
}

module attributes {stable_mosaic.version = 11 : i64} {
  func.func @kernel(%arg0: i32, %arg1: i32, %arg2: memref<1x38x8xbf16, #tpu.memory_space<vmem>>, %arg3: memref<9x8x8xbf16, #tpu.memory_space<vmem>>, %arg4: memref<1x8xf32, #tpu.memory_space<vmem>>, %arg5: memref<1x8xf32, #tpu.memory_space<vmem>>, %arg6: memref<1x4x4x8xbf16, #tpu.memory_space<vmem>>) attributes {dimension_semantics = [#tpu.dimension_semantics<parallel>, #tpu.dimension_semantics<parallel>], iteration_bounds = array<i64: 2, 1>, scalar_prefetch = 0 : i64, scratch_operands = 0 : i64, tpu.core_type = #tpu.core_type<tc>, window_params = [{transform_indices = @transform_0, window_bounds = array<i64: 1, 38, 8>}, {transform_indices = @transform_1, window_bounds = array<i64: 9, 8, 8>}, {transform_indices = @transform_2, window_bounds = array<i64: 1, 8>}, {transform_indices = @transform_3, window_bounds = array<i64: 1, 8>}, {transform_indices = @transform_4, window_bounds = array<i64: 1, 4, 4, 8>}]} {
    %c0 = arith.constant 0 : index
    %c0_0 = arith.constant 0 : index
    %c0_1 = arith.constant 0 : index
    %0 = vector.load %arg2[%c0, %c0_0, %c0_1] : memref<1x38x8xbf16, #tpu.memory_space<vmem>>, vector<1x24x8xbf16>
    %1 = vector.shape_cast %0 : vector<1x24x8xbf16> to vector<24x8xbf16>
    %c0_2 = arith.constant 0 : index
    %c0_3 = arith.constant 0 : index
    %c0_4 = arith.constant 0 : index
    %2 = vector.load %arg3[%c0_2, %c0_3, %c0_4] : memref<9x8x8xbf16, #tpu.memory_space<vmem>>, vector<1x8x8xbf16>
    %3 = vector.shape_cast %2 : vector<1x8x8xbf16> to vector<8x8xbf16>
    %cst = arith.constant dense<0.000000e+00> : vector<24x8xf32>
    %4 = tpu.matmul %1, %3, %cst {dimension_numbers = #tpu.dot_dimension_numbers<[1], [0], [0], [1], [0, 0, 1, 1], [], []>} : vector<24x8xbf16>, vector<8x8xbf16>, vector<24x8xf32> -> vector<24x8xf32>
    %c0_5 = arith.constant 0 : index
    %c1 = arith.constant 1 : index
    %c0_6 = arith.constant 0 : index
    %5 = vector.load %arg2[%c0_5, %c1, %c0_6] : memref<1x38x8xbf16, #tpu.memory_space<vmem>>, vector<1x24x8xbf16>
    %6 = vector.shape_cast %5 : vector<1x24x8xbf16> to vector<24x8xbf16>
    %c1_7 = arith.constant 1 : index
    %c0_8 = arith.constant 0 : index
    %c0_9 = arith.constant 0 : index
    %7 = vector.load %arg3[%c1_7, %c0_8, %c0_9] : memref<9x8x8xbf16, #tpu.memory_space<vmem>>, vector<1x8x8xbf16>
    %8 = vector.shape_cast %7 : vector<1x8x8xbf16> to vector<8x8xbf16>
    %cst_10 = arith.constant dense<0.000000e+00> : vector<24x8xf32>
    %9 = tpu.matmul %6, %8, %cst_10 {dimension_numbers = #tpu.dot_dimension_numbers<[1], [0], [0], [1], [0, 0, 1, 1], [], []>} : vector<24x8xbf16>, vector<8x8xbf16>, vector<24x8xf32> -> vector<24x8xf32>
    %10 = arith.addf %4, %9 : vector<24x8xf32>
    %c0_11 = arith.constant 0 : index
    %c2 = arith.constant 2 : index
    %c0_12 = arith.constant 0 : index
    %11 = vector.load %arg2[%c0_11, %c2, %c0_12] : memref<1x38x8xbf16, #tpu.memory_space<vmem>>, vector<1x24x8xbf16>
    %12 = vector.shape_cast %11 : vector<1x24x8xbf16> to vector<24x8xbf16>
    %c2_13 = arith.constant 2 : index
    %c0_14 = arith.constant 0 : index
    %c0_15 = arith.constant 0 : index
    %13 = vector.load %arg3[%c2_13, %c0_14, %c0_15] : memref<9x8x8xbf16, #tpu.memory_space<vmem>>, vector<1x8x8xbf16>
    %14 = vector.shape_cast %13 : vector<1x8x8xbf16> to vector<8x8xbf16>
    %cst_16 = arith.constant dense<0.000000e+00> : vector<24x8xf32>
    %15 = tpu.matmul %12, %14, %cst_16 {dimension_numbers = #tpu.dot_dimension_numbers<[1], [0], [0], [1], [0, 0, 1, 1], [], []>} : vector<24x8xbf16>, vector<8x8xbf16>, vector<24x8xf32> -> vector<24x8xf32>
    %16 = arith.addf %10, %15 : vector<24x8xf32>
    %c0_17 = arith.constant 0 : index
    %c6 = arith.constant 6 : index
    %c0_18 = arith.constant 0 : index
    %17 = vector.load %arg2[%c0_17, %c6, %c0_18] : memref<1x38x8xbf16, #tpu.memory_space<vmem>>, vector<1x24x8xbf16>
    %18 = vector.shape_cast %17 : vector<1x24x8xbf16> to vector<24x8xbf16>
    %c3 = arith.constant 3 : index
    %c0_19 = arith.constant 0 : index
    %c0_20 = arith.constant 0 : index
    %19 = vector.load %arg3[%c3, %c0_19, %c0_20] : memref<9x8x8xbf16, #tpu.memory_space<vmem>>, vector<1x8x8xbf16>
    %20 = vector.shape_cast %19 : vector<1x8x8xbf16> to vector<8x8xbf16>
    %cst_21 = arith.constant dense<0.000000e+00> : vector<24x8xf32>
    %21 = tpu.matmul %18, %20, %cst_21 {dimension_numbers = #tpu.dot_dimension_numbers<[1], [0], [0], [1], [0, 0, 1, 1], [], []>} : vector<24x8xbf16>, vector<8x8xbf16>, vector<24x8xf32> -> vector<24x8xf32>
    %22 = arith.addf %16, %21 : vector<24x8xf32>
    %c0_22 = arith.constant 0 : index
    %c7 = arith.constant 7 : index
    %c0_23 = arith.constant 0 : index
    %23 = vector.load %arg2[%c0_22, %c7, %c0_23] : memref<1x38x8xbf16, #tpu.memory_space<vmem>>, vector<1x24x8xbf16>
    %24 = vector.shape_cast %23 : vector<1x24x8xbf16> to vector<24x8xbf16>
    %c4 = arith.constant 4 : index
    %c0_24 = arith.constant 0 : index
    %c0_25 = arith.constant 0 : index
    %25 = vector.load %arg3[%c4, %c0_24, %c0_25] : memref<9x8x8xbf16, #tpu.memory_space<vmem>>, vector<1x8x8xbf16>
    %26 = vector.shape_cast %25 : vector<1x8x8xbf16> to vector<8x8xbf16>
    %cst_26 = arith.constant dense<0.000000e+00> : vector<24x8xf32>
    %27 = tpu.matmul %24, %26, %cst_26 {dimension_numbers = #tpu.dot_dimension_numbers<[1], [0], [0], [1], [0, 0, 1, 1], [], []>} : vector<24x8xbf16>, vector<8x8xbf16>, vector<24x8xf32> -> vector<24x8xf32>
    %28 = arith.addf %22, %27 : vector<24x8xf32>
    %c0_27 = arith.constant 0 : index
    %c8 = arith.constant 8 : index
    %c0_28 = arith.constant 0 : index
    %29 = vector.load %arg2[%c0_27, %c8, %c0_28] : memref<1x38x8xbf16, #tpu.memory_space<vmem>>, vector<1x24x8xbf16>
    %30 = vector.shape_cast %29 : vector<1x24x8xbf16> to vector<24x8xbf16>
    %c5 = arith.constant 5 : index
    %c0_29 = arith.constant 0 : index
    %c0_30 = arith.constant 0 : index
    %31 = vector.load %arg3[%c5, %c0_29, %c0_30] : memref<9x8x8xbf16, #tpu.memory_space<vmem>>, vector<1x8x8xbf16>
    %32 = vector.shape_cast %31 : vector<1x8x8xbf16> to vector<8x8xbf16>
    %cst_31 = arith.constant dense<0.000000e+00> : vector<24x8xf32>
    %33 = tpu.matmul %30, %32, %cst_31 {dimension_numbers = #tpu.dot_dimension_numbers<[1], [0], [0], [1], [0, 0, 1, 1], [], []>} : vector<24x8xbf16>, vector<8x8xbf16>, vector<24x8xf32> -> vector<24x8xf32>
    %34 = arith.addf %28, %33 : vector<24x8xf32>
    %c0_32 = arith.constant 0 : index
    %c12 = arith.constant 12 : index
    %c0_33 = arith.constant 0 : index
    %35 = vector.load %arg2[%c0_32, %c12, %c0_33] : memref<1x38x8xbf16, #tpu.memory_space<vmem>>, vector<1x24x8xbf16>
    %36 = vector.shape_cast %35 : vector<1x24x8xbf16> to vector<24x8xbf16>
    %c6_34 = arith.constant 6 : index
    %c0_35 = arith.constant 0 : index
    %c0_36 = arith.constant 0 : index
    %37 = vector.load %arg3[%c6_34, %c0_35, %c0_36] : memref<9x8x8xbf16, #tpu.memory_space<vmem>>, vector<1x8x8xbf16>
    %38 = vector.shape_cast %37 : vector<1x8x8xbf16> to vector<8x8xbf16>
    %cst_37 = arith.constant dense<0.000000e+00> : vector<24x8xf32>
    %39 = tpu.matmul %36, %38, %cst_37 {dimension_numbers = #tpu.dot_dimension_numbers<[1], [0], [0], [1], [0, 0, 1, 1], [], []>} : vector<24x8xbf16>, vector<8x8xbf16>, vector<24x8xf32> -> vector<24x8xf32>
    %40 = arith.addf %34, %39 : vector<24x8xf32>
    %c0_38 = arith.constant 0 : index
    %c13 = arith.constant 13 : index
    %c0_39 = arith.constant 0 : index
    %41 = vector.load %arg2[%c0_38, %c13, %c0_39] : memref<1x38x8xbf16, #tpu.memory_space<vmem>>, vector<1x24x8xbf16>
    %42 = vector.shape_cast %41 : vector<1x24x8xbf16> to vector<24x8xbf16>
    %c7_40 = arith.constant 7 : index
    %c0_41 = arith.constant 0 : index
    %c0_42 = arith.constant 0 : index
    %43 = vector.load %arg3[%c7_40, %c0_41, %c0_42] : memref<9x8x8xbf16, #tpu.memory_space<vmem>>, vector<1x8x8xbf16>
    %44 = vector.shape_cast %43 : vector<1x8x8xbf16> to vector<8x8xbf16>
    %cst_43 = arith.constant dense<0.000000e+00> : vector<24x8xf32>
    %45 = tpu.matmul %42, %44, %cst_43 {dimension_numbers = #tpu.dot_dimension_numbers<[1], [0], [0], [1], [0, 0, 1, 1], [], []>} : vector<24x8xbf16>, vector<8x8xbf16>, vector<24x8xf32> -> vector<24x8xf32>
    %46 = arith.addf %40, %45 : vector<24x8xf32>
    %c0_44 = arith.constant 0 : index
    %c14 = arith.constant 14 : index
    %c0_45 = arith.constant 0 : index
    %47 = vector.load %arg2[%c0_44, %c14, %c0_45] : memref<1x38x8xbf16, #tpu.memory_space<vmem>>, vector<1x24x8xbf16>
    %48 = vector.shape_cast %47 : vector<1x24x8xbf16> to vector<24x8xbf16>
    %c8_46 = arith.constant 8 : index
    %c0_47 = arith.constant 0 : index
    %c0_48 = arith.constant 0 : index
    %49 = vector.load %arg3[%c8_46, %c0_47, %c0_48] : memref<9x8x8xbf16, #tpu.memory_space<vmem>>, vector<1x8x8xbf16>
    %50 = vector.shape_cast %49 : vector<1x8x8xbf16> to vector<8x8xbf16>
    %cst_49 = arith.constant dense<0.000000e+00> : vector<24x8xf32>
    %51 = tpu.matmul %48, %50, %cst_49 {dimension_numbers = #tpu.dot_dimension_numbers<[1], [0], [0], [1], [0, 0, 1, 1], [], []>} : vector<24x8xbf16>, vector<8x8xbf16>, vector<24x8xf32> -> vector<24x8xf32>
    %52 = arith.addf %46, %51 : vector<24x8xf32>
    %c0_50 = arith.constant 0 : index
    %c0_51 = arith.constant 0 : index
    %53 = vector.load %arg4[%c0_50, %c0_51] : memref<1x8xf32, #tpu.memory_space<vmem>>, vector<1x8xf32>
    %54 = vector.broadcast %53 : vector<1x8xf32> to vector<24x8xf32>
    %55 = arith.mulf %52, %54 : vector<24x8xf32>
    %c0_52 = arith.constant 0 : index
    %c0_53 = arith.constant 0 : index
    %56 = vector.load %arg5[%c0_52, %c0_53] : memref<1x8xf32, #tpu.memory_space<vmem>>, vector<1x8xf32>
    %57 = vector.broadcast %56 : vector<1x8xf32> to vector<24x8xf32>
    %58 = arith.addf %55, %57 : vector<24x8xf32>
    %cst_54 = arith.constant 0.000000e+00 : f32
    %59 = vector.broadcast %cst_54 : f32 to vector<24x8xf32>
    %60 = arith.maximumf %58, %59 : vector<24x8xf32>
    %61 = vector.extract_strided_slice %60 {offsets = [0, 0], sizes = [4, 8], strides = [1, 1]} : vector<24x8xf32> to vector<4x8xf32>
    %62 = arith.truncf %61 : vector<4x8xf32> to vector<4x8xbf16>
    %c0_55 = arith.constant 0 : index
    %c0_56 = arith.constant 0 : index
    %c0_57 = arith.constant 0 : index
    %c0_58 = arith.constant 0 : index
    %63 = vector.load %arg6[%c0_55, %c0_56, %c0_57, %c0_58] : memref<1x4x4x8xbf16, #tpu.memory_space<vmem>>, vector<1x1x4x8xbf16>
    %64 = vector.shape_cast %63 : vector<1x1x4x8xbf16> to vector<4x8xbf16>
    %65 = vector.shape_cast %62 : vector<4x8xbf16> to vector<1x1x4x8xbf16>
    tpu.vector_store %arg6[%c0_55, %c0_56, %c0_57, %c0_58], %65 {strides = array<i32>} : memref<1x4x4x8xbf16, #tpu.memory_space<vmem>>, vector<1x1x4x8xbf16>,
    %66 = vector.extract_strided_slice %60 {offsets = [6, 0], sizes = [4, 8], strides = [1, 1]} : vector<24x8xf32> to vector<4x8xf32>
    %67 = arith.truncf %66 : vector<4x8xf32> to vector<4x8xbf16>
    %c0_59 = arith.constant 0 : index
    %c1_60 = arith.constant 1 : index
    %c0_61 = arith.constant 0 : index
    %c0_62 = arith.constant 0 : index
    %68 = vector.load %arg6[%c0_59, %c1_60, %c0_61, %c0_62] : memref<1x4x4x8xbf16, #tpu.memory_space<vmem>>, vector<1x1x4x8xbf16>
    %69 = vector.shape_cast %68 : vector<1x1x4x8xbf16> to vector<4x8xbf16>
    %70 = vector.shape_cast %67 : vector<4x8xbf16> to vector<1x1x4x8xbf16>
    tpu.vector_store %arg6[%c0_59, %c1_60, %c0_61, %c0_62], %70 {strides = array<i32>} : memref<1x4x4x8xbf16, #tpu.memory_space<vmem>>, vector<1x1x4x8xbf16>,
    %71 = vector.extract_strided_slice %60 {offsets = [12, 0], sizes = [4, 8], strides = [1, 1]} : vector<24x8xf32> to vector<4x8xf32>
    %72 = arith.truncf %71 : vector<4x8xf32> to vector<4x8xbf16>
    %c0_63 = arith.constant 0 : index
    %c2_64 = arith.constant 2 : index
    %c0_65 = arith.constant 0 : index
    %c0_66 = arith.constant 0 : index
    %73 = vector.load %arg6[%c0_63, %c2_64, %c0_65, %c0_66] : memref<1x4x4x8xbf16, #tpu.memory_space<vmem>>, vector<1x1x4x8xbf16>
    %74 = vector.shape_cast %73 : vector<1x1x4x8xbf16> to vector<4x8xbf16>
    %75 = vector.shape_cast %72 : vector<4x8xbf16> to vector<1x1x4x8xbf16>
    tpu.vector_store %arg6[%c0_63, %c2_64, %c0_65, %c0_66], %75 {strides = array<i32>} : memref<1x4x4x8xbf16, #tpu.memory_space<vmem>>, vector<1x1x4x8xbf16>,
    %76 = vector.extract_strided_slice %60 {offsets = [18, 0], sizes = [4, 8], strides = [1, 1]} : vector<24x8xf32> to vector<4x8xf32>
    %77 = arith.truncf %76 : vector<4x8xf32> to vector<4x8xbf16>
    %c0_67 = arith.constant 0 : index
    %c3_68 = arith.constant 3 : index
    %c0_69 = arith.constant 0 : index
    %c0_70 = arith.constant 0 : index
    %78 = vector.load %arg6[%c0_67, %c3_68, %c0_69, %c0_70] : memref<1x4x4x8xbf16, #tpu.memory_space<vmem>>, vector<1x1x4x8xbf16>
    %79 = vector.shape_cast %78 : vector<1x1x4x8xbf16> to vector<4x8xbf16>
    %80 = vector.shape_cast %77 : vector<4x8xbf16> to vector<1x1x4x8xbf16>
    tpu.vector_store %arg6[%c0_67, %c3_68, %c0_69, %c0_70], %80 {strides = array<i32>} : memref<1x4x4x8xbf16, #tpu.memory_space<vmem>>, vector<1x1x4x8xbf16>,
    return
  }
  func.func @transform_0(%arg0: i32, %arg1: i32) -> (i32, i32, i32) {
    %c0_i32 = arith.constant 0 : i32
    %c0_i32_0 = arith.constant 0 : i32
    %c0_i32_1 = arith.constant 0 : i32
    return %arg0, %c0_i32, %c0_i32_0 : i32, i32, i32
  }
  func.func @transform_1(%arg0: i32, %arg1: i32) -> (i32, i32, i32) {
    %c0_i32 = arith.constant 0 : i32
    %c0_i32_0 = arith.constant 0 : i32
    %c0_i32_1 = arith.constant 0 : i32
    return %c0_i32, %c0_i32_0, %arg1 : i32, i32, i32
  }
  func.func @transform_2(%arg0: i32, %arg1: i32) -> (i32, i32) {
    %c0_i32 = arith.constant 0 : i32
    %c0_i32_0 = arith.constant 0 : i32
    return %c0_i32, %arg1 : i32, i32
  }
  func.func @transform_3(%arg0: i32, %arg1: i32) -> (i32, i32) {
    %c0_i32 = arith.constant 0 : i32
    %c0_i32_0 = arith.constant 0 : i32
    return %c0_i32, %arg1 : i32, i32
  }
  func.func @transform_4(%arg0: i32, %arg1: i32) -> (i32, i32, i32, i32) {
    %c0_i32 = arith.constant 0 : i32
    %c0_i32_0 = arith.constant 0 : i32
    %c0_i32_1 = arith.constant 0 : i32
    return %arg0, %c0_i32, %c0_i32_0, %arg1 : i32, i32, i32, i32
  }
}

</mosaic_0001>

<bundles_post_ra>
// kernel: feature_vector_pooler.13
= control target key start
LH: loop header
LB: loop body
LE: loop exit
PB: predicated region body
PF: predicated region fallthrough
CT: control target
= control target key end

     0   :  { %vm56_vm0 = vcmask 1043456   ;;  %vm25_vm1 = vcmask 261120   ;;  %v165_v3 = vmov 0.0   ;;  %vm49_vm2 = vcmask 64512   ;;  %s241_s1 = inlined_call_operand.vmem [shape: bf16[8,32], index: 1, kind: input, shape index: {}]   ;;  %s242_s0 = inlined_call_operand.vmem [shape: bf16[32,8], index: 0, kind: input, shape index: {}]   ;;  %s243_s2 = inlined_call_operand.vmem [shape: f32[1,32], index: 2, kind: input, shape index: {}]   ;;  %s244_s3 = inlined_call_operand.vmem [shape: f32[1,32], index: 3, kind: input, shape index: {}]   ;;  %s245_s4 = inlined_call_operand.vmem [shape: bf16[32,32], index: 4, kind: input, shape index: {}]   ;;  %s246_s5 = inlined_call_operand.vmem [shape: bf16[32,32], index: 5, kind: output, shape index: {}]  }
   0x1   :  { %v38_v0 = vld [vmem:[%s241_s1] sm:$0xf]  ;;  %v151_v2 = vld [vmem:[%s242_s0 + $0x8] sm:$0xff]  ;;  %26 = vst.msk [vmem:[#allocation2] sm:$0xff] %vm25_vm1, %v165_v3  ;;  %vm131_vm3 = vcmask 257024  }
   0x2   :  { %v150_v1 = vld [vmem:[%s242_s0] sm:$0xff]  ;;  %v58_v4 = vsel %vm56_vm0, %v38_v0, 0  ;;  %27 = vst.msk [vmem:[#allocation2 + $0x8] sm:$0xff] %vm25_vm1, %v165_v3  ;;  %v160_v18 = vld [vmem:[%s245_s4 + $0x8] sm:$0xff]  }
   0x3   :  { %67 = vmatpush.bf16.msra.mxu0 %v58_v4  ;;  %161 = vmatpush.bf16.msra.mxu1 %v58_v4  ;;  %28 = vst.msk [vmem:[#allocation2 + $0x10] sm:$0xff] %vm25_vm1, %v165_v3  ;;  %v163_v13 = vld [vmem:[%s243_s2] ss:$0 sm:$0xff]  ;;  %v158_v26 = vunpack.c.l.bf16 %v160_v18  ;;  %v159_v40 = vunpack.c.h.bf16 %v160_v18 }
   0x4   :  { %29 = vst.msk [vmem:[#allocation2 + $0x18] sm:$0xff] %vm25_vm1, %v165_v3  ;;  %v153_v14 = vld [vmem:[%s245_s4] sm:$0xff]  }
   0x5   :  { %v164_v17 = vld [vmem:[%s244_s3] ss:$0 sm:$0xff]  ;;  %v154_v23 = vunpack.c.l.bf16 %v153_v14  ;;  %v155_v36 = vunpack.c.h.bf16 %v153_v14 }
   0x6   :  { %148 = vmatmul.msk.bf16.vlgmr.msra.gmra.mxu0 %vm49_vm2, %v150_v1  ;;  %149 = vmatmul.msk.bf16.vlgmr.msra.gmra.mxu1 %vm49_vm2, %v151_v2 }
   0x8   :  { %v30_v5 = vld [vmem:[#allocation2] sm:$0xff] }
   0x9   :  { %v31_v11 = vld [vmem:[#allocation2 + $0x8] sm:$0xff] }
   0xa   :  { %v32_v6 = vld [vmem:[#allocation2 + $0x10] sm:$0xff] }
   0xb   :  { %v33_v12 = vld [vmem:[#allocation2 + $0x18] sm:$0xff] }
  0x83   :  { %v69_v7 = vpop.f32.mrf.mxu0  ;;  %v74_v8 = vpop.f32.mrf.mxu1 }
  0x84   :  { %v79_v9 = vadd.f32 %v69_v7, %v30_v5  ;;  %v81_v10 = vadd.f32 %v74_v8, %v32_v6 }
  0x86   :  { %84 = vst.msk [vmem:[#allocation2] sm:$0xff] %vm25_vm1, %v79_v9 }
  0x87   :  { %86 = vst.msk [vmem:[#allocation2 + $0x10] sm:$0xff] %vm25_vm1, %v81_v10 }
  0x8b   :  { %v71_v15 = vpop.f32.mrf.mxu0  ;;  %v76_v16 = vpop.f32.mrf.mxu1 }
  0x8c   :  { %v80_v19 = vadd.f32 %v71_v15, %v31_v11  ;;  %v82_v20 = vadd.f32 %v76_v16, %v33_v12 }
  0x8d   :  { %v91_v21 = vld [vmem:[#allocation2] sm:$0xff] }
  0x8e   :  { %v99_v22 = vmul.f32 %v163_v13, %v91_v21  ;;  %v93_v24 = vld [vmem:[#allocation2 + $0x10] sm:$0xff]  ;;  %85 = vst.msk [vmem:[#allocation2 + $0x8] sm:$0xff] %vm25_vm1, %v80_v19 }
  0x8f   :  { %v101_v25 = vmul.f32 %v163_v13, %v93_v24  ;;  %87 = vst.msk [vmem:[#allocation2 + $0x18] sm:$0xff] %vm25_vm1, %v82_v20 }
  0x90   :  { %v107_v27 = vadd.f32 %v164_v17, %v99_v22 }
  0x91   :  { %v109_v28 = vadd.f32 %v164_v17, %v101_v25 }
  0x92   :  { %v119_v29 = vadd.f32 %v154_v23, %v107_v27 }
  0x93   :  { %v121_v30 = vadd.f32 %v158_v26, %v109_v28 }
  0x94   :  { %v123_v31 = vmax.f32 %v119_v29, 0.0 }
  0x95   :  { %v125_v32 = vmax.f32 %v121_v30, 0.0  ;;  %v92_v33 = vld [vmem:[#allocation2 + $0x8] sm:$0xff] }
  0x96   :  { %v127_v34 = vpack.c.bf16 %v123_v31, %v123_v31  ;;  %v100_v35 = vmul.f32 %v163_v13, %v92_v33  ;;  %v94_v37 = vld [vmem:[#allocation2 + $0x18] sm:$0xff] }
  0x97   :  { %v129_v38 = vpack.c.bf16 %v125_v32, %v125_v32  ;;  %v102_v39 = vmul.f32 %v163_v13, %v94_v37 }
  0x98   :  { %132 = vst.msk [vmem:[%s246_s5] sm:$0xf] %vm131_vm3, %v127_v34  ;;  %v108_v41 = vadd.f32 %v164_v17, %v100_v35 }
  0x99   :  { %134 = vst.msk [vmem:[%s246_s5 + $0x8] sm:$0xf] %vm131_vm3, %v129_v38  ;;  %v110_v42 = vadd.f32 %v164_v17, %v102_v39 }
  0x9a   :  { %v120_v43 = vadd.f32 %v155_v36, %v108_v41 }
  0x9b   :  { %v122_v44 = vadd.f32 %v159_v40, %v110_v42 }
  0x9c   :  { %v124_v45 = vmax.f32 %v120_v43, 0.0 }
  0x9d   :  { %v126_v46 = vmax.f32 %v122_v44, 0.0 }
  0x9e   :  { %v128_v47 = vpack.c.bf16 %v124_v45, %v124_v45 }
  0x9f   :  { %v130_v48 = vpack.c.bf16 %v126_v46, %v126_v46 }
  0xa0   :  { %133 = vst.msk [vmem:[%s246_s5 + $0x4] sm:$0xf] %vm131_vm3, %v128_v47 }
  0xa1   :  { %135 = vst.msk [vmem:[%s246_s5 + $0xc] sm:$0xf] %vm131_vm3, %v130_v48 }

// kernel: feature_vector_pooler.12
= control target key start
LH: loop header
LB: loop body
LE: loop exit
PB: predicated region body
PF: predicated region fallthrough
CT: control target
= control target key end

     0   :  { %vm22_vm0 = vcmask 261120   ;;  %v145_v2 = vmov 0.0   ;;  %vm53_vm1 = vcmask 130048   ;;  %vm115_vm2 = vcmask 257024   ;;  %s206_s1 = inlined_call_operand.vmem [shape: bf16[16,32], index: 1, kind: input, shape index: {}]   ;;  %s207_s0 = inlined_call_operand.vmem [shape: bf16[32,16], index: 0, kind: input, shape index: {}]   ;;  %s208_s2 = inlined_call_operand.vmem [shape: f32[1,32], index: 2, kind: input, shape index: {}]   ;;  %s209_s3 = inlined_call_operand.vmem [shape: f32[1,32], index: 3, kind: input, shape index: {}]   ;;  %s210_s4 = inlined_call_operand.vmem [shape: bf16[32,32], index: 4, kind: output, shape index: {}]  }
   0x1   :  { %v140_v0 = vld [vmem:[%s206_s1] sm:$0xff]  ;;  %23 = vst.msk [vmem:[#allocation2] sm:$0xff] %vm22_vm0, %v145_v2  ;;  %v139_v3 = vld [vmem:[%s207_s0 + $0x8] sm:$0xff] }
   0x2   :  { %v138_v1 = vld [vmem:[%s207_s0] sm:$0xff]  ;;  %24 = vst.msk [vmem:[#allocation2 + $0x8] sm:$0xff] %vm22_vm0, %v145_v2  ;;  %67 = vmatpush.bf16.msra.mxu0 %v140_v0  ;;  %141 = vmatpush.bf16.msra.mxu1 %v140_v0 }
   0x3   :  { %25 = vst.msk [vmem:[#allocation2 + $0x10] sm:$0xff] %vm22_vm0, %v145_v2  ;;  %v143_v12 = vld [vmem:[%s208_s2] ss:$0 sm:$0xff] }
   0x4   :  { %26 = vst.msk [vmem:[#allocation2 + $0x18] sm:$0xff] %vm22_vm0, %v145_v2  ;;  %v144_v15 = vld [vmem:[%s209_s3] ss:$0 sm:$0xff] }
   0x5   :  { %136 = vmatmul.msk.bf16.vlgmr.msra.gmra.mxu0 %vm53_vm1, %v138_v1  ;;  %137 = vmatmul.msk.bf16.vlgmr.msra.gmra.mxu1 %vm53_vm1, %v139_v3 }
   0x8   :  { %v27_v4 = vld [vmem:[#allocation2] sm:$0xff] }
   0x9   :  { %v28_v10 = vld [vmem:[#allocation2 + $0x8] sm:$0xff] }
   0xa   :  { %v29_v5 = vld [vmem:[#allocation2 + $0x10] sm:$0xff] }
   0xb   :  { %v30_v11 = vld [vmem:[#allocation2 + $0x18] sm:$0xff] }
  0x82   :  { %v69_v6 = vpop.f32.mrf.mxu0  ;;  %v74_v7 = vpop.f32.mrf.mxu1 }
  0x83   :  { %v79_v8 = vadd.f32 %v69_v6, %v27_v4  ;;  %v81_v9 = vadd.f32 %v74_v7, %v29_v5 }
  0x85   :  { %84 = vst.msk [vmem:[#allocation2] sm:$0xff] %vm22_vm0, %v79_v8 }
  0x86   :  { %86 = vst.msk [vmem:[#allocation2 + $0x10] sm:$0xff] %vm22_vm0, %v81_v9 }
  0x8a   :  { %v71_v13 = vpop.f32.mrf.mxu0  ;;  %v76_v14 = vpop.f32.mrf.mxu1 }
  0x8b   :  { %v80_v16 = vadd.f32 %v71_v13, %v28_v10  ;;  %v82_v17 = vadd.f32 %v76_v14, %v30_v11 }
  0x8c   :  { %v91_v18 = vld [vmem:[#allocation2] sm:$0xff] }
  0x8d   :  { %v99_v19 = vmul.f32 %v143_v12, %v91_v18  ;;  %v93_v20 = vld [vmem:[#allocation2 + $0x10] sm:$0xff]  ;;  %85 = vst.msk [vmem:[#allocation2 + $0x8] sm:$0xff] %vm22_vm0, %v80_v16 }
  0x8e   :  { %v101_v21 = vmul.f32 %v143_v12, %v93_v20  ;;  %87 = vst.msk [vmem:[#allocation2 + $0x18] sm:$0xff] %vm22_vm0, %v82_v17 }
  0x8f   :  { %v107_v22 = vadd.f32 %v144_v15, %v99_v19 }
  0x90   :  { %v109_v23 = vadd.f32 %v144_v15, %v101_v21 }
  0x91   :  { %v111_v24 = vpack.c.bf16 %v107_v22, %v107_v22 }
  0x92   :  { %v113_v25 = vpack.c.bf16 %v109_v23, %v109_v23 }
  0x93   :  { %116 = vst.msk [vmem:[%s210_s4] sm:$0xf] %vm115_vm2, %v111_v24 }
  0x94   :  { %118 = vst.msk [vmem:[%s210_s4 + $0x8] sm:$0xf] %vm115_vm2, %v113_v25  ;;  %v92_v26 = vld [vmem:[#allocation2 + $0x8] sm:$0xff] }
  0x95   :  { %v100_v27 = vmul.f32 %v143_v12, %v92_v26  ;;  %v94_v28 = vld [vmem:[#allocation2 + $0x18] sm:$0xff] }
  0x96   :  { %v102_v29 = vmul.f32 %v143_v12, %v94_v28 }
  0x97   :  { %v108_v30 = vadd.f32 %v144_v15, %v100_v27 }
  0x98   :  { %v110_v31 = vadd.f32 %v144_v15, %v102_v29 }
  0x99   :  { %v112_v32 = vpack.c.bf16 %v108_v30, %v108_v30 }
  0x9a   :  { %v114_v33 = vpack.c.bf16 %v110_v31, %v110_v31 }
  0x9b   :  { %117 = vst.msk [vmem:[%s210_s4 + $0x4] sm:$0xf] %vm115_vm2, %v112_v32 }
  0x9c   :  { %119 = vst.msk [vmem:[%s210_s4 + $0xc] sm:$0xf] %vm115_vm2, %v114_v33 }

// kernel: feature_vector_pooler.10
= control target key start
LH: loop header
LB: loop body
LE: loop exit
PB: predicated region body
PF: predicated region fallthrough
CT: control target
= control target key end

     0   :  { %vm22_vm0 = vcmask 64512   ;;  %v397_v1 = vmov 0.0   ;;  %vm119_vm1 = vcmask 130048   ;;  %vm317_vm2 = vcmask 60416   ;;  %s596_s1 = inlined_call_operand.vmem [shape: bf16[16,8], index: 1, kind: input, shape index: {}]   ;;  %s597_s0 = inlined_call_operand.vmem [shape: bf16[128,16], index: 0, kind: input, shape index: {}]   ;;  %s598_s2 = inlined_call_operand.vmem [shape: f32[1,8], index: 2, kind: input, shape index: {}]   ;;  %s599_s3 = inlined_call_operand.vmem [shape: f32[1,8], index: 3, kind: input, shape index: {}]   ;;  %s600_s4 = inlined_call_operand.vmem [shape: bf16[128,8], index: 4, kind: output, shape index: {}]  }
   0x1   :  { %v390_v0 = vld [vmem:[%s596_s1] sm:$0xff]  ;;  %23 = vst.msk [vmem:[#allocation2] sm:$0xff] %vm22_vm0, %v397_v1  ;;  %v384_v3 = vld [vmem:[%s597_s0 + $0x10] sm:$0xff]  ;;  %v383_v6 = vld [vmem:[%s597_s0 + $0x8] sm:$0xff] }
   0x2   :  { %v382_v2 = vld [vmem:[%s597_s0] sm:$0xff]  ;;  %24 = vst.msk [vmem:[#allocation2 + $0x8] sm:$0xff] %vm22_vm0, %v397_v1  ;;  %151 = vmatpush.bf16.msra.mxu0 %v390_v0  ;;  %391 = vmatpush.bf16.msra.mxu1 %v390_v0  ;;  %v388_v5 = vld [vmem:[%s597_s0 + $0x30] sm:$0xff]  ;;  %v385_v7 = vld [vmem:[%s597_s0 + $0x18] sm:$0xff] }
   0x3   :  { %v386_v4 = vld [vmem:[%s597_s0 + $0x20] sm:$0xff]  ;;  %25 = vst.msk [vmem:[#allocation2 + $0x10] sm:$0xff] %vm22_vm0, %v397_v1  ;;  %392 = vmatpush.bf16.msra.mxu2 %v390_v0  ;;  %393 = vmatpush.bf16.msra.mxu3 %v390_v0  ;;  %v387_v8 = vld [vmem:[%s597_s0 + $0x28] sm:$0xff]  ;;  %v389_v9 = vld [vmem:[%s597_s0 + $0x38] sm:$0xff] }
   0x4   :  { %26 = vst.msk [vmem:[#allocation2 + $0x18] sm:$0xff] %vm22_vm0, %v397_v1  ;;  %v479_v20 = vld [vmem:[%s598_s2] ss:$0 sm:$0xff] }
   0x5   :  { %27 = vst.msk [vmem:[#allocation2 + $0x20] sm:$0xff] %vm22_vm0, %v397_v1  ;;  %374 = vmatmul.msk.bf16.vlgmr.msra.gmra.mxu0 %vm119_vm1, %v382_v2  ;;  %376 = vmatmul.msk.bf16.vlgmr.msra.gmra.mxu1 %vm119_vm1, %v384_v3  ;;  %v484_v27 = vld [vmem:[%s599_s3] ss:$0 sm:$0xff] }
   0x6   :  { %28 = vst.msk [vmem:[#allocation2 + $0x28] sm:$0xff] %vm22_vm0, %v397_v1  ;;  %378 = vmatmul.msk.bf16.vlgmr.msra.gmra.mxu2 %vm119_vm1, %v386_v4  ;;  %380 = vmatmul.msk.bf16.vlgmr.msra.gmra.mxu3 %vm119_vm1, %v388_v5 }
   0x7   :  { %29 = vst.msk [vmem:[#allocation2 + $0x30] sm:$0xff] %vm22_vm0, %v397_v1 }
   0x8   :  { %30 = vst.msk [vmem:[#allocation2 + $0x38] sm:$0xff] %vm22_vm0, %v397_v1  ;;  %v39_v10 = vld [vmem:[#allocation2] sm:$0xff] }
   0x9   :  { %31 = vst.msk [vmem:[#allocation2 + $0x40] sm:$0xff] %vm22_vm0, %v397_v1  ;;  %v40_v18 = vld [vmem:[#allocation2 + $0x8] sm:$0xff] }
   0xa   :  { %32 = vst.msk [vmem:[#allocation2 + $0x48] sm:$0xff] %vm22_vm0, %v397_v1  ;;  %v41_v41 = vld [vmem:[#allocation2 + $0x10] sm:$0xff] }
   0xb   :  { %33 = vst.msk [vmem:[#allocation2 + $0x50] sm:$0xff] %vm22_vm0, %v397_v1 }
   0xc   :  { %34 = vst.msk [vmem:[#allocation2 + $0x58] sm:$0xff] %vm22_vm0, %v397_v1  ;;  %v43_v11 = vld [vmem:[#allocation2 + $0x20] sm:$0xff] }
   0xd   :  { %35 = vst.msk [vmem:[#allocation2 + $0x60] sm:$0xff] %vm22_vm0, %v397_v1  ;;  %v44_v19 = vld [vmem:[#allocation2 + $0x28] sm:$0xff] }
   0xe   :  { %36 = vst.msk [vmem:[#allocation2 + $0x68] sm:$0xff] %vm22_vm0, %v397_v1  ;;  %v45_v45 = vld [vmem:[#allocation2 + $0x30] sm:$0xff] }
   0xf   :  { %37 = vst.msk [vmem:[#allocation2 + $0x70] sm:$0xff] %vm22_vm0, %v397_v1 }
  0x10   :  { %38 = vst.msk [vmem:[#allocation2 + $0x78] sm:$0xff] %vm22_vm0, %v397_v1  ;;  %v47_v16 = vld [vmem:[#allocation2 + $0x40] sm:$0xff] }
  0x11   :  { %v48_v35 = vld [vmem:[#allocation2 + $0x48] sm:$0xff] }
  0x12   :  { %v49_v2 = vld [vmem:[#allocation2 + $0x50] sm:$0xff] }
  0x14   :  { %v51_v17 = vld [vmem:[#allocation2 + $0x60] sm:$0xff] }
  0x15   :  { %375 = vmatmul.msk.bf16.gmra.mxu0 %vm119_vm1, %v383_v6  ;;  %377 = vmatmul.msk.bf16.gmra.mxu1 %vm119_vm1, %v385_v7  ;;  %v52_v37 = vld [vmem:[#allocation2 + $0x68] sm:$0xff] }
  0x16   :  { %379 = vmatmul.msk.bf16.gmra.mxu2 %vm119_vm1, %v387_v8  ;;  %381 = vmatmul.msk.bf16.gmra.mxu3 %vm119_vm1, %v389_v9  ;;  %v53_v7 = vld [vmem:[#allocation2 + $0x70] sm:$0xff] }
  0x82   :  { %v153_v12 = vpop.f32.mrf.mxu0  ;;  %v163_v13 = vpop.f32.mrf.mxu1 }
  0x83   :  { %v193_v14 = vadd.f32 %v153_v12, %v39_v10  ;;  %v197_v15 = vadd.f32 %v163_v13, %v43_v11  ;;  %v42_v11 = vld [vmem:[#allocation2 + $0x18] sm:$0xff] }
  0x85   :  { %210 = vst.msk [vmem:[#allocation2] sm:$0xff] %vm22_vm0, %v193_v14 }
  0x86   :  { %214 = vst.msk [vmem:[#allocation2 + $0x20] sm:$0xff] %vm22_vm0, %v197_v15 }
  0x89   :  { %v173_v21 = vpop.f32.mrf.mxu2  ;;  %v183_v22 = vpop.f32.mrf.mxu3 }
  0x8a   :  { %v201_v23 = vadd.f32 %v173_v21, %v47_v16  ;;  %v205_v24 = vadd.f32 %v183_v22, %v51_v17  ;;  %v155_v25 = vpop.f32.mrf.mxu0  ;;  %v165_v26 = vpop.f32.mrf.mxu1  ;;  %v46_v16 = vld [vmem:[#allocation2 + $0x38] sm:$0xff] }
  0x8b   :  { %v194_v28 = vadd.f32 %v155_v25, %v40_v18  ;;  %v198_v29 = vadd.f32 %v165_v26, %v44_v19 }
  0x8c   :  { %v229_v30 = vld [vmem:[#allocation2] sm:$0xff]  ;;  %218 = vst.msk [vmem:[#allocation2 + $0x40] sm:$0xff] %vm22_vm0, %v201_v23 }
  0x8d   :  { %v249_v31 = vmul.f32 %v479_v20, %v229_v30  ;;  %v233_v32 = vld [vmem:[#allocation2 + $0x20] sm:$0xff]  ;;  %222 = vst.msk [vmem:[#allocation2 + $0x60] sm:$0xff] %vm22_vm0, %v205_v24 }
  0x8e   :  { %v253_v33 = vmul.f32 %v479_v20, %v233_v32  ;;  %211 = vst.msk [vmem:[#allocation2 + $0x8] sm:$0xff] %vm22_vm0, %v194_v28  ;;  %v50_v28 = vld [vmem:[#allocation2 + $0x58] sm:$0xff] }
  0x8f   :  { %v269_v34 = vadd.f32 %v484_v27, %v249_v31  ;;  %215 = vst.msk [vmem:[#allocation2 + $0x28] sm:$0xff] %vm22_vm0, %v198_v29  ;;  %v54_v29 = vld [vmem:[#allocation2 + $0x78] sm:$0xff] }
  0x90   :  { %v273_v36 = vadd.f32 %v484_v27, %v253_v33 }
  0x91   :  { %v285_v38 = vmax.f32 %v269_v34, 0.0  ;;  %v175_v39 = vpop.f32.mrf.mxu2  ;;  %v185_v40 = vpop.f32.mrf.mxu3 }
  0x92   :  { %v289_v42 = vmax.f32 %v273_v36, 0.0  ;;  %v202_v43 = vadd.f32 %v175_v39, %v48_v35  ;;  %v158_v44 = vpop.f32.mrf.mxu0  ;;  %v168_v46 = vpop.f32.mrf.mxu1  ;;  %v206_v49 = vadd.f32 %v185_v40, %v52_v37 }
  0x93   :  { %v301_v47 = vpack.c.bf16 %v285_v38, %v285_v38  ;;  %v237_v48 = vld [vmem:[#allocation2 + $0x40] sm:$0xff]  ;;  %v195_v53 = vadd.f32 %v158_v44, %v41_v41  ;;  %v199_v56 = vadd.f32 %v168_v46, %v45_v45 }
  0x94   :  { %v305_v50 = vpack.c.bf16 %v289_v42, %v289_v42  ;;  %v257_v51 = vmul.f32 %v479_v20, %v237_v48  ;;  %v241_v52 = vld [vmem:[#allocation2 + $0x60] sm:$0xff]  ;;  %219 = vst.msk [vmem:[#allocation2 + $0x48] sm:$0xff] %vm22_vm0, %v202_v43 }
  0x95   :  { %318 = vst.msk [vmem:[%s600_s4] sm:$0xf] %vm317_vm2, %v301_v47  ;;  %v261_v54 = vmul.f32 %v479_v20, %v241_v52  ;;  %v230_v55 = vld [vmem:[#allocation2 + $0x8] sm:$0xff] }
  0x96   :  { %322 = vst.msk [vmem:[%s600_s4 + $0x10] sm:$0xf] %vm317_vm2, %v305_v50  ;;  %v277_v57 = vadd.f32 %v484_v27, %v257_v51  ;;  %v250_v58 = vmul.f32 %v479_v20, %v230_v55  ;;  %v234_v59 = vld [vmem:[#allocation2 + $0x28] sm:$0xff] }
  0x97   :  { %v281_v60 = vadd.f32 %v484_v27, %v261_v54  ;;  %v254_v61 = vmul.f32 %v479_v20, %v234_v59  ;;  %223 = vst.msk [vmem:[#allocation2 + $0x68] sm:$0xff] %vm22_vm0, %v206_v49 }
  0x98   :  { %v293_v62 = vmax.f32 %v277_v57, 0.0  ;;  %v270_v63 = vadd.f32 %v484_v27, %v250_v58  ;;  %212 = vst.msk [vmem:[#allocation2 + $0x10] sm:$0xff] %vm22_vm0, %v195_v53 }
  0x99   :  { %v297_v0 = vmax.f32 %v281_v60, 0.0  ;;  %v274_v1 = vadd.f32 %v484_v27, %v254_v61  ;;  %216 = vst.msk [vmem:[#allocation2 + $0x30] sm:$0xff] %vm22_vm0, %v199_v56  ;;  %v178_v3 = vpop.f32.mrf.mxu2  ;;  %v188_v4 = vpop.f32.mrf.mxu3 }
  0x9a   :  { %v309_v5 = vpack.c.bf16 %v293_v62, %v293_v62  ;;  %v286_v6 = vmax.f32 %v270_v63, 0.0  ;;  %v160_v12 = vpop.f32.mrf.mxu0  ;;  %v203_v15 = vadd.f32 %v178_v3, %v49_v2  ;;  %v170_v17 = vpop.f32.mrf.mxu1  ;;  %v207_v19 = vadd.f32 %v188_v4, %v53_v7 }
  0x9b   :  { %v313_v8 = vpack.c.bf16 %v297_v0, %v297_v0  ;;  %v290_v9 = vmax.f32 %v274_v1, 0.0  ;;  %v238_v10 = vld [vmem:[#allocation2 + $0x48] sm:$0xff]  ;;  %v196_v23 = vadd.f32 %v160_v12, %v42_v11  ;;  %v200_v26 = vadd.f32 %v170_v17, %v46_v16 }
  0x9c   :  { %326 = vst.msk [vmem:[%s600_s4 + $0x20] sm:$0xf] %vm317_vm2, %v309_v5  ;;  %v302_v13 = vpack.c.bf16 %v286_v6, %v286_v6  ;;  %v258_v14 = vmul.f32 %v479_v20, %v238_v10 }
  0x9d   :  { %330 = vst.msk [vmem:[%s600_s4 + $0x30] sm:$0xf] %vm317_vm2, %v313_v8  ;;  %v306_v18 = vpack.c.bf16 %v290_v9, %v290_v9 }
  0x9e   :  { %319 = vst.msk [vmem:[%s600_s4 + $0x4] sm:$0xf] %vm317_vm2, %v302_v13  ;;  %v278_v21 = vadd.f32 %v484_v27, %v258_v14  ;;  %v242_v22 = vld [vmem:[#allocation2 + $0x68] sm:$0xff] }
  0x9f   :  { %323 = vst.msk [vmem:[%s600_s4 + $0x14] sm:$0xf] %vm317_vm2, %v306_v18  ;;  %v262_v24 = vmul.f32 %v479_v20, %v242_v22  ;;  %v231_v25 = vld [vmem:[#allocation2 + $0x10] sm:$0xff] }
  0xa0   :  { %v294_v30 = vmax.f32 %v278_v21, 0.0  ;;  %v251_v31 = vmul.f32 %v479_v20, %v231_v25  ;;  %v235_v32 = vld [vmem:[#allocation2 + $0x30] sm:$0xff]  ;;  %220 = vst.msk [vmem:[#allocation2 + $0x50] sm:$0xff] %vm22_vm0, %v203_v15 }
  0xa1   :  { %v282_v33 = vadd.f32 %v484_v27, %v262_v24  ;;  %v255_v34 = vmul.f32 %v479_v20, %v235_v32  ;;  %224 = vst.msk [vmem:[#allocation2 + $0x70] sm:$0xff] %vm22_vm0, %v207_v19  ;;  %v180_v35 = vpop.f32.mrf.mxu2  ;;  %v190_v36 = vpop.f32.mrf.mxu3 }
  0xa2   :  { %v310_v37 = vpack.c.bf16 %v294_v30, %v294_v30  ;;  %v271_v38 = vadd.f32 %v484_v27, %v251_v31  ;;  %213 = vst.msk [vmem:[#allocation2 + $0x18] sm:$0xff] %vm22_vm0, %v196_v23  ;;  %v204_v39 = vadd.f32 %v180_v35, %v50_v28  ;;  %v208_v40 = vadd.f32 %v190_v36, %v54_v29 }
  0xa3   :  { %v298_v41 = vmax.f32 %v282_v33, 0.0  ;;  %v275_v42 = vadd.f32 %v484_v27, %v255_v34  ;;  %217 = vst.msk [vmem:[#allocation2 + $0x38] sm:$0xff] %vm22_vm0, %v200_v26 }
  0xa4   :  { %327 = vst.msk [vmem:[%s600_s4 + $0x24] sm:$0xf] %vm317_vm2, %v310_v37  ;;  %v287_v43 = vmax.f32 %v271_v38, 0.0 }
  0xa5   :  { %v314_v44 = vpack.c.bf16 %v298_v41, %v298_v41  ;;  %v291_v45 = vmax.f32 %v275_v42, 0.0  ;;  %221 = vst.msk [vmem:[#allocation2 + $0x58] sm:$0xff] %vm22_vm0, %v204_v39 }
  0xa6   :  { %v303_v46 = vpack.c.bf16 %v287_v43, %v287_v43  ;;  %225 = vst.msk [vmem:[#allocation2 + $0x78] sm:$0xff] %vm22_vm0, %v208_v40 }
  0xa7   :  { %331 = vst.msk [vmem:[%s600_s4 + $0x34] sm:$0xf] %vm317_vm2, %v314_v44  ;;  %v307_v47 = vpack.c.bf16 %v291_v45, %v291_v45  ;;  %v239_v48 = vld [vmem:[#allocation2 + $0x50] sm:$0xff] }
  0xa8   :  { %320 = vst.msk [vmem:[%s600_s4 + $0x8] sm:$0xf] %vm317_vm2, %v303_v46  ;;  %v259_v49 = vmul.f32 %v479_v20, %v239_v48  ;;  %v243_v50 = vld [vmem:[#allocation2 + $0x70] sm:$0xff] }
  0xa9   :  { %324 = vst.msk [vmem:[%s600_s4 + $0x18] sm:$0xf] %vm317_vm2, %v307_v47  ;;  %v263_v51 = vmul.f32 %v479_v20, %v243_v50  ;;  %v232_v52 = vld [vmem:[#allocation2 + $0x18] sm:$0xff] }
  0xaa   :  { %v279_v53 = vadd.f32 %v484_v27, %v259_v49  ;;  %v252_v54 = vmul.f32 %v479_v20, %v232_v52  ;;  %v236_v55 = vld [vmem:[#allocation2 + $0x38] sm:$0xff] }
  0xab   :  { %v283_v56 = vadd.f32 %v484_v27, %v263_v51  ;;  %v256_v57 = vmul.f32 %v479_v20, %v236_v55 }
  0xac   :  { %v295_v58 = vmax.f32 %v279_v53, 0.0  ;;  %v272_v59 = vadd.f32 %v484_v27, %v252_v54  ;;  %v240_v60 = vld [vmem:[#allocation2 + $0x58] sm:$0xff] }
  0xad   :  { %v299_v61 = vmax.f32 %v283_v56, 0.0  ;;  %v276_v62 = vadd.f32 %v484_v27, %v256_v57  ;;  %v260_v63 = vmul.f32 %v479_v20, %v240_v60  ;;  %v244_v0 = vld [vmem:[#allocation2 + $0x78] sm:$0xff] }
  0xae   :  { %v311_v1 = vpack.c.bf16 %v295_v58, %v295_v58  ;;  %v288_v2 = vmax.f32 %v272_v59, 0.0  ;;  %v264_v3 = vmul.f32 %v479_v20, %v244_v0 }
  0xaf   :  { %v315_v4 = vpack.c.bf16 %v299_v61, %v299_v61  ;;  %v292_v5 = vmax.f32 %v276_v62, 0.0  ;;  %v280_v6 = vadd.f32 %v484_v27, %v260_v63 }
  0xb0   :  { %328 = vst.msk [vmem:[%s600_s4 + $0x28] sm:$0xf] %vm317_vm2, %v311_v1  ;;  %v304_v7 = vpack.c.bf16 %v288_v2, %v288_v2  ;;  %v284_v8 = vadd.f32 %v484_v27, %v264_v3 }
  0xb1   :  { %332 = vst.msk [vmem:[%s600_s4 + $0x38] sm:$0xf] %vm317_vm2, %v315_v4  ;;  %v308_v9 = vpack.c.bf16 %v292_v5, %v292_v5  ;;  %v296_v10 = vmax.f32 %v280_v6, 0.0 }
  0xb2   :  { %321 = vst.msk [vmem:[%s600_s4 + $0xc] sm:$0xf] %vm317_vm2, %v304_v7  ;;  %v300_v20 = vmax.f32 %v284_v8, 0.0 }
  0xb3   :  { %325 = vst.msk [vmem:[%s600_s4 + $0x1c] sm:$0xf] %vm317_vm2, %v308_v9  ;;  %v312_v11 = vpack.c.bf16 %v296_v10, %v296_v10 }
  0xb4   :  { %v316_v27 = vpack.c.bf16 %v300_v20, %v300_v20 }
  0xb5   :  { %329 = vst.msk [vmem:[%s600_s4 + $0x2c] sm:$0xf] %vm317_vm2, %v312_v11 }
  0xb6   :  { %333 = vst.msk [vmem:[%s600_s4 + $0x3c] sm:$0xf] %vm317_vm2, %v316_v27 }

// kernel: feature_vector_pooler.11
= control target key start
LH: loop header
LB: loop body
LE: loop exit
PB: predicated region body
PF: predicated region fallthrough
CT: control target
= control target key end

     0   :  { %s1280_s24 = smov 0   ;;  %s1282_s25 = smov 0   ;;  %s1436_s0 = inlined_call_operand.vmem [shape: bf16[2,26,8], index: 0, kind: input, shape index: {}]   ;;  %s1437_s1 = inlined_call_operand.vmem [shape: bf16[2,26,8], index: 1, kind: input, shape index: {}]   ;;  %s1438_s2 = inlined_call_operand.vmem [shape: bf16[2,26,8], index: 2, kind: input, shape index: {}]   ;;  %s1439_s3 = inlined_call_operand.vmem [shape: bf16[2,26,8], index: 3, kind: input, shape index: {}]   ;;  %s1440_s4 = inlined_call_operand.vmem [shape: bf16[9,8,8], index: 4, kind: input, shape index: {}]   ;;  %s1441_s5 = inlined_call_operand.vmem [shape: f32[1,8], index: 5, kind: input, shape index: {}]   ;;  %s1442_s6 = inlined_call_operand.vmem [shape: f32[1,8], index: 6, kind: input, shape index: {}]   ;;  %s1443_s7 = inlined_call_operand.vmem [shape: bf16[2,4,4,8], index: 7, kind: output, shape index: {}]  }
   0x1   :  { %s1284_s26 = smov 0  }
   0x2 LB: > { %s29_s27 = sadd.s32 1, %s1234_s25  ;;  %p1104_p0 = scmp.ge.s32.totalorder %s1238_s26, 1  ;;  %s1238_s26 = sphi %s1284_s26, %s17_s26   ;;  %s1234_s25 = sphi %s1282_s25, %s1445_s25   ;;  %s1230_s24 = sphi %s1280_s24, %s1444_s24  }
   0x3   : > { %p31_p1 = scmp.ge.s32.totalorder %s29_s27, 2  ;;  %p306_p2 = scmp.lt.s32.totalorder %s1238_s26, 3 }
   0x5   : > { %s1447_s27 = smov (%p31_p1, %s29_s27), 0  ;;  %p307_p3 = pnand %p1104_p0, %p306_p2 }
   0x6   : > { %p366_p4 = scmp.lt.s32.totalorder (!%p307_p3), %s1230_s24, 1 }
   0x7   : > { %310 = sbr.rel (%p307_p3) target bundleno = 244 (0xf4), region = 48 }
   0xc   : > { %v1115_v0 = vld [vmem:[%s1440_s4 + $0x4] sm:$0xf]  ;;  %vm429_vm0 = vcmask 1043456   ;;  %v408_v2 = vld [vmem:[%s1440_s4] sm:$0xf]  ;;  %s1449_s24 = smov (!%p366_p4, %s1230_s24), 1 }
   0xd   : > { %v431_v1 = vsel %vm429_vm0, %v1115_v0, 0  ;;  %v1128_v3 = vld [vmem:[%s1440_s4 + $0x8] sm:$0xf]  ;;  %v466_v4 = vsel %vm429_vm0, %v408_v2, 0  ;;  %v1131_v6 = vld [vmem:[%s1440_s4 + $0xc] sm:$0xf] }
   0xe   : > { %440 = vmatpush.bf16.msra.mxu0 %v431_v1  ;;  %1189 = vmatpush.bf16.msra.mxu1 %v431_v1  ;;  %v514_v5 = vsel %vm429_vm0, %v1128_v3, 0  ;;  %vm422_vm1 = vcmask 64512   ;;  %v557_v7 = vsel %vm429_vm0, %v1131_v6, 0  ;;  %v1138_v8 = vld [vmem:[%s1440_s4 + $0x10] sm:$0xf]  ;;  %s1320_s15 = sshll.u32 %s1449_s24, 4 }
   0xf   : > { %523 = vmatpush.bf16.msra.mxu2 %v514_v5  ;;  %566 = vmatpush.bf16.msra.mxu3 %v557_v7  ;;  %v600_v9 = vsel %vm429_vm0, %v1138_v8, 0  ;;  %v1148_v10 = vld [vmem:[%s1440_s4 + $0x18] sm:$0xf]  ;;  %v1155_v11 = vld [vmem:[%s1440_s4 + $0x1c] sm:$0xf]  ;;  %s1333_s22 = scalar_lea.vmem %s1436_s0, %s1320_s15  ;;  %s1339_s29 = scalar_lea.vmem %s1437_s1, %s1320_s15  ;;  %vm806_vm4 = vcmask 1044480  }
  0x10   : > { %v714_v12 = vsel %vm429_vm0, %v1148_v10, 0  ;;  %v777_v13 = vsel %vm429_vm0, %v1155_v11, 0  ;;  %v1145_v14 = vld [vmem:[%s1440_s4 + $0x14] sm:$0xf]  ;;  %v1166_v15 = vld [vmem:[%s1440_s4 + $0x20] sm:$0xf]  ;;  %s1356_s13 = scalar_lea.vmem %s1438_s2, %s1320_s15  ;;  %s385_s17 = scalar_lea.vmem %s1439_s3, %s1320_s15 }
  0x11   : > { %v1183_v16 = vld [vmem:[%s1339_s29] sm:$0xff]  ;;  %v411_v17 = vld [vmem:[%s1339_s29 + $0x8] sm:$0x3]  ;;  %v817_v19 = vsel %vm429_vm0, %v1166_v15, 0  ;;  %v650_v27 = vsel %vm429_vm0, %v1145_v14, 0  ;;  %s1181_s21 = sshll.u32 %s1449_s24, 3 }
  0x12   : > { %475 = vmatpush.bf16.msrb.mxu1 %v466_v4  ;;  %609 = vmatpush.bf16.msrb.mxu0 %v600_v9  ;;  %v1182_v18 = vld [vmem:[%s1333_s22] sm:$0xff]  ;;  %v419_v20 = vunpack.c.l.b16 %v411_v17  ;;  %v486_v21 = vld [vmem:[%s1333_s22 + $0x8] sm:$0x7]  ;;  %vm492_vm2 = vsmask.f32 7424  ;;  %s1415_s28 = scalar_lea.vmem %s1443_s7, %s1181_s21  ;;  %vm858_vm5 = vcmask 58368  }
  0x13   : > { %723 = vmatpush.bf16.msrb.mxu2 %v714_v12  ;;  %786 = vmatpush.bf16.msrb.mxu3 %v777_v13  ;;  %v1361_v22 = vld [vmem:[%s1356_s13] sm:$0xff]  ;;  %v490_v23 = vunpack.c.l.b16 %v486_v21  ;;  %v493_v24 = vshrl.u32 %v1182_v18, 16  ;;  %v495_v25 = vshll.u32 %v1182_v18, 16  ;;  %v539_v32 = vld [vmem:[%s1356_s13 + $0x8] sm:$0x3]  ;;  %vm901_vm6 = vcmask 1040384  }
  0x14   : > { %1120 = vmatmul.msk.bf16.vlgmr.msra.gmra.mxu0 %vm422_vm1, %v1183_v16  ;;  %v421_v26 = vpack.c.b16 %v419_v20, %v419_v20  ;;  %1136 = vmatmul.msk.bf16.vlgmr.msra.gmra.mxu3 %vm422_vm1, %v1361_v22  ;;  %v547_v35 = vunpack.c.l.b16 %v539_v32  ;;  %v1158_v36 = vld [vmem:[%s1339_s29] sm:$0xc]  ;;  %v1187_v37 = vld [vmem:[%s1339_s29] sm:$0xf0]  ;;  %v1162_v38 = vld [vmem:[%s1339_s29 + $0x8] sm:$0xf] }
  0x15   : > { %v491_v28 = vpack.c.b16 %v490_v23, %v490_v23  ;;  %v497_v29 = vrot.slane %v495_v25, 1  ;;  %v1188_v39 = vld [vmem:[%s1339_s29 + $0x8] sm:$0x10]  ;;  %v1185_v40 = vld [vmem:[%s385_s17] sm:$0xff]  ;;  %v1159_v44 = vor.u32 %v1187_v37, %v1158_v36  ;;  %v1151_v47 = vld [vmem:[%s1333_s22 + $0x8] sm:$0xf] }
  0x16   : > { %826 = vmatpush.bf16.msra.mxu0 %v817_v19  ;;  %1121 = vmatmul.msk.bf16.vlgmr.msra.gmra.mxu1 %vm422_vm1, %v421_v26  ;;  %v549_v41 = vpack.c.b16 %v547_v35, %v547_v35  ;;  %v673_v42 = vld [vmem:[%s1333_s22] sm:$0xc]  ;;  %v674_v43 = vld [vmem:[%s1333_s22 + $0x4] sm:$0xf]  ;;  %v1163_v45 = vor.u32 %v1188_v39, %v1162_v38  ;;  %v1186_v50 = vld [vmem:[%s1333_s22 + $0x8] sm:$0x10] }
  0x17   : > { %v498_v30 = vor.u32 %v497_v29, %v493_v24  ;;  %v500_v31 = vshll.u32 %v491_v28, 16  ;;  %659 = vmatpush.bf16.msra.mxu1 %v650_v27  ;;  %v504_v46 = vshrl.u32 %v491_v28, 16  ;;  %v683_v48 = vunpack.c.l.b16 %v673_v42  ;;  %v582_v56 = vld [vmem:[%s385_s17 + $0x8] sm:$0x3]  ;;  %v800_v15 = vld [vmem:[%s1333_s22] sm:$0x8] }
  0x18   : > { %v684_v49 = vunpack.c.l.b16 %v674_v43  ;;  %v754_v51 = vshrl.u32 %v1159_v44, 16  ;;  %v757_v52 = vshll.u32 %v1159_v44, 16  ;;  %v762_v53 = vshrl.u32 %v1163_v45, 16  ;;  %v407_v0 = vld [vmem:[%s1333_s22 + $0x8] sm:$0x3] }
  0x19   : > { %v502_v33 = vrot.slane %v500_v31, 1  ;;  %v765_v54 = vshll.u32 %v1163_v45, 16  ;;  %v1152_v58 = vor.u32 %v1186_v50, %v1151_v47  ;;  %v590_v63 = vunpack.c.l.b16 %v582_v56  ;;  %v623_v9 = vld [vmem:[%s1356_s13 + $0x8] sm:$0x7] }
  0x1a   : > { %v687_v57 = vpack.c.b16 %v684_v49, %v683_v48  ;;  %v756_v59 = vrot.slane %v754_v51, 2  ;;  %v759_v60 = vrot.slane %v757_v52, 3  ;;  %v764_v61 = vrot.slane %v762_v53, 2 }
  0x1b   : > { %v503_v34 = vsel %vm492_vm2, %v498_v30, %v502_v33  ;;  %v506_v55 = vor.u32 %v504_v46, %v502_v33  ;;  %v767_v62 = vrot.slane %v765_v54, 3  ;;  %v699_v3 = vshrl.u32 %v1152_v58, 16 }
  0x1c   : > { %1129 = vmatmul.msk.bf16.vlgmr.msra.gmra.mxu2 %vm422_vm1, %v503_v34  ;;  %v691_v1 = vshrl.u32 %v687_v57, 16  ;;  %v694_v2 = vshll.u32 %v687_v57, 16  ;;  %v702_v4 = vshll.u32 %v1152_v58, 16  ;;  %v760_v5 = vor.u32 %v759_v60, %v756_v59 }
  0x1d   : > { %v768_v6 = vor.u32 %v767_v62, %v764_v61  ;;  %v456_v7 = vunpack.c.l.b16 %v407_v0  ;;  %vm689_vm3 = vsmask.f32 5376  ;;  %v592_v8 = vpack.c.b16 %v590_v63, %v590_v63 }
  0x1e   : > { %v693_v10 = vrot.slane %v691_v1, 2  ;;  %v696_v11 = vrot.slane %v694_v2, 3  ;;  %v701_v12 = vrot.slane %v699_v3, 2  ;;  %v704_v13 = vrot.slane %v702_v4, 3 }
  0x1f   : > { %v769_v14 = vsel %vm689_vm3, %v760_v5, %v768_v6  ;;  %v458_v16 = vpack.c.b16 %v456_v7, %v456_v7  ;;  %v627_v17 = vunpack.c.l.b16 %v623_v9  ;;  %v631_v21 = vshll.u32 %v1361_v22, 16 }
  0x20   : > { %v697_v19 = vor.u32 %v696_v11, %v693_v10  ;;  %v705_v20 = vor.u32 %v704_v13, %v701_v12  ;;  %v629_v26 = vshrl.u32 %v1361_v22, 16  ;;  %v808_v30 = vrot.slane %v1152_v58, 3  ;;  %v1214_v10 = vld [vmem:[%s1441_s5] ss:$0 sm:$0xff] }
  0x21   : > { %v628_v23 = vpack.c.b16 %v627_v17, %v627_v17  ;;  %v633_v27 = vrot.slane %v631_v21, 1  ;;  %vm902_vm7 = vcmask 1042434   ;;  %vm904_vm9 = vcmask 1044484  }
  0x22   : > { %v706_v25 = vsel %vm689_vm3, %v697_v19, %v705_v20  ;;  %vm903_vm8 = vmor %vm901_vm6, %vm902_vm7  ;;  %vm893_vm10 = vcmask 1041408   ;;  %vm897_vm11 = vcmask 1043458   ;;  %vm906_vm13 = vcmask 1046534  }
  0x23   : > { %v636_v28 = vshll.u32 %v628_v23, 16  ;;  %v634_v31 = vor.u32 %v633_v27, %v629_v26  ;;  %v640_v22 = vshrl.u32 %v628_v23, 16  ;;  %vm905_vm12 = vmor %vm903_vm8, %vm904_vm9  ;;  %vm869_vm14 = vsmask.f32 1280 }
  0x24   : > { %1143 = vmatmul.msk.bf16.vlgmr.msrb.gmra.mxu0 %vm422_vm1, %v1185_v40  ;;  %1137 = vmatmul.msk.bf16.gmra.mxu3 %vm422_vm1, %v549_v41  ;;  %vm870_vm15 = vsmask.f32 3336  ;;  %vm907_vm0 = vmor %vm905_vm12, %vm906_vm13  ;;  %vm923_vm7 = vsmask.f32 256  ;;  %vm924_vm8 = vsmask.f32 2312 }
  0x25   : > { %v638_v32 = vrot.slane %v636_v28, 1  ;;  %vm925_vm9 = vmor %vm923_vm7, %vm924_vm8  ;;  %vm928_vm12 = vsmask.f32 6424 }
  0x26   : > { %1126 = vmatmul.msk.bf16.vlgmr.msrb.gmra.mxu1 %vm422_vm1, %v1182_v18  ;;  %v804_v18 = vunpack.c.l.b16 %v800_v15 }
  0x27   : > { %v639_v34 = vsel %vm492_vm2, %v634_v31, %v638_v32  ;;  %v642_v35 = vor.u32 %v640_v22, %v638_v32  ;;  %vm871_vm2 = vmor %vm869_vm14, %vm870_vm15 }
  0x28   : > { %v805_v24 = vpack.c.b16 %v684_v49, %v804_v18 }
  0x2a   : > { %v807_v29 = vrot.slane %v805_v24, 3 }
  0x2c   : > { %1130 = vmatmul.msk.bf16.gmra.mxu2 %vm422_vm1, %v506_v55  ;;  %v809_v33 = vsel %vm806_vm4, %v807_v29, %v808_v30  ;;  %vm874_vm4 = vsmask.f32 7448 }
  0x34   : > { %1144 = vmatmul.msk.bf16.gmra.mxu0 %vm422_vm1, %v592_v8  ;;  %1164 = vmatmul.msk.bf16.vlgmr.msrb.gmra.mxu3 %vm422_vm1, %v769_v14  ;;  %v1215_v14 = vld [vmem:[%s1442_s6] ss:$0 sm:$0xff] }
  0x36   : > { %1127 = vmatmul.msk.bf16.gmra.mxu1 %vm422_vm1, %v458_v16 }
  0x3c   : > { %1153 = vmatmul.msk.bf16.vlgmr.msrb.gmra.mxu2 %vm422_vm1, %v706_v25 }
  0x44   : > { %1167 = vmatmul.msk.bf16.vlgmr.msra.gmra.mxu0 %vm422_vm1, %v809_v33  ;;  %1165 = vmatmul.msk.bf16.gmra.mxu3 %vm422_vm1, %v768_v6 }
  0x46   : > { %1146 = vmatmul.msk.bf16.vlgmr.msra.gmra.mxu1 %vm422_vm1, %v639_v34 }
  0x4c   : > { %1154 = vmatmul.msk.bf16.gmra.mxu2 %vm422_vm1, %v705_v20 }
  0x54   : > { %1168 = vmatmul.msk.bf16.gmra.mxu0 %vm422_vm1, %v808_v30 }
  0x56   : > { %1147 = vmatmul.msk.bf16.gmra.mxu1 %vm422_vm1, %v642_v35  ;;  %vm872_vm1 = vsmask.f32 5392 }
  0x57   : > { %vm873_vm3 = vmor %vm871_vm2, %vm872_vm1 }
  0x58   : > { %vm875_vm6 = vmor %vm873_vm3, %vm874_vm4 }
  0x91   : > { %v442_v36 = vpop.f32.mrf.mxu0 }
  0x93   : > { %v447_v37 = vpop.f32.mrf.mxu1 }
  0x97   : > { %v568_v38 = vpop.f32.mrf.mxu3 }
  0x99   : > { %v444_v39 = vpop.f32.mrf.mxu0 }
  0x9b   : > { %v449_v40 = vpop.f32.mrf.mxu1 }
  0x9f   : > { %v525_v41 = vpop.f32.mrf.mxu2  ;;  %v570_v42 = vpop.f32.mrf.mxu3 }
  0xa1   : > { %v611_v43 = vpop.f32.mrf.mxu0 }
  0xa3   : > { %v477_v44 = vpop.f32.mrf.mxu1 }
  0xa4   : > { %v478_v53 = vadd.f32 %v477_v44, %v442_v36 }
  0xa6   : > { %v534_v57 = vadd.f32 %v525_v41, %v478_v53 }
  0xa7   : > { %v527_v45 = vpop.f32.mrf.mxu2  ;;  %v573_v46 = vpop.f32.mrf.mxu3 }
  0xa8   : > { %v577_v60 = vadd.f32 %v568_v38, %v534_v57 }
  0xa9   : > { %v613_v47 = vpop.f32.mrf.mxu0 }
  0xaa   : > { %v620_v1 = vadd.f32 %v611_v43, %v577_v60 }
  0xab   : > { %v479_v48 = vpop.f32.mrf.mxu1 }
  0xac   : > { %v480_v59 = vadd.f32 %v479_v48, %v444_v39 }
  0xae   : > { %v535_v0 = vadd.f32 %v527_v45, %v480_v59 }
  0xaf   : > { %v530_v49 = vpop.f32.mrf.mxu2  ;;  %v575_v50 = vpop.f32.mrf.mxu3 }
  0xb0   : > { %v578_v6 = vadd.f32 %v570_v42, %v535_v0 }
  0xb1   : > { %v616_v51 = vpop.f32.mrf.mxu0 }
  0xb2   : > { %v621_v15 = vadd.f32 %v613_v47, %v578_v6 }
  0xb3   : > { %v482_v52 = vpop.f32.mrf.mxu1 }
  0xb4   : > { %v483_v4 = vadd.f32 %v482_v52, %v447_v37 }
  0xb6   : > { %v536_v12 = vadd.f32 %v530_v49, %v483_v4 }
  0xb7   : > { %v532_v54 = vpop.f32.mrf.mxu2  ;;  %v788_v55 = vpop.f32.mrf.mxu3 }
  0xb8   : > { %v579_v21 = vadd.f32 %v573_v46, %v536_v12 }
  0xb9   : > { %v618_v56 = vpop.f32.mrf.mxu0 }
  0xba   : > { %v622_v30 = vadd.f32 %v616_v51, %v579_v21 }
  0xbb   : > { %v484_v58 = vpop.f32.mrf.mxu1 }
  0xbf   : > { %v725_v61 = vpop.f32.mrf.mxu2  ;;  %v790_v62 = vpop.f32.mrf.mxu3 }
  0xc1   : > { %v828_v63 = vpop.f32.mrf.mxu0 }
  0xc3   : > { %v661_v2 = vpop.f32.mrf.mxu1 }
  0xc4   : > { %v670_v3 = vadd.f32 %v661_v2, %v620_v1 }
  0xc6   : > { %v734_v5 = vadd.f32 %v725_v61, %v670_v3 }
  0xc7   : > { %v727_v7 = vpop.f32.mrf.mxu2  ;;  %v793_v8 = vpop.f32.mrf.mxu3 }
  0xc8   : > { %v797_v9 = vadd.f32 %v788_v55, %v734_v5 }
  0xc9   : > { %v830_v11 = vpop.f32.mrf.mxu0 }
  0xca   : > { %v837_v13 = vadd.f32 %v828_v63, %v797_v9 }
  0xcb   : > { %v663_v16 = vpop.f32.mrf.mxu1 }
  0xcc   : > { %v844_v17 = vmul.f32 %v1214_v10, %v837_v13  ;;  %v671_v18 = vadd.f32 %v663_v16, %v621_v15 }
  0xce   : > { %v851_v19 = vadd.f32 %v1215_v14, %v844_v17  ;;  %v735_v20 = vadd.f32 %v727_v7, %v671_v18 }
  0xcf   : > { %v730_v23 = vpop.f32.mrf.mxu2  ;;  %v795_v24 = vpop.f32.mrf.mxu3 }
  0xd0   : > { %v854_v25 = vmax.f32 %v851_v19, 0.0  ;;  %v798_v26 = vadd.f32 %v790_v62, %v735_v20 }
  0xd1   : > { %v833_v27 = vpop.f32.mrf.mxu0 }
  0xd2   : > { %v857_v28 = vpack.c.bf16 %v854_v25, %v854_v25  ;;  %v838_v29 = vadd.f32 %v830_v11, %v798_v26 }
  0xd3   : > { %v666_v31 = vpop.f32.mrf.mxu1 }
  0xd4   : > { %859 = vst.msk [vmem:[%s1415_s28] sm:$0x3] %vm858_vm5, %v857_v28  ;;  %v845_v32 = vmul.f32 %v1214_v10, %v838_v29  ;;  %v672_v33 = vadd.f32 %v666_v31, %v622_v30 }
  0xd5   : > { %862 = vst.sshfl [vmem:[#allocation1] sm:$0xff pattern:$0x75643120] %v857_v28 }
  0xd6   : > { %v852_v34 = vadd.f32 %v1215_v14, %v845_v32  ;;  %v736_v22 = vadd.f32 %v730_v23, %v672_v33 }
  0xd7   : > { %v732_v35 = vpop.f32.mrf.mxu2 }
  0xd8   : > { %v855_v36 = vmax.f32 %v852_v34, 0.0  ;;  %v799_v37 = vadd.f32 %v793_v8, %v736_v22 }
  0xd9   : > { %v835_v38 = vpop.f32.mrf.mxu0 }
  0xda   : > { %v860_v39 = vpack.c.bf16 %v855_v36, %v855_v36  ;;  %v839_v40 = vadd.f32 %v833_v27, %v799_v37 }
  0xdb   : > { %v668_v41 = vpop.f32.mrf.mxu1 }
  0xdc   : > { %v866_v42 = vld [vmem:[#allocation1 + $0x1] ss:$2 sm:$0xff]  ;;  %v892_v43 = vrot.slane %v860_v39, 2  ;;  %864 = vst.sshfl [vmem:[#allocation1 + $0x10] sm:$0xff pattern:$0x75643120] %v860_v39  ;;  %v846_v44 = vmul.f32 %v1214_v10, %v839_v40 }
  0xdd   : > { %v876_v45 = vshrl.u32 %v866_v42, 16  ;;  %v879_v46 = vshll.u32 %v866_v42, 16  ;;  %916 = vst.sshfl [vmem:[#allocation1] sm:$0xff pattern:$0x75643120] %v860_v39 }
  0xde   : > { %v895_v47 = vsel %vm893_vm10, %v860_v39, %v892_v43  ;;  %v898_v48 = vsel %vm897_vm11, %v860_v39, %v892_v43  ;;  %v853_v49 = vadd.f32 %v1215_v14, %v846_v44  ;;  %vm926_vm10 = vsmask.f32 4368 }
  0xdf   : > { %v878_v50 = vrot.slane %v876_v45, 6  ;;  %v881_v51 = vrot.slane %v879_v46, 7  ;;  %v1170_v52 = vrot.slane %v895_v47, 9  ;;  %v1171_v53 = vrot.slane %v898_v48, 9  ;;  %vm927_vm11 = vmor %vm925_vm9, %vm926_vm10 }
  0xe0   : > { %v856_v54 = vmax.f32 %v853_v49, 0.0  ;;  %vm929_vm13 = vmor %vm927_vm11, %vm928_vm12 }
  0xe1   : > { %v911_v55 = vsel %vm907_vm0, %v1170_v52, %v1171_v53  ;;  %v882_v56 = vor.u32 %v881_v51, %v878_v50 }
  0xe2   : > { %1172 = vst.msk [vmem:[%s1415_s28 + $0x4] sm:$0x3] %vm858_vm5, %v911_v55  ;;  %v915_v57 = vpack.c.bf16 %v856_v54, %v856_v54 }
  0xe3   : > { %v868_v58 = vld [vmem:[#allocation1 + $0x10] ss:$2 sm:$0xff]  ;;  %v883_v60 = vrot.slane %v882_v56, 2 }
  0xe4   : > { %v884_v59 = vshll.u32 %v868_v58, 16  ;;  %918 = vst.sshfl [vmem:[#allocation1 + $0x10] sm:$0xff pattern:$0x75643120] %v915_v57  ;;  %v920_v63 = vld [vmem:[#allocation1 + $0x1] ss:$2 sm:$0xff] }
  0xe5   : > { %v930_v1 = vshrl.u32 %v920_v63, 16 }
  0xe6   : > { %v886_v61 = vrot.slane %v884_v59, 7 }
  0xe7   : > { %v1173_v5 = vrot.slane %v930_v1, 9 }
  0xe8   : > { %v887_v62 = vsel %vm875_vm6, %v883_v60, %v886_v61 }
  0xe9   : > { %1169 = vst.msk [vmem:[%s1415_s28 + $0x2] sm:$0x3] %vm858_vm5, %v887_v62 }
  0xeb   : > { %v922_v0 = vld [vmem:[#allocation1 + $0x10] ss:$2 sm:$0xff] }
  0xec   : > { %v934_v2 = vshrl.u32 %v922_v0, 16  ;;  %v937_v4 = vshll.u32 %v922_v0, 16 }
  0xee   : > { %v936_v3 = vrot.slane %v934_v2, 7 }
  0xf0   : > { %v939_v6 = vor.u32 %v937_v4, %v936_v3 }
  0xf2   : > { %v940_v7 = vsel %vm929_vm13, %v1173_v5, %v939_v6 }
  0xf3   : > { %1174 = vst.msk [vmem:[%s1415_s28 + $0x6] sm:$0x3] %vm858_vm5, %v940_v7 }
  0xf4 PF: > { %s17_s26 = sadd.s32 1, %s1238_s26   ;;  %s1444_s24 = smov %s1234_s25 }
  0xf5   : > { %p14_p5 = scmp.ge.s32.totalorder %s17_s26, 4   ;;  %s1445_s25 = smov %s1447_s27 }
  0xf7   :  { %16 = sbr.rel (!%p14_p5) target bundleno = 2 (0x2), region = 111 }

// kernel: feature_vector_pooler.14
= control target key start
LH: loop header
LB: loop body
LE: loop exit
PB: predicated region body
PF: predicated region fallthrough
CT: control target
= control target key end

     0   :  { %vm22_vm0 = vcmask 64512   ;;  %v163_v1 = vmov 0.0   ;;  %vm61_vm1 = vcmask 261120   ;;  %vm127_vm2 = vcmask 60416   ;;  %s231_s1 = inlined_call_operand.vmem [shape: bf16[32,8], index: 1, kind: input, shape index: {}]   ;;  %s232_s2 = inlined_call_operand.vmem [shape: f32[1,8], index: 2, kind: input, shape index: {}]   ;;  %s233_s3 = inlined_call_operand.vmem [shape: f32[1,8], index: 3, kind: input, shape index: {}]   ;;  %s234_s0 = inlined_call_operand.vmem [shape: bf16[32,32], index: 0, kind: input, shape index: {}]   ;;  %s235_s4 = inlined_call_operand.vmem [shape: bf16[32,8], index: 4, kind: output, shape index: {}]  }
   0x1   :  { %v157_v0 = vld [vmem:[%s231_s1 + $0x8] sm:$0xff]  ;;  %23 = vst.msk [vmem:[#allocation2] sm:$0xff] %vm22_vm0, %v163_v1  ;;  %v156_v2 = vld [vmem:[%s231_s1] sm:$0xff] }
   0x2   :  { %24 = vst.msk [vmem:[#allocation2 + $0x8] sm:$0xff] %vm22_vm0, %v163_v1  ;;  %74 = vmatpush.bf16.msra.mxu0 %v157_v0  ;;  %158 = vmatpush.bf16.msra.mxu1 %v157_v0  ;;  %v154_v3 = vld [vmem:[%s234_s0] sm:$0xff]  ;;  %v155_v4 = vld [vmem:[%s234_s0 + $0x8] sm:$0xff] }
   0x3   :  { %25 = vst.msk [vmem:[#allocation2 + $0x10] sm:$0xff] %vm22_vm0, %v163_v1  ;;  %v161_v13 = vld [vmem:[%s232_s2] ss:$0 sm:$0xff] }
   0x4   :  { %26 = vst.msk [vmem:[#allocation2 + $0x18] sm:$0xff] %vm22_vm0, %v163_v1  ;;  %v162_v16 = vld [vmem:[%s233_s3] ss:$0 sm:$0xff] }
   0x6   :  { %75 = vmatpush.bf16.msra.mxu0 %v156_v2  ;;  %159 = vmatpush.bf16.msra.mxu1 %v156_v2 }
   0x8   :  { %v27_v5 = vld [vmem:[#allocation2] sm:$0xff] }
   0x9   :  { %152 = vmatmul.msk.bf16.vlgmr.msra.gmra.mxu0 %vm61_vm1, %v154_v3  ;;  %153 = vmatmul.msk.bf16.vlgmr.msra.gmra.mxu1 %vm61_vm1, %v155_v4  ;;  %v28_v11 = vld [vmem:[#allocation2 + $0x8] sm:$0xff] }
   0xa   :  { %v29_v6 = vld [vmem:[#allocation2 + $0x10] sm:$0xff] }
   0xb   :  { %v30_v12 = vld [vmem:[#allocation2 + $0x18] sm:$0xff] }
  0x86   :  { %v77_v7 = vpop.f32.mrf.mxu0  ;;  %v82_v8 = vpop.f32.mrf.mxu1 }
  0x87   :  { %v87_v9 = vadd.f32 %v77_v7, %v27_v5  ;;  %v89_v10 = vadd.f32 %v82_v8, %v29_v6 }
  0x89   :  { %92 = vst.msk [vmem:[#allocation2] sm:$0xff] %vm22_vm0, %v87_v9 }
  0x8a   :  { %94 = vst.msk [vmem:[#allocation2 + $0x10] sm:$0xff] %vm22_vm0, %v89_v10 }
  0x8e   :  { %v79_v14 = vpop.f32.mrf.mxu0  ;;  %v84_v15 = vpop.f32.mrf.mxu1 }
  0x8f   :  { %v88_v17 = vadd.f32 %v79_v14, %v28_v11  ;;  %v90_v18 = vadd.f32 %v84_v15, %v30_v12 }
  0x90   :  { %v99_v19 = vld [vmem:[#allocation2] sm:$0xff] }
  0x91   :  { %v107_v20 = vmul.f32 %v161_v13, %v99_v19  ;;  %v101_v21 = vld [vmem:[#allocation2 + $0x10] sm:$0xff]  ;;  %93 = vst.msk [vmem:[#allocation2 + $0x8] sm:$0xff] %vm22_vm0, %v88_v17 }
  0x92   :  { %v109_v22 = vmul.f32 %v161_v13, %v101_v21  ;;  %95 = vst.msk [vmem:[#allocation2 + $0x18] sm:$0xff] %vm22_vm0, %v90_v18 }
  0x93   :  { %v115_v23 = vadd.f32 %v162_v16, %v107_v20 }
  0x94   :  { %v117_v24 = vadd.f32 %v162_v16, %v109_v22 }
  0x95   :  { %v119_v25 = vmax.f32 %v115_v23, 0.0 }
  0x96   :  { %v121_v26 = vmax.f32 %v117_v24, 0.0 }
  0x97   :  { %v123_v27 = vpack.c.bf16 %v119_v25, %v119_v25 }
  0x98   :  { %v125_v28 = vpack.c.bf16 %v121_v26, %v121_v26  ;;  %v100_v29 = vld [vmem:[#allocation2 + $0x8] sm:$0xff] }
  0x99   :  { %128 = vst.msk [vmem:[%s235_s4] sm:$0xf] %vm127_vm2, %v123_v27  ;;  %v108_v30 = vmul.f32 %v161_v13, %v100_v29  ;;  %v102_v31 = vld [vmem:[#allocation2 + $0x18] sm:$0xff] }
  0x9a   :  { %130 = vst.msk [vmem:[%s235_s4 + $0x8] sm:$0xf] %vm127_vm2, %v125_v28  ;;  %v110_v32 = vmul.f32 %v161_v13, %v102_v31 }
  0x9b   :  { %v116_v33 = vadd.f32 %v162_v16, %v108_v30 }
  0x9c   :  { %v118_v34 = vadd.f32 %v162_v16, %v110_v32 }
  0x9d   :  { %v120_v35 = vmax.f32 %v116_v33, 0.0 }
  0x9e   :  { %v122_v36 = vmax.f32 %v118_v34, 0.0 }
  0x9f   :  { %v124_v37 = vpack.c.bf16 %v120_v35, %v120_v35 }
  0xa0   :  { %v126_v38 = vpack.c.bf16 %v122_v36, %v122_v36 }
  0xa1   :  { %129 = vst.msk [vmem:[%s235_s4 + $0x4] sm:$0xf] %vm127_vm2, %v124_v37 }
  0xa2   :  { %131 = vst.msk [vmem:[%s235_s4 + $0xc] sm:$0xf] %vm127_vm2, %v126_v38 }

// kernel: feature_vector_pooler.19
= control target key start
LH: loop header
LB: loop body
LE: loop exit
PB: predicated region body
PF: predicated region fallthrough
CT: control target
= control target key end

     0   :  { %10 = vsyncpa [#allocation4], 0  ;;  %s880_s0 = inlined_call_operand.vmem [shape: bf16[2,16,8], index: 0, kind: input, shape index: {}]   ;;  %s881_s1 = inlined_call_operand.vmem [shape: bf16[8,32], index: 1, kind: input, shape index: {}]   ;;  %s882_s2 = inlined_call_operand.vmem [shape: f32[1,32], index: 2, kind: input, shape index: {}]   ;;  %s883_s3 = inlined_call_operand.vmem [shape: f32[1,32], index: 3, kind: input, shape index: {}]   ;;  %s884_s4 = inlined_call_operand.vmem [shape: bf16[2,16,32], index: 4, kind: input, shape index: {}]   ;;  %s885_s5 = inlined_call_operand.hbm [shape: f32[2,1,32], index: 5, kind: output, shape index: {}]  }
   0x1   :  { %12 = vsyncpa [#allocation4 + $0x1], 0  ;;  %s765_s18 = smov 0   ;;  %s767_s19 = smov 0  }
   0x2   :  { %s769_s20 = smov 0   ;;  %s771_s21 = smov 0  }
   0x3   :  { %s773_s22 = smov 0   ;;  %s775_s23 = smov 0  }
   0x4 LB: > { %s570_s24 = sadd.s32 4294967295, %s732_s23   ;;  %s571_s25 = sadd.s32 4294967294, %s732_s23   ;;  %s732_s23 = sphi %s775_s23, %s18_s23   ;;  %s728_s22 = sphi %s773_s22, %s892_s22   ;;  %s724_s21 = sphi %s771_s21, %s891_s21   ;;  %s720_s20 = sphi %s769_s20, %s890_s20   ;;  %s716_s19 = sphi %s767_s19, %s889_s19   ;;  %s712_s18 = sphi %s765_s18, %s888_s18  }
   0x5   : > { %s37_s26 = sadd.s32 1, %s728_s22  ;;  %s182_s27 = sadd.s32 1, %s720_s20 }
   0x6   : > { %p39_p0 = scmp.ge.s32.totalorder %s37_s26, 2  ;;  %p192_p1 = scmp.ne.s32.totalorder %s720_s20, %s716_s19 }
   0x7   : > { %p193_p2 = scmp.eq.s32.totalorder %s570_s24, 1  ;;  %p198_p3 = scmp.ne.s32.totalorder %s716_s19, %s712_s18 }
   0x8   : > { %s894_s26 = smov (%p39_p0, %s37_s26), 0  ;;  %p199_p5 = scmp.eq.s32.totalorder %s571_s25, 1 }
   0x9   : > { %p805_p4 = por %p193_p2, %p192_p1  ;;  %s177_s29 = ssub.s32 %s728_s22, %s894_s26 }
   0xa   : > { %p577_p6 = scmp.ge.s32.totalorder %s732_s23, 1  ;;  %p180_p7 = scmp.eq.s32.totalorder %s177_s29, 0 }
   0xb   : > { %p812_p8 = por %p199_p5, %p198_p3  ;;  %p261_p9 = scmp.lt.s32.totalorder %s732_s23, 3 }
   0xc   : > { %s818_s6 = scalar_select %p180_p7, %s720_s20, %s182_s27  }
   0xd   : > { %p262_p10 = pnand %p577_p6, %p261_p9 }
   0xe   : > { %p312_p11 = scmp.lt.s32.totalorder (!%p262_p10), %s724_s21, 1  ;;  %s310_s29 = sand.u32 (!%p262_p10), 1, %s716_s19  }
   0xf   : > { %265 = sbr.rel (%p262_p10) target bundleno = 197 (0xc5), region = 40  ;;  %s674_s17 = scalar_lea.hbm (!%p262_p10), %s885_s5, 2 }
  0x14   : > { %v353_v0 = vld [vmem:[%s881_s1] sm:$0xf]  ;;  %vm363_vm0 = vcmask 1043456   ;;  %vm346_vm1 = vcmask 261120   ;;  %s313_s9 = scalar_select %p312_p11, %s724_s21, 1  ;;  %v734_v2 = vmov 0.0  }
  0x15   : > { %v365_v1 = vsel %vm363_vm0, %v353_v0, 0  ;;  %347 = vst.msk [vmem:[#allocation2] sm:$0xff] %vm346_vm1, %v734_v2  ;;  %vm359_vm2 = vcmask 64512   ;;  %v652_v8 = vld [vmem:[%s882_s2] ss:$0 sm:$0xff]  ;;  %vm421_vm3 = vcmask 253952  }
  0x16   : > { %374 = vmatpush.bf16.msra.mxu0 %v365_v1  ;;  %348 = vst.msk [vmem:[#allocation2 + $0x8] sm:$0xff] %vm346_vm1, %v734_v2  ;;  %s589_s10 = sshll.u32 %s313_s9, 3  ;;  %v653_v13 = vld [vmem:[%s883_s3] ss:$0 sm:$0xff]  ;;  %s433_s9 = scalar_lea.hbm %s885_s5, %s724_s21 }
  0x17   : > { %s319_s13 = scalar_lea.vmem %s880_s0, %s589_s10  ;;  %s340_s24 = scalar_lea.vmem %s884_s4, %s589_s10 }
  0x18   : > { %v591_v3 = vld [vmem:[%s319_s13] sm:$0xff]  ;;  %s311_s10 = scalar_lea.vmem [#allocation3], %s310_s29  ;;  %s437_s12 = sshll.u32 %s433_s9, 4  ;;  %s438_s12 = int_to_ptr.hbm [resolvable:$true] %s437_s12 }
  0x19   : > { %586 = vmatmul.msk.bf16.vlgmr.msra.gmra.mxu0 %vm359_vm2, %v591_v3  ;;  %v593_v14 = vld [vmem:[%s340_s24] sm:$0xff]   ;;  %s435_s11 = sshll.u32 %s311_s10, 4  ;;  %s424_s13 = scalar_lea.sflag [#allocation4], %s310_s29  ;;  %s436_s11 = int_to_ptr.vmem [resolvable:$true] %s435_s11 }
  0x1a   : > { %v594_v15 = vunpack.c.l.bf16 %v593_v14  ;;  %v595_v18 = vunpack.c.h.bf16 %v593_v14  ;;  %s668_s14 = sshra.s32 %s438_s12, 4  ;;  %s669_s14 = int_to_ptr.hbm [resolvable:$true] %s668_s14 }
  0x1b   : > { %s670_s15 = scalar_lea.hbm %s669_s14, 1  ;;  %p675_p1 = scmp.lt.s32.totalorder %s669_s14, %s885_s5 }
  0x1c   : > { %v349_v4 = vld [vmem:[#allocation2] sm:$0xff]  ;;  %p671_p12 = scmp.ne.s32.totalorder %s669_s14, %s670_s15  ;;  %p676_p2 = scmp.lt.s32.totalorder %s674_s17, %s670_s15 }
  0x1d   : > { %v350_v7 = vld [vmem:[#allocation2 + $0x8] sm:$0xff] }
  0x1e   : > { %p672_p13 = pnand %p671_p12, %p805_p4  ;;  %p677_p3 = por %p676_p2, %p675_p1 }
  0x20   : > { %p673_p0 = pneg %p672_p13 }
  0x22   : > { %p678_p5 = pnand %p677_p3, %p673_p0 }
  0x96   : > { %v376_v5 = vpop.f32.mrf.mxu0 }
  0x97   : > { %v381_v6 = vadd.f32 %v376_v5, %v349_v4 }
  0x99   : > { %384 = vst.msk [vmem:[#allocation2] sm:$0xff] %vm346_vm1, %v381_v6 }
  0x9e   : > { %v378_v9 = vpop.f32.mrf.mxu0 }
  0x9f   : > { %v382_v10 = vadd.f32 %v378_v9, %v350_v7 }
  0xa0   : > { %v389_v11 = vld [vmem:[#allocation2] sm:$0xff] }
  0xa1   : > { %385 = vst.msk [vmem:[#allocation2 + $0x8] sm:$0xff] %vm346_vm1, %v382_v10  ;;  %v395_v12 = vmul.f32 %v652_v8, %v389_v11 }
  0xa3   : > { %v401_v16 = vadd.f32 %v653_v13, %v395_v12 }
  0xa5   : > { %v407_v20 = vadd.f32 %v594_v15, %v401_v16 }
  0xa7   : > { %v409_v23 = vmax.f32 %v407_v20, 0.0 }
  0xa8   : > { %v390_v17 = vld [vmem:[#allocation2 + $0x8] sm:$0xff] }
  0xa9   : > { %v396_v19 = vmul.f32 %v652_v8, %v390_v17  ;;  %v411_v25 = vsel %vm346_vm1, %v409_v23, 0.0 }
  0xab   : > { %v402_v21 = vadd.f32 %v653_v13, %v396_v19 }
  0xad   : > { %v408_v22 = vadd.f32 %v595_v18, %v402_v21 }
  0xaf   : > { %v410_v24 = vmax.f32 %v408_v22, 0.0 }
  0xb1   : > { %v412_v26 = vsel %vm346_vm1, %v410_v24, 0.0 }
  0xb2   : > { %v413_v27 = vadd.f32 %v412_v26, %v411_v25 }
  0xb4   : > { %v414_v28 = vrot.slane %v413_v27, 4 }
  0xb6   : > { %v415_v29 = vadd.f32 %v414_v28, %v413_v27 }
  0xb8   : > { %v416_v30 = vrot.slane %v415_v29, 2 }
  0xba   : > { %v417_v31 = vadd.f32 %v416_v30, %v415_v29 }
  0xbc   : > { %v418_v32 = vrot.slane %v417_v31, 1 }
  0xbe   : > { %v419_v33 = vadd.f32 %v418_v32, %v417_v31 }
  0xc0   : > { %v420_v34 = vmul.f32 0.0625, %v419_v33 }
  0xc2   : > { %422 = vst.msk [vmem:[%s311_s10] sm:$0x1] %vm421_vm3, %v420_v34 }
  0xc3   : > { %681 = shalt.err (!%p678_p5)
}
  0xc4   : > { %596 = dma.vmem_to_hbm [thread:$0]  (%p805_p4), %s436_s11, 16, %s438_s12, %s424_s13  }
  0xc5 PF: > { %p602_p6 = scmp.ge.s32.totalorder %s732_s23, 2  ;;  %s449_s27 = sand.u32 1, %s712_s18  }
  0xc6   : > { %s450_s29 = scalar_lea.sflag [#allocation4], %s449_s27 }
  0xc7   : > { %p599_p7 = pnand %p602_p6, %p812_p8 }
  0xc9   : > { %p600_p9 = pneg %p599_p7 }
  0xcb   : > { %707 = dma.done.wait (%p600_p9), %s450_s29, 16  }
  0xcc   : > { %709 = vsyncadd (%p600_p9), %s450_s29, 4294967280  ;;  %s18_s23 = sadd.s32 1, %s732_s23   ;;  %s888_s18 = smov %s716_s19 }
  0xcd   : > { %p15_p10 = scmp.ge.s32.totalorder %s18_s23, 4   ;;  %s889_s19 = smov %s720_s20 }
  0xce   : > { %s890_s20 = smov %s818_s6  ;;  %s891_s21 = smov %s728_s22 }
  0xcf   : > { %s892_s22 = smov %s894_s26  ;;  %17 = sbr.rel (!%p15_p10) target bundleno = 4 (0x4), region = 95 }
  0xd4   :  { %455 = vsyncpa [#allocation4], 1 }
  0xd5   :  { %457 = vsyncpa [#allocation4 + $0x1], 1 }

// kernel: feature_vector_pooler.15
= control target key start
LH: loop header
LB: loop body
LE: loop exit
PB: predicated region body
PF: predicated region fallthrough
CT: control target
= control target key end

     0   :  { %s987_s15 = smov 0   ;;  %s989_s16 = smov 0   ;;  %s1137_s0 = inlined_call_operand.vmem [shape: bf16[2,38,8], index: 0, kind: input, shape index: {}]   ;;  %s1138_s1 = inlined_call_operand.vmem [shape: bf16[9,8,8], index: 1, kind: input, shape index: {}]   ;;  %s1139_s2 = inlined_call_operand.vmem [shape: f32[1,8], index: 2, kind: input, shape index: {}]   ;;  %s1140_s3 = inlined_call_operand.vmem [shape: f32[1,8], index: 3, kind: input, shape index: {}]   ;;  %s1141_s4 = inlined_call_operand.vmem [shape: bf16[2,4,4,8], index: 4, kind: output, shape index: {}]  }
   0x1   :  { %s991_s17 = smov 0  }
   0x2 LB: > { %s26_s18 = sadd.s32 1, %s956_s16  ;;  %p862_p0 = scmp.ge.s32.totalorder %s960_s17, 1  ;;  %s960_s17 = sphi %s991_s17, %s14_s17   ;;  %s956_s16 = sphi %s989_s16, %s1143_s16   ;;  %s952_s15 = sphi %s987_s15, %s1142_s15  }
   0x3   : > { %p28_p1 = scmp.ge.s32.totalorder %s26_s18, 2  ;;  %p201_p2 = scmp.lt.s32.totalorder %s960_s17, 3 }
   0x5   : > { %s1145_s18 = smov (%p28_p1, %s26_s18), 0  ;;  %p202_p3 = pnand %p862_p0, %p201_p2 }
   0x6   : > { %p240_p4 = scmp.lt.s32.totalorder (!%p202_p3), %s952_s15, 1 }
   0x7   : > { %205 = sbr.rel (%p202_p3) target bundleno = 243 (0xf3), region = 36 }
   0xc   : > { %v866_v0 = vld [vmem:[%s1138_s1 + $0x4] sm:$0xf]  ;;  %vm304_vm0 = vcmask 1043456   ;;  %v267_v2 = vld [vmem:[%s1138_s1] sm:$0xf]  ;;  %s1147_s15 = smov (!%p240_p4, %s952_s15), 1 }
   0xd   : > { %v306_v1 = vsel %vm304_vm0, %v866_v0, 0  ;;  %v871_v3 = vld [vmem:[%s1138_s1 + $0x8] sm:$0xf]  ;;  %v333_v4 = vsel %vm304_vm0, %v267_v2, 0  ;;  %v874_v6 = vld [vmem:[%s1138_s1 + $0xc] sm:$0xf] }
   0xe   : > { %315 = vmatpush.bf16.msra.mxu0 %v306_v1  ;;  %910 = vmatpush.bf16.msra.mxu1 %v306_v1  ;;  %v370_v5 = vsel %vm304_vm0, %v871_v3, 0  ;;  %v414_v7 = vsel %vm304_vm0, %v874_v6, 0  ;;  %v877_v8 = vld [vmem:[%s1138_s1 + $0x10] sm:$0xf]  ;;  %v883_v9 = vld [vmem:[%s1138_s1 + $0x18] sm:$0xf] }
   0xf   : > { %379 = vmatpush.bf16.msra.mxu2 %v370_v5  ;;  %s911_s5 = smul.u32 20, %s1147_s15  ;;  %423 = vmatpush.bf16.msra.mxu3 %v414_v7  ;;  %v468_v10 = vsel %vm304_vm0, %v877_v8, 0  ;;  %v552_v11 = vsel %vm304_vm0, %v883_v9, 0  ;;  %v886_v12 = vld [vmem:[%s1138_s1 + $0x1c] sm:$0xf]  ;;  %vm359_vm2 = vcmask 1046528  }
  0x10   : > { %v606_v13 = vsel %vm304_vm0, %v886_v12, 0  ;;  %vm281_vm1 = vsmask.f32 7424  ;;  %v880_v40 = vld [vmem:[%s1138_s1 + $0x14] sm:$0xf]  ;;  %vm297_vm3 = vcmask 64512  }
  0x11   : > { %s1039_s10 = scalar_lea.vmem %s1137_s0, %s911_s5  ;;  %v889_v41 = vld [vmem:[%s1138_s1 + $0x20] sm:$0xf]  ;;  %vm403_vm4 = vcmask 1044480   ;;  %v502_v47 = vsel %vm304_vm0, %v880_v40, 0  ;;  %vm443_vm5 = vsmask.f32 4352 }
  0x12   : > { %342 = vmatpush.bf16.msrb.mxu1 %v333_v4  ;;  %477 = vmatpush.bf16.msrb.mxu0 %v468_v10  ;;  %v1042_v14 = vld [vmem:[%s1039_s10] sm:$0xff]   ;;  %v1045_v15 = vld [vmem:[%s1039_s10 + $0x8] sm:$0xff]   ;;  %v645_v48 = vsel %vm304_vm0, %v889_v41, 0  ;;  %v575_v60 = vld [vmem:[%s1039_s10 + $0x10] sm:$0x7]  ;;  %vm541_vm6 = vcmask 1045504  }
  0x13   : > { %561 = vmatpush.bf16.msrb.mxu2 %v552_v11  ;;  %615 = vmatpush.bf16.msrb.mxu3 %v606_v13  ;;  %v268_v16 = vld [vmem:[%s1039_s10 + $0xc] sm:$0x1]  ;;  %v1049_v17 = vunpack.c.l.b16 %v1045_v15  ;;  %v283_v19 = vshrl.u32 %v1042_v14, 16  ;;  %v285_v20 = vshll.u32 %v1042_v14, 16  ;;  %v353_v21 = vld [vmem:[%s1039_s10] sm:$0xe]  ;;  %v1056_v23 = vunpack.c.h.b16 %v1042_v14 }
  0x14   : > { %v278_v18 = vunpack.c.l.b16 %v268_v16  ;;  %v393_v22 = vld [vmem:[%s1039_s10] sm:$0x8]  ;;  %v357_v24 = vunpack.c.l.b16 %v353_v21  ;;  %v394_v25 = vld [vmem:[%s1039_s10 + $0xc] sm:$0x7]  ;;  %v441_v30 = vunpack.c.h.b16 %v1045_v15  ;;  %v453_v52 = vshrl.u32 %v1045_v15, 16  ;;  %s900_s23 = sshll.u32 %s1147_s15, 3 }
  0x15   : > { %v399_v26 = vunpack.c.l.b16 %v393_v22  ;;  %v287_v28 = vrot.slane %v285_v20, 1  ;;  %v400_v29 = vunpack.c.l.b16 %v394_v25  ;;  %v456_v53 = vshll.u32 %v1045_v15, 16  ;;  %v525_v58 = vld [vmem:[%s1039_s10 + $0x4] sm:$0xc]  ;;  %v909_v59 = vld [vmem:[%s1039_s10 + $0x8] sm:$0xff]   ;;  %s1118_s26 = scalar_lea.vmem %s1141_s4, %s900_s23 }
  0x16   : > { %v280_v27 = vpack.c.b16 %v278_v18, %v1049_v17  ;;  %v358_v31 = vpack.c.b16 %v1056_v23, %v357_v24  ;;  %v455_v56 = vrot.slane %v453_v52, 3  ;;  %v907_v63 = vunpack.c.l.b16 %v909_v59  ;;  %v528_v4 = vld [vmem:[%s1039_s10 + $0x10] sm:$0x3] }
  0x17   : > { %v401_v32 = vpack.c.b16 %v1056_v23, %v399_v26  ;;  %v288_v33 = vor.u32 %v287_v28, %v283_v19  ;;  %v402_v38 = vpack.c.b16 %v400_v29, %v1049_v17  ;;  %v458_v57 = vrot.slane %v456_v53, 4 }
  0x18   : > { %v290_v34 = vshll.u32 %v280_v27, 16  ;;  %v294_v35 = vshrl.u32 %v280_v27, 16  ;;  %v361_v36 = vrot.slane %v280_v27, 1  ;;  %v360_v37 = vrot.slane %v358_v31, 1  ;;  %v629_v27 = vld [vmem:[%s1039_s10 + $0x4] sm:$0x8] }
  0x19   : > { %v404_v39 = vrot.slane %v401_v32, 3  ;;  %v405_v44 = vrot.slane %v402_v38, 3  ;;  %v445_v50 = vshrl.u32 %v401_v32, 16  ;;  %v448_v51 = vshll.u32 %v401_v32, 16 }
  0x1a   : > { %v292_v42 = vrot.slane %v290_v34, 1  ;;  %v362_v43 = vsel %vm359_vm2, %v360_v37, %v361_v36  ;;  %v459_v62 = vor.u32 %v458_v57, %v455_v56  ;;  %v908_v0 = vunpack.c.h.b16 %v909_v59 }
  0x1b   : > { %872 = vmatmul.msk.bf16.vlgmr.msra.gmra.mxu2 %vm297_vm3, %v362_v43  ;;  %v406_v49 = vsel %vm403_vm4, %v404_v39, %v405_v44  ;;  %v447_v54 = vrot.slane %v445_v50, 3  ;;  %v450_v55 = vrot.slane %v448_v51, 4  ;;  %v535_v1 = vunpack.c.l.b16 %v525_v58 }
  0x1c   : > { %v293_v45 = vsel %vm281_vm1, %v288_v33, %v292_v42  ;;  %v296_v46 = vor.u32 %v294_v35, %v292_v42  ;;  %875 = vmatmul.msk.bf16.vlgmr.msra.gmra.mxu3 %vm297_vm3, %v406_v49  ;;  %v579_v2 = vunpack.c.l.b16 %v575_v60  ;;  %v538_v7 = vunpack.c.l.b16 %v528_v4 }
  0x1d   : > { %867 = vmatmul.msk.bf16.vlgmr.msra.gmra.mxu0 %vm297_vm3, %v293_v45  ;;  %v451_v61 = vor.u32 %v450_v55, %v447_v54  ;;  %v539_v5 = vpack.c.b16 %v907_v63, %v535_v1  ;;  %vm581_vm7 = vsmask.f32 5376  ;;  %v633_v28 = vunpack.c.l.b16 %v629_v27 }
  0x1e   : > { %868 = vmatmul.msk.bf16.vlgmr.msra.gmra.mxu1 %vm297_vm3, %v296_v46  ;;  %654 = vmatpush.bf16.msra.mxu0 %v645_v48  ;;  %v580_v6 = vpack.c.b16 %v579_v2, %v908_v0  ;;  %v540_v12 = vpack.c.b16 %v538_v7, %v908_v0  ;;  %v493_v34 = vpack.c.b16 %v1049_v17, %v1056_v23  ;;  %vm686_vm8 = vcmask 58368  }
  0x1f   : > { %511 = vmatpush.bf16.msra.mxu1 %v502_v47  ;;  %v460_v3 = vsel %vm443_vm5, %v451_v61, %v459_v62  ;;  %v583_v8 = vshrl.u32 %v539_v5, 16  ;;  %v586_v9 = vshll.u32 %v539_v5, 16  ;;  %v542_v20 = vrot.slane %v539_v5, 2 }
  0x20   : > { %v591_v10 = vshrl.u32 %v580_v6, 16  ;;  %v594_v11 = vshll.u32 %v580_v6, 16  ;;  %v543_v21 = vrot.slane %v540_v12, 2  ;;  %v634_v29 = vpack.c.b16 %v907_v63, %v633_v28 }
  0x21   : > { %v585_v13 = vrot.slane %v583_v8, 2  ;;  %v588_v16 = vrot.slane %v586_v9, 3  ;;  %v636_v32 = vrot.slane %v580_v6, 3  ;;  %v494_v35 = vpack.c.b16 %v441_v30, %v441_v30  ;;  %v936_v6 = vld [vmem:[%s1139_s2] ss:$0 sm:$0xff] }
  0x22   : > { %v593_v18 = vrot.slane %v591_v10, 2  ;;  %v596_v19 = vrot.slane %v594_v11, 3  ;;  %v544_v25 = vsel %vm541_vm6, %v542_v20, %v543_v21  ;;  %v635_v31 = vrot.slane %v634_v29, 3  ;;  %v937_v10 = vld [vmem:[%s1140_s3] ss:$0 sm:$0xff] }
  0x23   : > { %v589_v22 = vor.u32 %v588_v16, %v585_v13  ;;  %vm699_vm9 = vcmask 1040384   ;;  %vm700_vm10 = vcmask 1042434   ;;  %vm702_vm12 = vcmask 1044484  }
  0x24   : > { %v597_v24 = vor.u32 %v596_v19, %v593_v18  ;;  %v637_v33 = vsel %vm403_vm4, %v635_v31, %v636_v32  ;;  %vm701_vm11 = vmor %vm699_vm9, %vm700_vm10  ;;  %vm704_vm14 = vcmask 1046534   ;;  %vm722_vm0 = vcmask 1041408  }
  0x25   : > { %vm703_vm13 = vmor %vm701_vm11, %vm702_vm12  ;;  %vm727_vm1 = vcmask 1043458  }
  0x26   : > { %v598_v26 = vsel %vm581_vm7, %v589_v22, %v597_v24  ;;  %vm705_vm15 = vmor %vm703_vm13, %vm704_vm14 }
  0x2b   : > { %873 = vmatmul.msk.bf16.gmra.mxu2 %vm297_vm3, %v361_v36 }
  0x2c   : > { %876 = vmatmul.msk.bf16.gmra.mxu3 %vm297_vm3, %v405_v44 }
  0x2d   : > { %878 = vmatmul.msk.bf16.vlgmr.msrb.gmra.mxu0 %vm297_vm3, %v460_v3 }
  0x2e   : > { %869 = vmatmul.msk.bf16.vlgmr.msrb.gmra.mxu1 %vm297_vm3, %v1042_v14  ;;  %v326_v14 = vpack.c.b16 %v1049_v17, %v1049_v17 }
  0x3b   : > { %884 = vmatmul.msk.bf16.vlgmr.msrb.gmra.mxu2 %vm297_vm3, %v544_v25 }
  0x3c   : > { %887 = vmatmul.msk.bf16.vlgmr.msrb.gmra.mxu3 %vm297_vm3, %v598_v26 }
  0x3d   : > { %879 = vmatmul.msk.bf16.gmra.mxu0 %vm297_vm3, %v459_v62 }
  0x3e   : > { %870 = vmatmul.msk.bf16.gmra.mxu1 %vm297_vm3, %v326_v14 }
  0x4b   : > { %885 = vmatmul.msk.bf16.gmra.mxu2 %vm297_vm3, %v543_v21 }
  0x4c   : > { %888 = vmatmul.msk.bf16.gmra.mxu3 %vm297_vm3, %v597_v24 }
  0x4d   : > { %890 = vmatmul.msk.bf16.vlgmr.msra.gmra.mxu0 %vm297_vm3, %v637_v33 }
  0x4e   : > { %881 = vmatmul.msk.bf16.vlgmr.msra.gmra.mxu1 %vm297_vm3, %v493_v34 }
  0x5d   : > { %891 = vmatmul.msk.bf16.gmra.mxu0 %vm297_vm3, %v636_v32 }
  0x5e   : > { %882 = vmatmul.msk.bf16.gmra.mxu1 %vm297_vm3, %v494_v35 }
  0x9a   : > { %v317_v36 = vpop.f32.mrf.mxu0 }
  0x9b   : > { %v322_v37 = vpop.f32.mrf.mxu1 }
  0x9e   : > { %v381_v38 = vpop.f32.mrf.mxu2 }
  0x9f   : > { %v425_v17 = vpop.f32.mrf.mxu3 }
  0xa2   : > { %v319_v23 = vpop.f32.mrf.mxu0 }
  0xa3   : > { %v324_v39 = vpop.f32.mrf.mxu1 }
  0xa6   : > { %v383_v40 = vpop.f32.mrf.mxu2 }
  0xa7   : > { %v427_v41 = vpop.f32.mrf.mxu3 }
  0xaa   : > { %v479_v42 = vpop.f32.mrf.mxu0 }
  0xab   : > { %v344_v43 = vpop.f32.mrf.mxu1 }
  0xac   : > { %v345_v50 = vadd.f32 %v344_v43, %v317_v36 }
  0xae   : > { %v386_v44 = vpop.f32.mrf.mxu2  ;;  %v390_v53 = vadd.f32 %v381_v38, %v345_v50 }
  0xaf   : > { %v430_v45 = vpop.f32.mrf.mxu3 }
  0xb0   : > { %v434_v57 = vadd.f32 %v425_v17, %v390_v53 }
  0xb2   : > { %v481_v46 = vpop.f32.mrf.mxu0  ;;  %v488_v62 = vadd.f32 %v479_v42, %v434_v57 }
  0xb3   : > { %v346_v15 = vpop.f32.mrf.mxu1 }
  0xb4   : > { %v347_v56 = vadd.f32 %v346_v15, %v319_v23 }
  0xb6   : > { %v388_v47 = vpop.f32.mrf.mxu2  ;;  %v391_v60 = vadd.f32 %v383_v40, %v347_v56 }
  0xb7   : > { %v432_v30 = vpop.f32.mrf.mxu3 }
  0xb8   : > { %v435_v3 = vadd.f32 %v427_v41, %v391_v60 }
  0xba   : > { %v484_v48 = vpop.f32.mrf.mxu0  ;;  %v489_v12 = vadd.f32 %v481_v46, %v435_v3 }
  0xbb   : > { %v349_v49 = vpop.f32.mrf.mxu1 }
  0xbc   : > { %v350_v1 = vadd.f32 %v349_v49, %v322_v37 }
  0xbe   : > { %v563_v51 = vpop.f32.mrf.mxu2  ;;  %v392_v8 = vadd.f32 %v386_v44, %v350_v1 }
  0xbf   : > { %v617_v52 = vpop.f32.mrf.mxu3 }
  0xc0   : > { %v436_v21 = vadd.f32 %v430_v45, %v392_v8 }
  0xc2   : > { %v486_v54 = vpop.f32.mrf.mxu0  ;;  %v490_v29 = vadd.f32 %v484_v48, %v436_v21 }
  0xc3   : > { %v351_v55 = vpop.f32.mrf.mxu1 }
  0xc6   : > { %v565_v58 = vpop.f32.mrf.mxu2 }
  0xc7   : > { %v619_v59 = vpop.f32.mrf.mxu3 }
  0xca   : > { %v656_v61 = vpop.f32.mrf.mxu0 }
  0xcb   : > { %v513_v63 = vpop.f32.mrf.mxu1 }
  0xcc   : > { %v522_v0 = vadd.f32 %v513_v63, %v488_v62 }
  0xce   : > { %v572_v2 = vadd.f32 %v563_v51, %v522_v0  ;;  %v568_v4 = vpop.f32.mrf.mxu2 }
  0xcf   : > { %v622_v7 = vpop.f32.mrf.mxu3 }
  0xd0   : > { %v626_v5 = vadd.f32 %v617_v52, %v572_v2 }
  0xd2   : > { %v665_v9 = vadd.f32 %v656_v61, %v626_v5  ;;  %v658_v11 = vpop.f32.mrf.mxu0 }
  0xd3   : > { %v515_v13 = vpop.f32.mrf.mxu1 }
  0xd4   : > { %v672_v16 = vmul.f32 %v936_v6, %v665_v9  ;;  %v523_v18 = vadd.f32 %v515_v13, %v489_v12 }
  0xd6   : > { %v679_v19 = vadd.f32 %v937_v10, %v672_v16  ;;  %v573_v20 = vadd.f32 %v565_v58, %v523_v18  ;;  %v570_v22 = vpop.f32.mrf.mxu2 }
  0xd7   : > { %v624_v14 = vpop.f32.mrf.mxu3 }
  0xd8   : > { %v682_v24 = vmax.f32 %v679_v19, 0.0  ;;  %v627_v25 = vadd.f32 %v619_v59, %v573_v20 }
  0xda   : > { %v685_v26 = vpack.c.bf16 %v682_v24, %v682_v24  ;;  %v666_v27 = vadd.f32 %v658_v11, %v627_v25  ;;  %v661_v28 = vpop.f32.mrf.mxu0 }
  0xdb   : > { %v518_v31 = vpop.f32.mrf.mxu1 }
  0xdc   : > { %687 = vst.msk [vmem:[%s1118_s26] sm:$0x3] %vm686_vm8, %v685_v26  ;;  %v673_v32 = vmul.f32 %v936_v6, %v666_v27  ;;  %v524_v33 = vadd.f32 %v518_v31, %v490_v29 }
  0xdd   : > { %690 = vst.sshfl [vmem:[#allocation1] sm:$0xff pattern:$0x75643120] %v685_v26 }
  0xde   : > { %v680_v34 = vadd.f32 %v937_v10, %v673_v32  ;;  %v574_v35 = vadd.f32 %v568_v4, %v524_v33 }
  0xe0   : > { %v683_v36 = vmax.f32 %v680_v34, 0.0  ;;  %v628_v37 = vadd.f32 %v622_v7, %v574_v35 }
  0xe2   : > { %v688_v38 = vpack.c.bf16 %v683_v36, %v683_v36  ;;  %v667_v17 = vadd.f32 %v661_v28, %v628_v37  ;;  %v663_v23 = vpop.f32.mrf.mxu0 }
  0xe3   : > { %v520_v39 = vpop.f32.mrf.mxu1 }
  0xe4   : > { %692 = vst.sshfl [vmem:[#allocation1 + $0x10] sm:$0xff pattern:$0x75643120] %v688_v38  ;;  %v694_v40 = vld [vmem:[#allocation1 + $0x1] ss:$2 sm:$0xff]  ;;  %v674_v41 = vmul.f32 %v936_v6, %v667_v17 }
  0xe5   : > { %713 = vst.sshfl [vmem:[#allocation1] sm:$0xff pattern:$0x75643120] %v688_v38  ;;  %v892_v46 = vrot.slane %v694_v40, 9 }
  0xe6   : > { %v681_v42 = vadd.f32 %v937_v10, %v674_v41 }
  0xe8   : > { %v684_v43 = vmax.f32 %v681_v42, 0.0 }
  0xea   : > { %v719_v44 = vpack.c.bf16 %v684_v43, %v684_v43 }
  0xeb   : > { %v697_v45 = vld [vmem:[#allocation1 + $0x10] ss:$2 sm:$0xff] }
  0xec   : > { %v715_v15 = vld [vmem:[#allocation1 + $0x1] ss:$2 sm:$0xff]  ;;  %v708_v47 = vrot.slane %v697_v45, 7  ;;  %v721_v30 = vrot.slane %v719_v44, 2 }
  0xed   : > { %894 = vst.msk [vmem:[%s1118_s26 + $0x4] sm:$0x3] %vm686_vm8, %v715_v15 }
  0xee   : > { %v709_v48 = vsel %vm705_vm15, %v892_v46, %v708_v47  ;;  %v725_v49 = vsel %vm722_vm0, %v719_v44, %v721_v30  ;;  %v728_v50 = vsel %vm727_vm1, %v719_v44, %v721_v30 }
  0xef   : > { %893 = vst.msk [vmem:[%s1118_s26 + $0x2] sm:$0x3] %vm686_vm8, %v709_v48  ;;  %v895_v51 = vrot.slane %v725_v49, 9  ;;  %v896_v52 = vrot.slane %v728_v50, 9 }
  0xf1   : > { %v734_v53 = vsel %vm705_vm15, %v895_v51, %v896_v52 }
  0xf2   : > { %897 = vst.msk [vmem:[%s1118_s26 + $0x6] sm:$0x3] %vm686_vm8, %v734_v53 }
  0xf3 PF: > { %s14_s17 = sadd.s32 1, %s960_s17   ;;  %s1142_s15 = smov %s956_s16 }
  0xf4   : > { %p11_p5 = scmp.ge.s32.totalorder %s14_s17, 4   ;;  %s1143_s16 = smov %s1145_s18 }
  0xf6   :  { %13 = sbr.rel (!%p11_p5) target bundleno = 2 (0x2), region = 89 }

</bundles_post_ra>
